<compile_context>
chip_gen: v7x
topology: tpu7x:2x2x1
jax: 0.10.0
libtpu: 0.0.40
codegen_flags: <defaults>
</compile_context>

<pallas_src>
import numpy as np
import jax
import jax.numpy as jnp
from jax import lax
from jax.experimental import pallas as pl
from jax.experimental.pallas import tpu as pltpu

# ----------------------------- configuration (small) -----------------------------
B = 2            # videos
C_IN = 32        # raw video feature channels
T_PRE = 32       # pre_num_clip
POOL_K = 2       # featpool kernel = stride
N = T_PRE // POOL_K          # num_clip = 16
HIDDEN = 32      # featpool hidden size
JOINT = 32       # joint space size
K = 3            # proposal conv kernel size
NUM_STACK = 2    # stacked proposal conv layers
S = 4            # sentences per video
L = 8            # max words per sentence
E = 32           # word embedding dim

FIRST_PAD = (K - 1) * NUM_STACK // 2      # 2  (padding of first proposal conv)
OUT0 = N + 2 * FIRST_PAD - K + 1          # 18 (layer-0 output side)
P = N + 2 * FIRST_PAD                     # 20 : row stride of the flat padded grid
PP = P * P                                # 400 usable flat positions
GRID = 512                                # lane width of spatial slabs (mult of 128)
KKH = K * K * HIDDEN                      # 288 : im2col contraction depth
NEG = -1e30                               # finite "-inf" for the max scan
EPS2 = 1e-24                              # eps^2 for F.normalize (eps = 1e-12)

# weight-slab lane offsets (all 128-aligned)
OFF_FPW, OFF_W0, OFF_W1, OFF_WC, OFF_TW = 0, 128, 512, 896, 1024
WSLAB_W = 1152

# constant-slab (LSLAB) row indices
ROW_S0, ROW_S1, ROW_OMASK, ROW_UPPER, ROW_COL, ROW_TB, ROW_SEL = 0, 1, 2, 3, 4, 5, 8

_OFFSETS = [(dy, dx) for dy in range(K) for dx in range(K)]

# ------------------- constants hoisted out of the kernel (numpy) -------------------
_MASK2D_NP = np.triu(np.ones((N, N), dtype=np.float32))          # feat2d.mask2d


def _mask2weight_np(mask, k, pad):
    # MMN/D3G mask2weight: count of valid cells under a kxk window, reciprocal where > 0
    m = np.pad(mask.astype(np.float32), pad)
    ho, wo = m.shape[0] - k + 1, m.shape[1] - k + 1
    cnt = np.zeros((ho, wo), np.float32)
    for dy in range(k):
        for dx in range(k):
            cnt += m[dy:dy + ho, dx:dx + wo]
    return np.where(cnt > 0, 1.0 / np.maximum(cnt, 1.0), 0.0).astype(np.float32)


_W0_NP = _mask2weight_np(_MASK2D_NP, K, FIRST_PAD)                # [18, 18]
_W1_NP = _mask2weight_np((_W0_NP > 0).astype(np.float32), K, 0)   # [16, 16]


def _embed_flat(a):
    """Place a [h, w] array (top-left anchored) onto the flat row-stride-P grid."""
    out = np.zeros((GRID,), np.float32)
    h, w = a.shape
    for r in range(h):
        out[r * P:r * P + w] = a[r]
    return out


def _build_lslab_static():
    ls = np.zeros((ROW_SEL + N, GRID), np.float32)
    ls[ROW_S0] = _embed_flat(_W0_NP)          # layer-0 mask2weight at output coords
    ls[ROW_S1] = _embed_flat(_W1_NP)          # layer-1 mask2weight at output coords
    ls[ROW_OMASK] = _embed_flat(_MASK2D_NP)   # final mask2d at output coords
    # upper-triangular init mask at padded-input coords (rows/cols FIRST_PAD..FIRST_PAD+N)
    up = np.zeros((GRID,), np.float32)
    for i in range(N):
        for j in range(i, N):
            up[(i + FIRST_PAD) * P + (j + FIRST_PAD)] = 1.0
    ls[ROW_UPPER] = up
    # column index (f % P) for the scan masks; -1 beyond the usable grid
    col = np.full((GRID,), -1.0, np.float32)
    col[:PP] = np.tile(np.arange(P, dtype=np.float32), P)
    ls[ROW_COL] = col
    # SEL scatter matrix: pooled[:, j] -> every grid row, column j + FIRST_PAD
    for j in range(N):
        for r in range(P):
            ls[ROW_SEL + j, r * P + j + FIRST_PAD] = 1.0
    return ls


_LSLAB_STATIC_NP = _build_lslab_static()      # [8 + N, GRID] f32


# ------------------------------ small lane-shift helpers ------------------------------
def _shift_left_lanes(x, s):
    """out[..., f] = x[..., f + s] (zero fill at the tail).  s is static."""
    if s == 0:
        return x
    tail = jnp.zeros(x.shape[:-1] + (s,), x.dtype)
    return jnp.concatenate([x[..., s:], tail], axis=-1)


def _shift_right_lanes(x, s, fill):
    """out[..., f] = x[..., f - s] (fill at the head).  s is static."""
    head = jnp.full(x.shape[:-1] + (s,), fill, x.dtype)
    return jnp.concatenate([head, x[..., :x.shape[-1] - s]], axis=-1)


# ================================ fused Pallas kernel ================================
def _d3g_fused_kernel(x2_ref,      # [C_IN, POOL_K*N] f32   pool-slot-stacked video feats
                      q_ref,       # [S, L, E]         f32   word embeddings
                      qscale_ref,  # [S, L, 1]         f32   mask / wordlen (masked mean)
                      wslab_ref,   # [HIDDEN, 1152]    bf16  packed weights (128-aligned)
                      cbias_ref,   # [HIDDEN, 128]     f32   channel biases as columns
                      lslab_ref,   # [8+N, GRID]       f32   masks / scales / scatter rows
                      out_ref,     # [S, GRID]         f32   lane-dense scores
                      taps_ref):   # VMEM scratch [KKH, GRID] bf16 (im2col taps)
    f32, bf16 = jnp.float32, jnp.bfloat16

    # ---- constant views (cheap in-VMEM slices of the packed slabs) ----
    s0 = lslab_ref[ROW_S0:ROW_S0 + 1, :]
    s1 = lslab_ref[ROW_S1:ROW_S1 + 1, :]
    omask = lslab_ref[ROW_OMASK:ROW_OMASK + 1, :]
    upper = lslab_ref[ROW_UPPER:ROW_UPPER + 1, :] > 0.5
    col = lslab_ref[ROW_COL:ROW_COL + 1, :]
    tb = lslab_ref[ROW_TB:ROW_TB + 1, 0:JOINT]
    sel = lslab_ref[ROW_SEL:ROW_SEL + N, :]

    fpb = cbias_ref[:, 0:1]
    b0 = cbias_ref[:, 1:2]
    b1 = cbias_ref[:, 2:3]
    bc = cbias_ref[:, 3:4]

    fpw = wslab_ref[:, OFF_FPW:OFF_FPW + C_IN]      # [H, C_IN]   bf16
    w0r = wslab_ref[:, OFF_W0:OFF_W0 + KKH]         # [H, 288]    bf16
    w1r = wslab_ref[:, OFF_W1:OFF_W1 + KKH]         # [H, 288]    bf16
    wc = wslab_ref[:, OFF_WC:OFF_WC + HIDDEN]       # [JOINT, H]  bf16
    tw = wslab_ref[:, OFF_TW:OFF_TW + JOINT]        # [E, JOINT]  bf16

    # ---- 1) featpool: Conv1d(k=1)+ReLU+AvgPool as ONE matmul over slot-stacked lanes
    h = jnp.dot(fpw, x2_ref[...].astype(bf16), preferred_element_type=f32)   # [H, 2N]
    h = jnp.maximum(h + fpb, 0.0)
    pooled = (h[:, :N] + h[:, N:]) * 0.5                                     # [H, N]

    # ---- 2) feat2d: scatter onto the padded flat grid, then register-resident
    #          Hillis-Steele prefix-max over lanes (map2d[i,j] = max(pooled[i..j]))
    scan = jnp.dot(pooled, sel, preferred_element_type=f32)                  # [H, GRID]
    scan = jnp.where(upper, scan, NEG)
    k = 1
    while k < N:                                                             # k = 1,2,4,8
        shifted = _shift_right_lanes(scan, k, NEG)
        # source column must be >= FIRST_PAD (stay inside the row's data segment)
        scan = jnp.maximum(scan, jnp.where(col >= float(k + FIRST_PAD), shifted, NEG))
        k *= 2
    map_pad = jnp.where(upper, scan, 0.0).astype(bf16)    # [H, GRID]: zero pad ring built in

    # ---- 3) proposal conv layer 0 (pad=FIRST_PAD): 9 lane-shifted taps -> one
    #          288-deep bf16 matmul (im2col along sublanes, output lane-dense)
    for t, (dy, dx) in enumerate(_OFFSETS):
        taps_ref[t * HIDDEN:(t + 1) * HIDDEN, :] = _shift_left_lanes(map_pad, dy * P + dx)
    y0 = jnp.dot(w0r, taps_ref[...], preferred_element_type=f32)             # [H, GRID]
    y0 = (jnp.maximum(y0 + b0, 0.0) * s0).astype(bf16)

    # ---- 4) proposal conv layer 1 (valid) — same single 288-deep contraction
    for t, (dy, dx) in enumerate(_OFFSETS):
        taps_ref[t * HIDDEN:(t + 1) * HIDDEN, :] = _shift_left_lanes(y0, dy * P + dx)
    y1 = jnp.dot(w1r, taps_ref[...], preferred_element_type=f32)             # [H, GRID]
    y1 = (jnp.maximum(y1 + b1, 0.0) * s1).astype(bf16)

    # ---- 5) 1x1 contrastive conv to joint space
    vid = jnp.dot(wc, y1, preferred_element_type=f32) + bc                   # [J, GRID]

    # ---- 6) text encoder stand-in: masked mean-pool + Linear
    # TODO(synk): real DistilBERT text encoder is not expressible as a single kernel.
    qm = jnp.sum(q_ref[...] * qscale_ref[...], axis=1)                       # [S, E]
    sent = jnp.dot(qm.astype(bf16), tw, preferred_element_type=f32) + tb     # [S, J]

    # ---- 7) F.normalize via rsqrt (EUP) + lane-dense score + mask2d
    vinv = lax.rsqrt(jnp.maximum(jnp.sum(vid * vid, axis=0, keepdims=True), EPS2))
    sinv = lax.rsqrt(jnp.maximum(jnp.sum(sent * sent, axis=1, keepdims=True), EPS2))
    score = jnp.dot((sent * sinv).astype(bf16), (vid * vinv).astype(bf16),
                    preferred_element_type=f32)                              # [S, GRID]
    out_ref[...] = score * omask


# ================================ wrapper / glue ================================
def d3g_forward_eval(params, feats, queries, wordlens):
    bsz = feats.shape[0]

    # ---- layout plumbing on raw inputs (pool-slot-major lanes; per-word mean scale)
    x2 = feats.reshape(bsz, N, POOL_K, C_IN).transpose(0, 3, 2, 1) \
              .reshape(bsz, C_IN, POOL_K * N)                                 # [B, C, 2N]
    qscale = ((jnp.arange(L)[None, None, :] < wordlens[:, :, None]).astype(jnp.float32)
              / jnp.maximum(wordlens[:, :, None].astype(jnp.float32), 1.0))[..., None]

    # ---- weights pre-cast to bf16 and packed into one 128-aligned slab
    w0r = params["conv0_w"].transpose(0, 2, 3, 1).reshape(HIDDEN, KKH)        # [Co, kkCi]
    w1r = params["conv1_w"].transpose(0, 2, 3, 1).reshape(HIDDEN, KKH)

    def padw(w, width):
        return jnp.pad(w, ((0, 0), (0, width - w.shape[1])))

    wslab = jnp.concatenate([
        padw(params["featpool_w"], OFF_W0 - OFF_FPW),
        padw(w0r, OFF_W1 - OFF_W0),
        padw(w1r, OFF_WC - OFF_W1),
        padw(params["conv1x1_w"], OFF_TW - OFF_WC),
        padw(params["text_w"].T, WSLAB_W - OFF_TW),
    ], axis=1).astype(jnp.bfloat16)                                           # [32, 1152]

    cbias = jnp.zeros((HIDDEN, 128), jnp.float32)
    cbias = cbias.at[:, 0].set(params["featpool_b"])
    cbias = cbias.at[:, 1].set(params["conv0_b"])
    cbias = cbias.at[:, 2].set(params["conv1_b"])
    cbias = cbias.at[:, 3].set(params["conv1x1_b"])

    lslab = jnp.asarray(_LSLAB_STATIC_NP)
    lslab = lslab.at[ROW_TB, :JOINT].set(params["text_b"])                    # [24, 512]

    scores = pl.pallas_call(
        _d3g_fused_kernel,
        out_shape=jax.ShapeDtypeStruct((bsz, S, GRID), jnp.float32),
        grid=(bsz,),
        in_specs=[
            pl.BlockSpec((None, C_IN, POOL_K * N), lambda i: (i, 0, 0)),
            pl.BlockSpec((None, S, L, E), lambda i: (i, 0, 0, 0)),
            pl.BlockSpec((None, S, L, 1), lambda i: (i, 0, 0, 0)),
            pl.BlockSpec((HIDDEN, WSLAB_W), lambda i: (0, 0)),
            pl.BlockSpec((HIDDEN, 128), lambda i: (0, 0)),
            pl.BlockSpec((ROW_SEL + N, GRID), lambda i: (0, 0)),
        ],
        out_specs=pl.BlockSpec((None, S, GRID), lambda i: (i, 0, 0)),
        scratch_shapes=[pltpu.VMEM((KKH, GRID), jnp.bfloat16)],
        compiler_params=pltpu.CompilerParams(
            dimension_semantics=("parallel",),
            vmem_limit_bytes=32 * 1024 * 1024),
    )(x2, queries, qscale, wslab, cbias, lslab)

    # lane-dense [S, GRID] -> [S, N, N]: pure layout (drop padding ring / lane tail)
    return scores[..., :PP].reshape(bsz, S, P, P)[..., :N, :N]


def init_params(key):
    ks = jax.random.split(key, 10)
    scale = 0.05

    def w(k_, shape):
        return (scale * jax.random.normal(k_, shape)).astype(jnp.float32)

    return dict(
        featpool_w=w(ks[0], (HIDDEN, C_IN)),        # Conv1d(C_IN, HIDDEN, 1): [out, in]
        featpool_b=w(ks[1], (HIDDEN,)),
        conv0_w=w(ks[2], (HIDDEN, HIDDEN, K, K)),   # torch Conv2d layout [Co, Ci, k, k]
        conv0_b=w(ks[3], (HIDDEN,)),
        conv1_w=w(ks[4], (HIDDEN, HIDDEN, K, K)),
        conv1_b=w(ks[5], (HIDDEN,)),
        conv1x1_w=w(ks[6], (JOINT, HIDDEN)),        # Conv2d(H, JOINT, 1): [out, in]
        conv1x1_b=w(ks[7], (JOINT,)),
        text_w=w(ks[8], (JOINT, E)),                # Linear [out, in]  (DistilBERT stand-in)
        text_b=w(ks[9], (JOINT,)),
    )


if __name__ == "__main__":
    key = jax.random.PRNGKey(0)
    kp, kf, kq = jax.random.split(key, 3)
    params = init_params(kp)
    feats = jax.random.normal(kf, (B, T_PRE, C_IN), dtype=jnp.float32)
    queries = jax.random.normal(kq, (B, S, L, E), dtype=jnp.float32)
    wordlens = jnp.array([[8, 5, 3, 6],
                          [4, 7, 8, 2]], dtype=jnp.int32)

    out = jax.jit(d3g_forward_eval)(params, feats, queries, wordlens)
    jax.block_until_ready(out)
    assert out.shape == (B, S, N, N)
    print("KERNEL_OK")
</pallas_src>

<mosaic_0001>
module attributes {stable_mosaic.version = 11 : i64} {
  func.func @_d3g_fused_kernel(%arg0: i32, %arg1: memref<1x32x32xf32, #tpu.memory_space<vmem>>, %arg2: memref<1x4x8x32xf32, #tpu.memory_space<vmem>>, %arg3: memref<1x4x8x1xf32, #tpu.memory_space<vmem>>, %arg4: memref<32x1152xbf16, #tpu.memory_space<vmem>>, %arg5: memref<32x128xf32, #tpu.memory_space<vmem>>, %arg6: memref<24x512xf32, #tpu.memory_space<vmem>>, %arg7: memref<1x4x512xf32, #tpu.memory_space<vmem>>, %arg8: memref<288x512xbf16, #tpu.memory_space<vmem>>) attributes {dimension_semantics = [#tpu.dimension_semantics<parallel>], iteration_bounds = array<i64: 2>, scalar_prefetch = 0 : i64, scratch_operands = 1 : i64, tpu.core_type = #tpu.core_type<tc>, window_params = [{transform_indices = @transform_0, window_bounds = array<i64: 1, 32, 32>}, {transform_indices = @transform_1, window_bounds = array<i64: 1, 4, 8, 32>}, {transform_indices = @transform_2, window_bounds = array<i64: 1, 4, 8, 1>}, {pipeline_mode = #tpu.pipeline_mode<synchronous>, transform_indices = @transform_3, window_bounds = array<i64: 32, 1152>}, {pipeline_mode = #tpu.pipeline_mode<synchronous>, transform_indices = @transform_4, window_bounds = array<i64: 32, 128>}, {pipeline_mode = #tpu.pipeline_mode<synchronous>, transform_indices = @transform_5, window_bounds = array<i64: 24, 512>}, {transform_indices = @transform_6, window_bounds = array<i64: 1, 4, 512>}]} {
    %c0 = arith.constant 0 : index
    %c0_0 = arith.constant 0 : index
    %0 = vector.load %arg6[%c0, %c0_0] : memref<24x512xf32, #tpu.memory_space<vmem>>, vector<1x512xf32>
    %c1 = arith.constant 1 : index
    %c0_1 = arith.constant 0 : index
    %1 = vector.load %arg6[%c1, %c0_1] : memref<24x512xf32, #tpu.memory_space<vmem>>, vector<1x512xf32>
    %c2 = arith.constant 2 : index
    %c0_2 = arith.constant 0 : index
    %2 = vector.load %arg6[%c2, %c0_2] : memref<24x512xf32, #tpu.memory_space<vmem>>, vector<1x512xf32>
    %c3 = arith.constant 3 : index
    %c0_3 = arith.constant 0 : index
    %3 = vector.load %arg6[%c3, %c0_3] : memref<24x512xf32, #tpu.memory_space<vmem>>, vector<1x512xf32>
    %cst = arith.constant 5.000000e-01 : f32
    %4 = vector.broadcast %cst : f32 to vector<1x512xf32>
    %5 = arith.cmpf ogt, %3, %4 : vector<1x512xf32>
    %c4 = arith.constant 4 : index
    %c0_4 = arith.constant 0 : index
    %6 = vector.load %arg6[%c4, %c0_4] : memref<24x512xf32, #tpu.memory_space<vmem>>, vector<1x512xf32>
    %c5 = arith.constant 5 : index
    %c0_5 = arith.constant 0 : index
    %7 = vector.load %arg6[%c5, %c0_5] : memref<24x512xf32, #tpu.memory_space<vmem>>, vector<1x32xf32>
    %c8 = arith.constant 8 : index
    %c0_6 = arith.constant 0 : index
    %8 = vector.load %arg6[%c8, %c0_6] : memref<24x512xf32, #tpu.memory_space<vmem>>, vector<16x512xf32>
    %c0_7 = arith.constant 0 : index
    %c0_8 = arith.constant 0 : index
    %9 = vector.load %arg5[%c0_7, %c0_8] : memref<32x128xf32, #tpu.memory_space<vmem>>, vector<32x1xf32>
    %c0_9 = arith.constant 0 : index
    %c1_10 = arith.constant 1 : index
    %10 = vector.load %arg5[%c0_9, %c1_10] : memref<32x128xf32, #tpu.memory_space<vmem>>, vector<32x1xf32>
    %c0_11 = arith.constant 0 : index
    %c2_12 = arith.constant 2 : index
    %11 = vector.load %arg5[%c0_11, %c2_12] : memref<32x128xf32, #tpu.memory_space<vmem>>, vector<32x1xf32>
    %c0_13 = arith.constant 0 : index
    %c3_14 = arith.constant 3 : index
    %12 = vector.load %arg5[%c0_13, %c3_14] : memref<32x128xf32, #tpu.memory_space<vmem>>, vector<32x1xf32>
    %c0_15 = arith.constant 0 : index
    %c0_16 = arith.constant 0 : index
    %13 = vector.load %arg4[%c0_15, %c0_16] : memref<32x1152xbf16, #tpu.memory_space<vmem>>, vector<32x32xbf16>
    %c0_17 = arith.constant 0 : index
    %c128 = arith.constant 128 : index
    %14 = vector.load %arg4[%c0_17, %c128] : memref<32x1152xbf16, #tpu.memory_space<vmem>>, vector<32x288xbf16>
    %c0_18 = arith.constant 0 : index
    %c512 = arith.constant 512 : index
    %15 = vector.load %arg4[%c0_18, %c512] : memref<32x1152xbf16, #tpu.memory_space<vmem>>, vector<32x288xbf16>
    %c0_19 = arith.constant 0 : index
    %c896 = arith.constant 896 : index
    %16 = vector.load %arg4[%c0_19, %c896] : memref<32x1152xbf16, #tpu.memory_space<vmem>>, vector<32x32xbf16>
    %c0_20 = arith.constant 0 : index
    %c1024 = arith.constant 1024 : index
    %17 = vector.load %arg4[%c0_20, %c1024] : memref<32x1152xbf16, #tpu.memory_space<vmem>>, vector<32x32xbf16>
    %c0_21 = arith.constant 0 : index
    %c0_22 = arith.constant 0 : index
    %c0_23 = arith.constant 0 : index
    %18 = vector.load %arg1[%c0_21, %c0_22, %c0_23] : memref<1x32x32xf32, #tpu.memory_space<vmem>>, vector<1x32x32xf32>
    %19 = vector.shape_cast %18 : vector<1x32x32xf32> to vector<32x32xf32>
    %20 = arith.truncf %19 : vector<32x32xf32> to vector<32x32xbf16>
    %cst_24 = arith.constant dense<0.000000e+00> : vector<32x32xf32>
    %21 = tpu.matmul %13, %20, %cst_24 {dimension_numbers = #tpu.dot_dimension_numbers<[1], [0], [0], [1], [0, 0, 1, 1], [], []>} : vector<32x32xbf16>, vector<32x32xbf16>, vector<32x32xf32> -> vector<32x32xf32>
    %22 = vector.broadcast %9 : vector<32x1xf32> to vector<32x32xf32>
    %23 = arith.addf %21, %22 : vector<32x32xf32>
    %cst_25 = arith.constant 0.000000e+00 : f32
    %24 = vector.broadcast %cst_25 : f32 to vector<32x32xf32>
    %25 = arith.maximumf %23, %24 : vector<32x32xf32>
    %26 = vector.extract_strided_slice %25 {offsets = [0, 0], sizes = [32, 16], strides = [1, 1]} : vector<32x32xf32> to vector<32x16xf32>
    %27 = vector.extract_strided_slice %25 {offsets = [0, 16], sizes = [32, 16], strides = [1, 1]} : vector<32x32xf32> to vector<32x16xf32>
    %28 = arith.addf %26, %27 : vector<32x16xf32>
    %cst_26 = arith.constant 5.000000e-01 : f32
    %29 = vector.broadcast %cst_26 : f32 to vector<32x16xf32>
    %30 = arith.mulf %28, %29 : vector<32x16xf32>
    %cst_27 = arith.constant dense<0.000000e+00> : vector<32x512xf32>
    %31 = tpu.matmul %30, %8, %cst_27 {dimension_numbers = #tpu.dot_dimension_numbers<[1], [0], [0], [1], [0, 0, 1, 1], [], []>} : vector<32x16xf32>, vector<16x512xf32>, vector<32x512xf32> -> vector<32x512xf32>
    %cst_28 = arith.constant -1.000000e+30 : f32
    %32 = vector.shape_cast %5 : vector<1x512xi1> to vector<1x512xi1>
    %33 = vector.broadcast %32 : vector<1x512xi1> to vector<32x512xi1>
    %34 = vector.broadcast %cst_28 : f32 to vector<32x512xf32>
    %35 = arith.select %33, %31, %34 : vector<32x512xi1>, vector<32x512xf32>
    %cst_29 = arith.constant -1.000000e+30 : f32
    %36 = vector.broadcast %cst_29 : f32 to vector<32x1xf32>
    %37 = vector.extract_strided_slice %35 {offsets = [0, 0], sizes = [32, 511], strides = [1, 1]} : vector<32x512xf32> to vector<32x511xf32>
    %38 = tpu.concatenate %36, %37 in 1 : vector<32x1xf32>, vector<32x511xf32> -> vector<32x512xf32>
    %cst_30 = arith.constant 3.000000e+00 : f32
    %39 = vector.broadcast %cst_30 : f32 to vector<1x512xf32>
    %40 = arith.cmpf oge, %6, %39 : vector<1x512xf32>
    %cst_31 = arith.constant -1.000000e+30 : f32
    %41 = vector.shape_cast %40 : vector<1x512xi1> to vector<1x512xi1>
    %42 = vector.broadcast %41 : vector<1x512xi1> to vector<32x512xi1>
    %43 = vector.broadcast %cst_31 : f32 to vector<32x512xf32>
    %44 = arith.select %42, %38, %43 : vector<32x512xi1>, vector<32x512xf32>
    %45 = arith.maximumf %35, %44 : vector<32x512xf32>
    %cst_32 = arith.constant -1.000000e+30 : f32
    %46 = vector.broadcast %cst_32 : f32 to vector<32x2xf32>
    %47 = vector.extract_strided_slice %45 {offsets = [0, 0], sizes = [32, 510], strides = [1, 1]} : vector<32x512xf32> to vector<32x510xf32>
    %48 = tpu.concatenate %46, %47 in 1 : vector<32x2xf32>, vector<32x510xf32> -> vector<32x512xf32>
    %cst_33 = arith.constant 4.000000e+00 : f32
    %49 = vector.broadcast %cst_33 : f32 to vector<1x512xf32>
    %50 = arith.cmpf oge, %6, %49 : vector<1x512xf32>
    %cst_34 = arith.constant -1.000000e+30 : f32
    %51 = vector.shape_cast %50 : vector<1x512xi1> to vector<1x512xi1>
    %52 = vector.broadcast %51 : vector<1x512xi1> to vector<32x512xi1>
    %53 = vector.broadcast %cst_34 : f32 to vector<32x512xf32>
    %54 = arith.select %52, %48, %53 : vector<32x512xi1>, vector<32x512xf32>
    %55 = arith.maximumf %45, %54 : vector<32x512xf32>
    %cst_35 = arith.constant -1.000000e+30 : f32
    %56 = vector.broadcast %cst_35 : f32 to vector<32x4xf32>
    %57 = vector.extract_strided_slice %55 {offsets = [0, 0], sizes = [32, 508], strides = [1, 1]} : vector<32x512xf32> to vector<32x508xf32>
    %58 = tpu.concatenate %56, %57 in 1 : vector<32x4xf32>, vector<32x508xf32> -> vector<32x512xf32>
    %cst_36 = arith.constant 6.000000e+00 : f32
    %59 = vector.broadcast %cst_36 : f32 to vector<1x512xf32>
    %60 = arith.cmpf oge, %6, %59 : vector<1x512xf32>
    %cst_37 = arith.constant -1.000000e+30 : f32
    %61 = vector.shape_cast %60 : vector<1x512xi1> to vector<1x512xi1>
    %62 = vector.broadcast %61 : vector<1x512xi1> to vector<32x512xi1>
    %63 = vector.broadcast %cst_37 : f32 to vector<32x512xf32>
    %64 = arith.select %62, %58, %63 : vector<32x512xi1>, vector<32x512xf32>
    %65 = arith.maximumf %55, %64 : vector<32x512xf32>
    %cst_38 = arith.constant -1.000000e+30 : f32
    %66 = vector.broadcast %cst_38 : f32 to vector<32x8xf32>
    %67 = vector.extract_strided_slice %65 {offsets = [0, 0], sizes = [32, 504], strides = [1, 1]} : vector<32x512xf32> to vector<32x504xf32>
    %68 = tpu.concatenate %66, %67 in 1 : vector<32x8xf32>, vector<32x504xf32> -> vector<32x512xf32>
    %cst_39 = arith.constant 1.000000e+01 : f32
    %69 = vector.broadcast %cst_39 : f32 to vector<1x512xf32>
    %70 = arith.cmpf oge, %6, %69 : vector<1x512xf32>
    %cst_40 = arith.constant -1.000000e+30 : f32
    %71 = vector.shape_cast %70 : vector<1x512xi1> to vector<1x512xi1>
    %72 = vector.broadcast %71 : vector<1x512xi1> to vector<32x512xi1>
    %73 = vector.broadcast %cst_40 : f32 to vector<32x512xf32>
    %74 = arith.select %72, %68, %73 : vector<32x512xi1>, vector<32x512xf32>
    %75 = arith.maximumf %65, %74 : vector<32x512xf32>
    %cst_41 = arith.constant 0.000000e+00 : f32
    %76 = vector.shape_cast %5 : vector<1x512xi1> to vector<1x512xi1>
    %77 = vector.broadcast %76 : vector<1x512xi1> to vector<32x512xi1>
    %78 = vector.broadcast %cst_41 : f32 to vector<32x512xf32>
    %79 = arith.select %77, %75, %78 : vector<32x512xi1>, vector<32x512xf32>
    %80 = arith.truncf %79 : vector<32x512xf32> to vector<32x512xbf16>
    %c0_42 = arith.constant 0 : index
    %c0_43 = arith.constant 0 : index
    %81 = vector.load %arg8[%c0_42, %c0_43] : memref<288x512xbf16, #tpu.memory_space<vmem>>, vector<32x512xbf16>
    tpu.vector_store %arg8[%c0_42, %c0_43], %80 {strides = array<i32>} : memref<288x512xbf16, #tpu.memory_space<vmem>>, vector<32x512xbf16>,
    %cst_44 = arith.constant 0.000000e+00 : bf16
    %82 = vector.broadcast %cst_44 : bf16 to vector<32x1xbf16>
    %83 = vector.extract_strided_slice %80 {offsets = [0, 1], sizes = [32, 511], strides = [1, 1]} : vector<32x512xbf16> to vector<32x511xbf16>
    %84 = tpu.concatenate %83, %82 in 1 : vector<32x511xbf16>, vector<32x1xbf16> -> vector<32x512xbf16>
    %c32 = arith.constant 32 : index
    %c0_45 = arith.constant 0 : index
    %85 = vector.load %arg8[%c32, %c0_45] : memref<288x512xbf16, #tpu.memory_space<vmem>>, vector<32x512xbf16>
    tpu.vector_store %arg8[%c32, %c0_45], %84 {strides = array<i32>} : memref<288x512xbf16, #tpu.memory_space<vmem>>, vector<32x512xbf16>,
    %cst_46 = arith.constant 0.000000e+00 : bf16
    %86 = vector.broadcast %cst_46 : bf16 to vector<32x2xbf16>
    %87 = vector.extract_strided_slice %80 {offsets = [0, 2], sizes = [32, 510], strides = [1, 1]} : vector<32x512xbf16> to vector<32x510xbf16>
    %88 = tpu.concatenate %87, %86 in 1 : vector<32x510xbf16>, vector<32x2xbf16> -> vector<32x512xbf16>
    %c64 = arith.constant 64 : index
    %c0_47 = arith.constant 0 : index
    %89 = vector.load %arg8[%c64, %c0_47] : memref<288x512xbf16, #tpu.memory_space<vmem>>, vector<32x512xbf16>
    tpu.vector_store %arg8[%c64, %c0_47], %88 {strides = array<i32>} : memref<288x512xbf16, #tpu.memory_space<vmem>>, vector<32x512xbf16>,
    %cst_48 = arith.constant 0.000000e+00 : bf16
    %90 = vector.broadcast %cst_48 : bf16 to vector<32x20xbf16>
    %91 = vector.extract_strided_slice %80 {offsets = [0, 20], sizes = [32, 492], strides = [1, 1]} : vector<32x512xbf16> to vector<32x492xbf16>
    %92 = tpu.concatenate %91, %90 in 1 : vector<32x492xbf16>, vector<32x20xbf16> -> vector<32x512xbf16>
    %c96 = arith.constant 96 : index
    %c0_49 = arith.constant 0 : index
    %93 = vector.load %arg8[%c96, %c0_49] : memref<288x512xbf16, #tpu.memory_space<vmem>>, vector<32x512xbf16>
    tpu.vector_store %arg8[%c96, %c0_49], %92 {strides = array<i32>} : memref<288x512xbf16, #tpu.memory_space<vmem>>, vector<32x512xbf16>,
    %cst_50 = arith.constant 0.000000e+00 : bf16
    %94 = vector.broadcast %cst_50 : bf16 to vector<32x21xbf16>
    %95 = vector.extract_strided_slice %80 {offsets = [0, 21], sizes = [32, 491], strides = [1, 1]} : vector<32x512xbf16> to vector<32x491xbf16>
    %96 = tpu.concatenate %95, %94 in 1 : vector<32x491xbf16>, vector<32x21xbf16> -> vector<32x512xbf16>
    %c128_51 = arith.constant 128 : index
    %c0_52 = arith.constant 0 : index
    %97 = vector.load %arg8[%c128_51, %c0_52] : memref<288x512xbf16, #tpu.memory_space<vmem>>, vector<32x512xbf16>
    tpu.vector_store %arg8[%c128_51, %c0_52], %96 {strides = array<i32>} : memref<288x512xbf16, #tpu.memory_space<vmem>>, vector<32x512xbf16>,
    %cst_53 = arith.constant 0.000000e+00 : bf16
    %98 = vector.broadcast %cst_53 : bf16 to vector<32x22xbf16>
    %99 = vector.extract_strided_slice %80 {offsets = [0, 22], sizes = [32, 490], strides = [1, 1]} : vector<32x512xbf16> to vector<32x490xbf16>
    %100 = tpu.concatenate %99, %98 in 1 : vector<32x490xbf16>, vector<32x22xbf16> -> vector<32x512xbf16>
    %c160 = arith.constant 160 : index
    %c0_54 = arith.constant 0 : index
    %101 = vector.load %arg8[%c160, %c0_54] : memref<288x512xbf16, #tpu.memory_space<vmem>>, vector<32x512xbf16>
    tpu.vector_store %arg8[%c160, %c0_54], %100 {strides = array<i32>} : memref<288x512xbf16, #tpu.memory_space<vmem>>, vector<32x512xbf16>,
    %cst_55 = arith.constant 0.000000e+00 : bf16
    %102 = vector.broadcast %cst_55 : bf16 to vector<32x40xbf16>
    %103 = vector.extract_strided_slice %80 {offsets = [0, 40], sizes = [32, 472], strides = [1, 1]} : vector<32x512xbf16> to vector<32x472xbf16>
    %104 = tpu.concatenate %103, %102 in 1 : vector<32x472xbf16>, vector<32x40xbf16> -> vector<32x512xbf16>
    %c192 = arith.constant 192 : index
    %c0_56 = arith.constant 0 : index
    %105 = vector.load %arg8[%c192, %c0_56] : memref<288x512xbf16, #tpu.memory_space<vmem>>, vector<32x512xbf16>
    tpu.vector_store %arg8[%c192, %c0_56], %104 {strides = array<i32>} : memref<288x512xbf16, #tpu.memory_space<vmem>>, vector<32x512xbf16>,
    %cst_57 = arith.constant 0.000000e+00 : bf16
    %106 = vector.broadcast %cst_57 : bf16 to vector<32x41xbf16>
    %107 = vector.extract_strided_slice %80 {offsets = [0, 41], sizes = [32, 471], strides = [1, 1]} : vector<32x512xbf16> to vector<32x471xbf16>
    %108 = tpu.concatenate %107, %106 in 1 : vector<32x471xbf16>, vector<32x41xbf16> -> vector<32x512xbf16>
    %c224 = arith.constant 224 : index
    %c0_58 = arith.constant 0 : index
    %109 = vector.load %arg8[%c224, %c0_58] : memref<288x512xbf16, #tpu.memory_space<vmem>>, vector<32x512xbf16>
    tpu.vector_store %arg8[%c224, %c0_58], %108 {strides = array<i32>} : memref<288x512xbf16, #tpu.memory_space<vmem>>, vector<32x512xbf16>,
    %cst_59 = arith.constant 0.000000e+00 : bf16
    %110 = vector.broadcast %cst_59 : bf16 to vector<32x42xbf16>
    %111 = vector.extract_strided_slice %80 {offsets = [0, 42], sizes = [32, 470], strides = [1, 1]} : vector<32x512xbf16> to vector<32x470xbf16>
    %112 = tpu.concatenate %111, %110 in 1 : vector<32x470xbf16>, vector<32x42xbf16> -> vector<32x512xbf16>
    %c256 = arith.constant 256 : index
    %c0_60 = arith.constant 0 : index
    %113 = vector.load %arg8[%c256, %c0_60] : memref<288x512xbf16, #tpu.memory_space<vmem>>, vector<32x512xbf16>
    tpu.vector_store %arg8[%c256, %c0_60], %112 {strides = array<i32>} : memref<288x512xbf16, #tpu.memory_space<vmem>>, vector<32x512xbf16>,
    %c0_61 = arith.constant 0 : index
    %c0_62 = arith.constant 0 : index
    %114 = vector.load %arg8[%c0_61, %c0_62] : memref<288x512xbf16, #tpu.memory_space<vmem>>, vector<288x512xbf16>
    %cst_63 = arith.constant dense<0.000000e+00> : vector<32x512xf32>
    %115 = tpu.matmul %14, %114, %cst_63 {dimension_numbers = #tpu.dot_dimension_numbers<[1], [0], [0], [1], [0, 0, 1, 1], [], []>} : vector<32x288xbf16>, vector<288x512xbf16>, vector<32x512xf32> -> vector<32x512xf32>
    %116 = vector.broadcast %10 : vector<32x1xf32> to vector<32x512xf32>
    %117 = arith.addf %115, %116 : vector<32x512xf32>
    %cst_64 = arith.constant 0.000000e+00 : f32
    %118 = vector.broadcast %cst_64 : f32 to vector<32x512xf32>
    %119 = arith.maximumf %117, %118 : vector<32x512xf32>
    %120 = vector.broadcast %0 : vector<1x512xf32> to vector<32x512xf32>
    %121 = arith.mulf %119, %120 : vector<32x512xf32>
    %122 = arith.truncf %121 : vector<32x512xf32> to vector<32x512xbf16>
    %c0_65 = arith.constant 0 : index
    %c0_66 = arith.constant 0 : index
    %123 = vector.load %arg8[%c0_65, %c0_66] : memref<288x512xbf16, #tpu.memory_space<vmem>>, vector<32x512xbf16>
    tpu.vector_store %arg8[%c0_65, %c0_66], %122 {strides = array<i32>} : memref<288x512xbf16, #tpu.memory_space<vmem>>, vector<32x512xbf16>,
    %cst_67 = arith.constant 0.000000e+00 : bf16
    %124 = vector.broadcast %cst_67 : bf16 to vector<32x1xbf16>
    %125 = vector.extract_strided_slice %122 {offsets = [0, 1], sizes = [32, 511], strides = [1, 1]} : vector<32x512xbf16> to vector<32x511xbf16>
    %126 = tpu.concatenate %125, %124 in 1 : vector<32x511xbf16>, vector<32x1xbf16> -> vector<32x512xbf16>
    %c32_68 = arith.constant 32 : index
    %c0_69 = arith.constant 0 : index
    %127 = vector.load %arg8[%c32_68, %c0_69] : memref<288x512xbf16, #tpu.memory_space<vmem>>, vector<32x512xbf16>
    tpu.vector_store %arg8[%c32_68, %c0_69], %126 {strides = array<i32>} : memref<288x512xbf16, #tpu.memory_space<vmem>>, vector<32x512xbf16>,
    %cst_70 = arith.constant 0.000000e+00 : bf16
    %128 = vector.broadcast %cst_70 : bf16 to vector<32x2xbf16>
    %129 = vector.extract_strided_slice %122 {offsets = [0, 2], sizes = [32, 510], strides = [1, 1]} : vector<32x512xbf16> to vector<32x510xbf16>
    %130 = tpu.concatenate %129, %128 in 1 : vector<32x510xbf16>, vector<32x2xbf16> -> vector<32x512xbf16>
    %c64_71 = arith.constant 64 : index
    %c0_72 = arith.constant 0 : index
    %131 = vector.load %arg8[%c64_71, %c0_72] : memref<288x512xbf16, #tpu.memory_space<vmem>>, vector<32x512xbf16>
    tpu.vector_store %arg8[%c64_71, %c0_72], %130 {strides = array<i32>} : memref<288x512xbf16, #tpu.memory_space<vmem>>, vector<32x512xbf16>,
    %cst_73 = arith.constant 0.000000e+00 : bf16
    %132 = vector.broadcast %cst_73 : bf16 to vector<32x20xbf16>
    %133 = vector.extract_strided_slice %122 {offsets = [0, 20], sizes = [32, 492], strides = [1, 1]} : vector<32x512xbf16> to vector<32x492xbf16>
    %134 = tpu.concatenate %133, %132 in 1 : vector<32x492xbf16>, vector<32x20xbf16> -> vector<32x512xbf16>
    %c96_74 = arith.constant 96 : index
    %c0_75 = arith.constant 0 : index
    %135 = vector.load %arg8[%c96_74, %c0_75] : memref<288x512xbf16, #tpu.memory_space<vmem>>, vector<32x512xbf16>
    tpu.vector_store %arg8[%c96_74, %c0_75], %134 {strides = array<i32>} : memref<288x512xbf16, #tpu.memory_space<vmem>>, vector<32x512xbf16>,
    %cst_76 = arith.constant 0.000000e+00 : bf16
    %136 = vector.broadcast %cst_76 : bf16 to vector<32x21xbf16>
    %137 = vector.extract_strided_slice %122 {offsets = [0, 21], sizes = [32, 491], strides = [1, 1]} : vector<32x512xbf16> to vector<32x491xbf16>
    %138 = tpu.concatenate %137, %136 in 1 : vector<32x491xbf16>, vector<32x21xbf16> -> vector<32x512xbf16>
    %c128_77 = arith.constant 128 : index
    %c0_78 = arith.constant 0 : index
    %139 = vector.load %arg8[%c128_77, %c0_78] : memref<288x512xbf16, #tpu.memory_space<vmem>>, vector<32x512xbf16>
    tpu.vector_store %arg8[%c128_77, %c0_78], %138 {strides = array<i32>} : memref<288x512xbf16, #tpu.memory_space<vmem>>, vector<32x512xbf16>,
    %cst_79 = arith.constant 0.000000e+00 : bf16
    %140 = vector.broadcast %cst_79 : bf16 to vector<32x22xbf16>
    %141 = vector.extract_strided_slice %122 {offsets = [0, 22], sizes = [32, 490], strides = [1, 1]} : vector<32x512xbf16> to vector<32x490xbf16>
    %142 = tpu.concatenate %141, %140 in 1 : vector<32x490xbf16>, vector<32x22xbf16> -> vector<32x512xbf16>
    %c160_80 = arith.constant 160 : index
    %c0_81 = arith.constant 0 : index
    %143 = vector.load %arg8[%c160_80, %c0_81] : memref<288x512xbf16, #tpu.memory_space<vmem>>, vector<32x512xbf16>
    tpu.vector_store %arg8[%c160_80, %c0_81], %142 {strides = array<i32>} : memref<288x512xbf16, #tpu.memory_space<vmem>>, vector<32x512xbf16>,
    %cst_82 = arith.constant 0.000000e+00 : bf16
    %144 = vector.broadcast %cst_82 : bf16 to vector<32x40xbf16>
    %145 = vector.extract_strided_slice %122 {offsets = [0, 40], sizes = [32, 472], strides = [1, 1]} : vector<32x512xbf16> to vector<32x472xbf16>
    %146 = tpu.concatenate %145, %144 in 1 : vector<32x472xbf16>, vector<32x40xbf16> -> vector<32x512xbf16>
    %c192_83 = arith.constant 192 : index
    %c0_84 = arith.constant 0 : index
    %147 = vector.load %arg8[%c192_83, %c0_84] : memref<288x512xbf16, #tpu.memory_space<vmem>>, vector<32x512xbf16>
    tpu.vector_store %arg8[%c192_83, %c0_84], %146 {strides = array<i32>} : memref<288x512xbf16, #tpu.memory_space<vmem>>, vector<32x512xbf16>,
    %cst_85 = arith.constant 0.000000e+00 : bf16
    %148 = vector.broadcast %cst_85 : bf16 to vector<32x41xbf16>
    %149 = vector.extract_strided_slice %122 {offsets = [0, 41], sizes = [32, 471], strides = [1, 1]} : vector<32x512xbf16> to vector<32x471xbf16>
    %150 = tpu.concatenate %149, %148 in 1 : vector<32x471xbf16>, vector<32x41xbf16> -> vector<32x512xbf16>
    %c224_86 = arith.constant 224 : index
    %c0_87 = arith.constant 0 : index
    %151 = vector.load %arg8[%c224_86, %c0_87] : memref<288x512xbf16, #tpu.memory_space<vmem>>, vector<32x512xbf16>
    tpu.vector_store %arg8[%c224_86, %c0_87], %150 {strides = array<i32>} : memref<288x512xbf16, #tpu.memory_space<vmem>>, vector<32x512xbf16>,
    %cst_88 = arith.constant 0.000000e+00 : bf16
    %152 = vector.broadcast %cst_88 : bf16 to vector<32x42xbf16>
    %153 = vector.extract_strided_slice %122 {offsets = [0, 42], sizes = [32, 470], strides = [1, 1]} : vector<32x512xbf16> to vector<32x470xbf16>
    %154 = tpu.concatenate %153, %152 in 1 : vector<32x470xbf16>, vector<32x42xbf16> -> vector<32x512xbf16>
    %c256_89 = arith.constant 256 : index
    %c0_90 = arith.constant 0 : index
    %155 = vector.load %arg8[%c256_89, %c0_90] : memref<288x512xbf16, #tpu.memory_space<vmem>>, vector<32x512xbf16>
    tpu.vector_store %arg8[%c256_89, %c0_90], %154 {strides = array<i32>} : memref<288x512xbf16, #tpu.memory_space<vmem>>, vector<32x512xbf16>,
    %c0_91 = arith.constant 0 : index
    %c0_92 = arith.constant 0 : index
    %156 = vector.load %arg8[%c0_91, %c0_92] : memref<288x512xbf16, #tpu.memory_space<vmem>>, vector<288x512xbf16>
    %cst_93 = arith.constant dense<0.000000e+00> : vector<32x512xf32>
    %157 = tpu.matmul %15, %156, %cst_93 {dimension_numbers = #tpu.dot_dimension_numbers<[1], [0], [0], [1], [0, 0, 1, 1], [], []>} : vector<32x288xbf16>, vector<288x512xbf16>, vector<32x512xf32> -> vector<32x512xf32>
    %158 = vector.broadcast %11 : vector<32x1xf32> to vector<32x512xf32>
    %159 = arith.addf %157, %158 : vector<32x512xf32>
    %cst_94 = arith.constant 0.000000e+00 : f32
    %160 = vector.broadcast %cst_94 : f32 to vector<32x512xf32>
    %161 = arith.maximumf %159, %160 : vector<32x512xf32>
    %162 = vector.broadcast %1 : vector<1x512xf32> to vector<32x512xf32>
    %163 = arith.mulf %161, %162 : vector<32x512xf32>
    %164 = arith.truncf %163 : vector<32x512xf32> to vector<32x512xbf16>
    %cst_95 = arith.constant dense<0.000000e+00> : vector<32x512xf32>
    %165 = tpu.matmul %16, %164, %cst_95 {dimension_numbers = #tpu.dot_dimension_numbers<[1], [0], [0], [1], [0, 0, 1, 1], [], []>} : vector<32x32xbf16>, vector<32x512xbf16>, vector<32x512xf32> -> vector<32x512xf32>
    %166 = vector.broadcast %12 : vector<32x1xf32> to vector<32x512xf32>
    %167 = arith.addf %165, %166 : vector<32x512xf32>
    %c0_96 = arith.constant 0 : index
    %c0_97 = arith.constant 0 : index
    %c0_98 = arith.constant 0 : index
    %c0_99 = arith.constant 0 : index
    %168 = vector.load %arg2[%c0_96, %c0_97, %c0_98, %c0_99] : memref<1x4x8x32xf32, #tpu.memory_space<vmem>>, vector<1x4x8x32xf32>
    %169 = vector.shape_cast %168 : vector<1x4x8x32xf32> to vector<4x8x32xf32>
    %c0_100 = arith.constant 0 : index
    %c0_101 = arith.constant 0 : index
    %c0_102 = arith.constant 0 : index
    %c0_103 = arith.constant 0 : index
    %170 = vector.load %arg3[%c0_100, %c0_101, %c0_102, %c0_103] : memref<1x4x8x1xf32, #tpu.memory_space<vmem>>, vector<1x4x8x1xf32>
    %171 = vector.shape_cast %170 : vector<1x4x8x1xf32> to vector<4x8x1xf32>
    %172 = vector.broadcast %171 : vector<4x8x1xf32> to vector<4x8x32xf32>
    %173 = arith.mulf %169, %172 : vector<4x8x32xf32>
    %cst_104 = arith.constant dense<0.000000e+00> : vector<4x32xf32>
    %174 = vector.multi_reduction <add>, %173, %cst_104 [1] : vector<4x8x32xf32> to vector<4x32xf32>
    %175 = arith.truncf %174 : vector<4x32xf32> to vector<4x32xbf16>
    %cst_105 = arith.constant dense<0.000000e+00> : vector<4x32xf32>
    %176 = tpu.matmul %175, %17, %cst_105 {dimension_numbers = #tpu.dot_dimension_numbers<[1], [0], [0], [1], [0, 0, 1, 1], [], []>} : vector<4x32xbf16>, vector<32x32xbf16>, vector<4x32xf32> -> vector<4x32xf32>
    %177 = vector.broadcast %7 : vector<1x32xf32> to vector<4x32xf32>
    %178 = arith.addf %176, %177 : vector<4x32xf32>
    %179 = arith.mulf %167, %167 : vector<32x512xf32>
    %cst_106 = arith.constant dense<0.000000e+00> : vector<512xf32>
    %180 = vector.multi_reduction <add>, %179, %cst_106 [0] : vector<32x512xf32> to vector<512xf32>
    %181 = vector.shape_cast %180 : vector<512xf32> to vector<1x512xf32>
    %cst_107 = arith.constant 1.000000e-24 : f32
    %182 = vector.broadcast %cst_107 : f32 to vector<1x512xf32>
    %183 = arith.maximumf %181, %182 : vector<1x512xf32>
    %184 = math.rsqrt %183 : vector<1x512xf32>
    %185 = arith.mulf %178, %178 : vector<4x32xf32>
    %cst_108 = arith.constant dense<0.000000e+00> : vector<4xf32>
    %186 = vector.multi_reduction <add>, %185, %cst_108 [1] : vector<4x32xf32> to vector<4xf32>
    %187 = vector.shape_cast %186 : vector<4xf32> to vector<4x1xf32>
    %cst_109 = arith.constant 1.000000e-24 : f32
    %188 = vector.broadcast %cst_109 : f32 to vector<4x1xf32>
    %189 = arith.maximumf %187, %188 : vector<4x1xf32>
    %190 = math.rsqrt %189 : vector<4x1xf32>
    %191 = vector.broadcast %190 : vector<4x1xf32> to vector<4x32xf32>
    %192 = arith.mulf %178, %191 : vector<4x32xf32>
    %193 = arith.truncf %192 : vector<4x32xf32> to vector<4x32xbf16>
    %194 = vector.broadcast %184 : vector<1x512xf32> to vector<32x512xf32>
    %195 = arith.mulf %167, %194 : vector<32x512xf32>
    %196 = arith.truncf %195 : vector<32x512xf32> to vector<32x512xbf16>
    %cst_110 = arith.constant dense<0.000000e+00> : vector<4x512xf32>
    %197 = tpu.matmul %193, %196, %cst_110 {dimension_numbers = #tpu.dot_dimension_numbers<[1], [0], [0], [1], [0, 0, 1, 1], [], []>} : vector<4x32xbf16>, vector<32x512xbf16>, vector<4x512xf32> -> vector<4x512xf32>
    %198 = vector.broadcast %2 : vector<1x512xf32> to vector<4x512xf32>
    %199 = arith.mulf %197, %198 : vector<4x512xf32>
    %c0_111 = arith.constant 0 : index
    %c0_112 = arith.constant 0 : index
    %c0_113 = arith.constant 0 : index
    %200 = vector.load %arg7[%c0_111, %c0_112, %c0_113] : memref<1x4x512xf32, #tpu.memory_space<vmem>>, vector<1x4x512xf32>
    %201 = vector.shape_cast %200 : vector<1x4x512xf32> to vector<4x512xf32>
    %202 = vector.shape_cast %199 : vector<4x512xf32> to vector<1x4x512xf32>
    tpu.vector_store %arg7[%c0_111, %c0_112, %c0_113], %202 {strides = array<i32>} : memref<1x4x512xf32, #tpu.memory_space<vmem>>, vector<1x4x512xf32>,
    return
  }
  func.func @transform_0(%arg0: i32) -> (i32, i32, i32) {
    %c0_i32 = arith.constant 0 : i32
    %c0_i32_0 = arith.constant 0 : i32
    %c0_i32_1 = arith.constant 0 : i32
    return %arg0, %c0_i32, %c0_i32_0 : i32, i32, i32
  }
  func.func @transform_1(%arg0: i32) -> (i32, i32, i32, i32) {
    %c0_i32 = arith.constant 0 : i32
    %c0_i32_0 = arith.constant 0 : i32
    %c0_i32_1 = arith.constant 0 : i32
    %c0_i32_2 = arith.constant 0 : i32
    return %arg0, %c0_i32, %c0_i32_0, %c0_i32_1 : i32, i32, i32, i32
  }
  func.func @transform_2(%arg0: i32) -> (i32, i32, i32, i32) {
    %c0_i32 = arith.constant 0 : i32
    %c0_i32_0 = arith.constant 0 : i32
    %c0_i32_1 = arith.constant 0 : i32
    %c0_i32_2 = arith.constant 0 : i32
    return %arg0, %c0_i32, %c0_i32_0, %c0_i32_1 : i32, i32, i32, i32
  }
  func.func @transform_3(%arg0: i32) -> (i32, i32) {
    %c0_i32 = arith.constant 0 : i32
    %c0_i32_0 = arith.constant 0 : i32
    %c0_i32_1 = arith.constant 0 : i32
    return %c0_i32, %c0_i32_0 : i32, i32
  }
  func.func @transform_4(%arg0: i32) -> (i32, i32) {
    %c0_i32 = arith.constant 0 : i32
    %c0_i32_0 = arith.constant 0 : i32
    %c0_i32_1 = arith.constant 0 : i32
    return %c0_i32, %c0_i32_0 : i32, i32
  }
  func.func @transform_5(%arg0: i32) -> (i32, i32) {
    %c0_i32 = arith.constant 0 : i32
    %c0_i32_0 = arith.constant 0 : i32
    %c0_i32_1 = arith.constant 0 : i32
    return %c0_i32, %c0_i32_0 : i32, i32
  }
  func.func @transform_6(%arg0: i32) -> (i32, i32, i32) {
    %c0_i32 = arith.constant 0 : i32
    %c0_i32_0 = arith.constant 0 : i32
    %c0_i32_1 = arith.constant 0 : i32
    return %arg0, %c0_i32, %c0_i32_0 : i32, i32, i32
  }
}

</mosaic_0001>

<bundles_post_ra>
// kernel: d3g_forward_eval.1
= control target key start
LH: loop header
LB: loop body
LE: loop exit
PB: predicated region body
PF: predicated region fallthrough
CT: control target
= control target key end

     0   :  { %s3852_s21 = smov 0   ;;  %s5423_s0 = inlined_call_operand.vmem [shape: f32[2,32,32], index: 0, kind: input, shape index: {}]   ;;  %s5424_s1 = inlined_call_operand.vmem [shape: f32[2,4,8,32], index: 1, kind: input, shape index: {}]   ;;  %s5425_s2 = inlined_call_operand.vmem [shape: f32[2,4,8,1], index: 2, kind: input, shape index: {}]   ;;  %s5426_s3 = inlined_call_operand.vmem [shape: bf16[32,1152], index: 3, kind: input, shape index: {}]   ;;  %s5427_s4 = inlined_call_operand.vmem [shape: f32[32,128], index: 4, kind: input, shape index: {}]   ;;  %s5428_s5 = inlined_call_operand.vmem [shape: f32[24,512], index: 5, kind: input, shape index: {}]   ;;  %s5429_s6 = inlined_call_operand.vmem [shape: f32[2,4,512], index: 6, kind: output, shape index: {}]  }
   0x1 LB: > { %s3335_s22 = sadd.s32 4294967295, %s3796_s21   ;;  %p3339_p0 = scmp.ge.s32.totalorder %s3796_s21, 1  ;;  %s3796_s21 = sphi %s3852_s21, %s16_s21  }
   0x2   : > { %p232_p1 = scmp.lt.s32.totalorder %s3796_s21, 3 }
   0x4   : > { %p233_p2 = pnand %p3339_p0, %p232_p1 }
   0x5   : > { %p272_p3 = scmp.lt.s32.totalorder (!%p233_p2), %s3335_s22, 1  ;;  %vm380_vm0 = vcmask (!%p233_p2), 261120   ;;  %v3750_v0 = vld [vmem:[%s5426_s3] ss:$36 sps:$4 sm:$0xff] (!%p233_p2)   ;;  %v314_v2 = vld [vmem:[%s5427_s4 + $0x10] sm:$0xff] (!%p233_p2)  ;;  %v3798_v3 = vmov (!%p233_p2), 0   ;;  %v656_v54 = vlaneseq (!%p233_p2) }
   0x6   : > { %236 = sbr.rel (%p233_p2) target bundleno = 2608 (0xa30), region = 44  ;;  %v312_v1 = vld [vmem:[%s5427_s4] sm:$0xff] (!%p233_p2)  ;;  %3468 = vmatprep.mubr.msk.bf16.mxu0 (!%p233_p2), %vm380_vm0, %v3750_v0  ;;  %3579 = vset.pattern.permute.xlu0 (!%p233_p2), %v3798_v3  ;;  %v313_v4 = vld [vmem:[%s5427_s4 + $0x8] sm:$0xff] (!%p233_p2)  ;;  %v315_v5 = vld [vmem:[%s5427_s4 + $0x18] sm:$0xff] (!%p233_p2)  ;;  %v3799_v26 = vmov (!%p233_p2), 0.0   ;;  %s3800_s10 = smov (!%p233_p2), 112  }
   0x7   : > { %3580 = vset.pattern.permute.xlu1 (!%p233_p2), %v3798_v3  ;;  %352 = vperm.xlu0 (!%p233_p2), %3579, %v312_v1   ;;  %v3751_v12 = vld [vmem:[%s5426_s3 + $0x48] ss:$36 sps:$4 sm:$0xff] (!%p233_p2)   ;;  %v307_v15 = vld [vmem:[%s5428_s5 + $0x38] sm:$0xff] (!%p233_p2)  ;;  %v304_v18 = vld [vmem:[%s5428_s5 + $0x20] sm:$0xff] (!%p233_p2)  ;;  %vm464_vm1 = vcmask (!%p233_p2), 130048   ;;  %v657_v56 = vshrl.u32 (!%p233_p2), %v656_v54, 7 }
   0x8   : > { %362 = vperm.xlu1 (!%p233_p2), %3580, %v314_v2   ;;  %v305_v13 = vld [vmem:[%s5428_s5 + $0x28] sm:$0xff] (!%p233_p2)  ;;  %v311_v17 = vld [vmem:[%s5428_s5 + $0x58] sm:$0xff] (!%p233_p2)  ;;  %v308_v19 = vld [vmem:[%s5428_s5 + $0x40] sm:$0xff] (!%p233_p2)  ;;  %541 = vmatprep.mubr.f32.mxu1 (!%p233_p2), %v3799_v26  ;;  %s3801_s13 = smov (!%p233_p2), 1   ;;  %vm740_vm8 = vcmask (!%p233_p2), 7168   ;;  %s3802_s16 = smov (!%p233_p2), 2  }
   0x9   : > { %v309_v14 = vld [vmem:[%s5428_s5 + $0x48] sm:$0xff] (!%p233_p2)  ;;  %v3484_v20 = vpack.c.bf16 (!%p233_p2), %v311_v17, %v307_v15  ;;  %v3482_v21 = vpack.c.bf16 (!%p233_p2), %v308_v19, %v304_v18  ;;  %v306_v22 = vld [vmem:[%s5428_s5 + $0x30] sm:$0xff] (!%p233_p2)  ;;  %v3934_v57 = vsub.s32 (!%p233_p2), 0, %v657_v56  ;;  %v3937_v59 = vsub.s32 (!%p233_p2), 1, %v657_v56  ;;  %s3803_s17 = smov (!%p233_p2), 4   ;;  %s3804_s18 = smov (!%p233_p2), 8  }
   0xa   : > { %v3480_v16 = vpack.c.bf16 (!%p233_p2), %v309_v14, %v305_v13  ;;  %v310_v23 = vld [vmem:[%s5428_s5 + $0x50] sm:$0xff] (!%p233_p2)  ;;  %v3939_v60 = vsub.s32 (!%p233_p2), 2, %v657_v56  ;;  %v3948_v1 = vsub.s32 (!%p233_p2), 3, %v657_v56  ;;  %vm875_vm14 = vcmask (!%p233_p2), 15360   ;;  %s3805_s19 = smov (!%p233_p2), 127   ;;  %s3806_s20 = smov (!%p233_p2), 126  }
   0xb   : > { %357 = vperm.xlu0 (!%p233_p2), %3579, %v313_v4   ;;  %v3486_v24 = vpack.c.bf16 (!%p233_p2), %v310_v23, %v306_v22  ;;  %v3350_v55 = vld [vmem:[%s5428_s5 + $0x3] ss:$8 sm:$0xf] (!%p233_p2)  ;;  %s3807_s23 = smov (!%p233_p2), 108   ;;  %s3808_s24 = smov (!%p233_p2), 107  }
   0xc   : > { %367 = vperm.xlu1 (!%p233_p2), %3580, %v315_v5   ;;  %3481 = vmatprep.subr.bf16.mxu1 (!%p233_p2), %v3480_v16  ;;  %vm300_vm2 = vcmp.gt.f32.partialorder (!%p233_p2), %v3350_v55, 0.5  ;;  %s3809_s25 = smov (!%p233_p2), 106   ;;  %s3810_s26 = smov (!%p233_p2), 88   ;;  %v3754_v2 = vld [vmem:[%s5426_s3 + $0x8] ss:$36 sps:$4 sm:$0xff] (!%p233_p2)  }
   0xd   : > { %s5471_s22 = smov (!%p272_p3, %s3335_s22), 1  ;;  %3483 = vmatpush1.bf16.msra.mxu1 %v3482_v21  ;;  %v655_v58 = vsel %vm300_vm2, 1, %v3798_v3  ;;  %s3811_s27 = smov 87  }
   0xe   : > { %s3877_s7 = sshll.u32 %s5471_s22, 5  ;;  %v659_v61 = vrot.slane %v655_v58, %v3934_v57  ;;  %v663_v62 = vrot.slane %v655_v58, %v3937_v59  ;;  %v667_v63 = vrot.slane %v655_v58, %v3939_v60  ;;  %s3812_s30 = smov 86  }
   0xf   : > { %s276_s12 = scalar_lea.vmem %s5423_s0, %s3877_s7 }
  0x10   : > { %v344_v6 = vld [vmem:[%s276_s12] sm:$0xff]  ;;  %v345_v7 = vld [vmem:[%s276_s12 + $0x8] sm:$0xff]  ;;  %v346_v8 = vld [vmem:[%s276_s12 + $0x10] sm:$0xff]  ;;  %vm3944_vm3 = vcmp.eq.s32.totalorder %v659_v61, 1  ;;  %vm3950_vm4 = vcmp.eq.s32.totalorder %v663_v62, 1  ;;  %vm3958_vm5 = vcmp.eq.s32.totalorder %v667_v63, 1 }
  0x11   : > { %v348_v9 = vpack.c.bf16 %v345_v7, %v344_v6  ;;  %v347_v10 = vld [vmem:[%s276_s12 + $0x18] sm:$0xff]  ;;  %s3400_s12 = sshll.u32 %s5471_s22, 4 }
  0x12   : > { %v349_v11 = vpack.c.bf16 %v347_v10, %v346_v8  ;;  %s291_s15 = scalar_lea.vmem %s5429_s6, %s3400_s12 }
  0x13   : > { %3464 = vmatprep.subr.bf16.mxu0 %v348_v9 }
  0x14   : > { %3465 = vmatpush3.bf16.msra.mxu0 %v348_v9 }
  0x15   : > { %3466 = vmatprep.subr.bf16.mxu0 %v349_v11 }
  0x18   : > { %3467 = vmatpush3.bf16.msra.mxu0 %v349_v11  ;;  %v671_v11 = vrot.slane %v655_v58, %v3948_v1 }
  0x19   : > { %3485 = vmatprep.subr.bf16.mxu0 %v3484_v20 }
  0x1a   : > { %vm3982_vm6 = vcmp.eq.s32.totalorder %v671_v11, 1 }
  0x1b   : > { %3469 = vmatmul.mubr.msk.bf16.vlgmr.msra.gmra.mrb[0].mxu0 %vm380_vm0, %v3751_v12 }
  0x1c   : > { %3487 = vmatpush1.bf16.msra.mxu0 %v3486_v24  ;;  %630 = vmatprep.mubr.f32.mxu0 %v3799_v26 }
  0x86   : > { %v353_v25 = vpop.permute.xlu0 %352 }
  0x87   : > { %v363_v27 = vpop.permute.xlu1 %362 }
  0x8a   : > { %v358_v30 = vpop.permute.xlu0 %357 }
  0x8b   : > { %v368_v33 = vpop.permute.xlu1 %367 }
  0xee   : > { %v3470_v28 = vpop.f32.mrb[0].mxu0 }
  0xef   : > { %v421_v29 = vpop.f32.mrb[1].mxu0  ;;  %v430_v35 = vadd.f32 %v3470_v28, %v363_v27 }
  0xf0   : > { %v422_v31 = vadd.f32 %v421_v29, %v353_v25  ;;  %v3471_v32 = vpop.f32.mrb[2].mxu0 }
  0xf1   : > { %v424_v34 = vpop.f32.mrb[3].mxu0  ;;  %v433_v38 = vadd.f32 %v3471_v32, %v368_v33  ;;  %v438_v40 = vmax.f32 %v430_v35, 0.0 }
  0xf2   : > { %v436_v36 = vmax.f32 %v422_v31, 0.0  ;;  %v425_v37 = vadd.f32 %v424_v34, %v358_v30 }
  0xf3   : > { %v439_v41 = vmax.f32 %v433_v38, 0.0 }
  0xf4   : > { %v437_v39 = vmax.f32 %v425_v37, 0.0  ;;  %444 = vrot.lane.b32.xlu0 %v436_v36, %s3800_s10 }
  0xf6   : > { %446 = vrot.lane.b32.xlu1 %v437_v39, %s3800_s10 }
  0xf8   : > { %448 = vrot.lane.b32.xlu0 %v438_v40, %s3800_s10 }
  0xfa   : > { %450 = vrot.lane.b32.xlu1 %v439_v41, %s3800_s10 }
 0x166   : > { %v445_v42 = vpop.permute.xlu0 %444 }
 0x167   : > { %v456_v43 = vadd.f32 %v445_v42, %v436_v36 }
 0x168   : > { %v447_v44 = vpop.permute.xlu1 %446 }
 0x169   : > { %v460_v45 = vmul.f32 0.5, %v456_v43  ;;  %v457_v46 = vadd.f32 %v447_v44, %v437_v39 }
 0x16a   : > { %v449_v47 = vpop.permute.xlu0 %448 }
 0x16b   : > { %3356 = vmatmul.mubr.msk.f32.vlgmr.msra.gmra.mrb[0].mxu1 %vm464_vm1, %v460_v45  ;;  %3360 = vmatmul.mubr.msk.f32.vlgmr.msra.gmra.mrb[4].mxu0 %vm464_vm1, %v460_v45  ;;  %v461_v48 = vmul.f32 0.5, %v457_v46  ;;  %v458_v49 = vadd.f32 %v449_v47, %v438_v40 }
 0x16c   : > { %547 = vmatprep.mubr.f32.mxu1 %v3799_v26  ;;  %636 = vmatprep.mubr.f32.mxu0 %v3799_v26  ;;  %v451_v50 = vpop.permute.xlu1 %450 }
 0x16d   : > { %v462_v51 = vmul.f32 0.5, %v458_v49  ;;  %v459_v52 = vadd.f32 %v451_v50, %v439_v41 }
 0x16f   : > { %3357 = vmatmul.mubr.msk.f32.gmra.mrb[2].mxu1 %vm464_vm1, %v461_v48  ;;  %3361 = vmatmul.mubr.msk.f32.gmra.mrb[6].mxu0 %vm464_vm1, %v461_v48  ;;  %v463_v53 = vmul.f32 0.5, %v459_v52  ;;  %v4054_v48 = vld [vmem:[%s5428_s5 + $0x4] ss:$8 sm:$0xf] }
 0x170   : > { %553 = vmatprep.mubr.f32.mxu1 %v3799_v26  ;;  %642 = vmatprep.mubr.f32.mxu0 %v3799_v26  ;;  %vm773_vm7 = vcmp.ge.f32.partialorder %v4054_v48, 3.0  ;;  %vm908_vm13 = vcmp.ge.f32.partialorder %v4054_v48, 4.0 }
 0x171   : > { %v774_v49 = vsel %vm773_vm7, 1, %v3798_v3 }
 0x172   : > { %v778_v50 = vrot.slane %v774_v49, %v3934_v57  ;;  %v786_v52 = vrot.slane %v774_v49, %v3939_v60  ;;  %v790_v61 = vrot.slane %v774_v49, %v3948_v1 }
 0x173   : > { %3358 = vmatmul.mubr.msk.f32.gmra.mrb[4].mxu1 %vm464_vm1, %v462_v51  ;;  %3362 = vmatmul.mubr.msk.f32.gmra.mrb[8].mxu0 %vm464_vm1, %v462_v51  ;;  %v782_v51 = vrot.slane %v774_v49, %v3937_v59 }
 0x174   : > { %559 = vmatprep.mubr.f32.mxu1 %v3799_v26  ;;  %648 = vmatprep.mubr.f32.mxu0 %v3799_v26  ;;  %vm4061_vm9 = vcmp.eq.s32.totalorder %v778_v50, 1  ;;  %vm4072_vm11 = vcmp.eq.s32.totalorder %v786_v52, 1  ;;  %vm4088_vm12 = vcmp.eq.s32.totalorder %v790_v61, 1 }
 0x175   : > { %vm4065_vm10 = vcmp.eq.s32.totalorder %v782_v51, 1 }
 0x177   : > { %3359 = vmatmul.mubr.msk.f32.gmra.mrb[6].mxu1 %vm464_vm1, %v463_v53  ;;  %3363 = vmatmul.mubr.msk.f32.gmra.mrb[10].mxu0 %vm464_vm1, %v463_v53 }
 0x178   : > { %1781 = vmatprep.mubr.bf16.mxu1 %v3754_v2  ;;  %1887 = vmatprep.mubr.bf16.mxu0 %v3754_v2 }
 0x23e   : > { %v543_v4 = vpop.f32.mrb[0].mxu1  ;;  %v632_v5 = vpop.f32.mrb[4].mxu0 }
 0x23f   : > { %v3956_v6 = vsel %vm3944_vm3, %v543_v4, -1e+30  ;;  %v545_v8 = vpop.f32.mrb[1].mxu1  ;;  %v634_v9 = vpop.f32.mrb[5].mxu0  ;;  %v3971_v13 = vsel %vm3958_vm5, %v632_v5, -1e+30 }
 0x240   : > { %v3964_v10 = vsel %vm3950_vm4, %v545_v8, -1e+30  ;;  %v4001_v28 = vsel %vm3982_vm6, %v634_v9, -1e+30 }
 0x241   : > { %v3581_v12 = vpack.i.bf16 %v3964_v10, %v3956_v6 }
 0x242   : > { %v549_v14 = vpop.f32.mrb[2].mxu1  ;;  %v638_v15 = vpop.f32.mrb[6].mxu0 }
 0x243   : > { %v3975_v16 = vsel %vm3944_vm3, %v549_v14, -1e+30  ;;  %v3979_v17 = vsel %vm3958_vm5, %v638_v15, -1e+30  ;;  %v640_v18 = vpop.f32.mrb[7].mxu0  ;;  %3582 = vrot.lane.b32.xlu0 %v3581_v12, %s3801_s13  ;;  %v551_v19 = vpop.f32.mrb[3].mxu1 }
 0x244   : > { %v3586_v21 = vpack.i.bf16 %v3975_v16, %v3971_v13  ;;  %v3990_v22 = vsel %vm3950_vm4, %v551_v19, -1e+30  ;;  %v3994_v23 = vsel %vm3982_vm6, %v640_v18, -1e+30 }
 0x245   : > { %v3591_v24 = vpack.i.bf16 %v3979_v17, %v3990_v22  ;;  %v3596_v32 = vpack.i.bf16 %v3994_v23, %v4001_v28 }
 0x246   : > { %3587 = vrot.lane.b32.xlu1 %v3586_v21, %s3801_s13  ;;  %v555_v25 = vpop.f32.mrb[4].mxu1  ;;  %v644_v27 = vpop.f32.mrb[8].mxu0 }
 0x247   : > { %v4005_v29 = vsel %vm3944_vm3, %v555_v25, -1e+30  ;;  %3592 = vrot.lane.b32.xlu0 %v3591_v24, %s3801_s13  ;;  %v557_v30 = vpop.f32.mrb[5].mxu1  ;;  %v646_v31 = vpop.f32.mrb[9].mxu0  ;;  %v4018_v35 = vsel %vm3958_vm5, %v644_v27, -1e+30 }
 0x248   : > { %v4012_v33 = vsel %vm3950_vm4, %v557_v30, -1e+30  ;;  %v4045_v46 = vsel %vm3982_vm6, %v646_v31, -1e+30  ;;  %v909_v27 = vsel %vm908_vm13, 1, %v3798_v3 }
 0x249   : > { %v3601_v34 = vpack.i.bf16 %v4012_v33, %v4005_v29 }
 0x24a   : > { %3597 = vrot.lane.b32.xlu1 %v3596_v32, %s3801_s13  ;;  %v561_v36 = vpop.f32.mrb[6].mxu1  ;;  %v650_v37 = vpop.f32.mrb[10].mxu0 }
 0x24b   : > { %v4023_v38 = vsel %vm3944_vm3, %v561_v36, -1e+30  ;;  %v4027_v39 = vsel %vm3958_vm5, %v650_v37, -1e+30  ;;  %v652_v40 = vpop.f32.mrb[11].mxu0  ;;  %3602 = vrot.lane.b32.xlu0 %v3601_v34, %s3801_s13  ;;  %v563_v41 = vpop.f32.mrb[7].mxu1 }
 0x24c   : > { %v3606_v42 = vpack.i.bf16 %v4023_v38, %v4018_v35  ;;  %v4034_v43 = vsel %vm3950_vm4, %v563_v41, -1e+30  ;;  %v4038_v44 = vsel %vm3982_vm6, %v652_v40, -1e+30 }
 0x24d   : > { %v3611_v45 = vpack.i.bf16 %v4027_v39, %v4034_v43  ;;  %v3616_v47 = vpack.i.bf16 %v4038_v44, %v4045_v46 }
 0x24e   : > { %3607 = vrot.lane.b32.xlu1 %v3606_v42, %s3801_s13 }
 0x24f   : > { %3612 = vrot.lane.b32.xlu0 %v3611_v45, %s3801_s13 }
 0x252   : > { %3617 = vrot.lane.b32.xlu1 %v3616_v47, %s3801_s13 }
 0x2b5   : > { %v3583_v53 = vpop.permute.xlu0 %3582 }
 0x2b6   : > { %v3585_v55 = vunpack.i.h.bf16 %v3583_v53  ;;  %v3584_v56 = vunpack.i.l.bf16 %v3583_v53 }
 0x2b8   : > { %v769_v62 = vsel %vm740_vm8, -1e+30, %v3584_v56  ;;  %v3588_v63 = vpop.permute.xlu1 %3587  ;;  %v741_v4 = vsel %vm740_vm8, %v3584_v56, %v3585_v55 }
 0x2b9   : > { %v795_v8 = vsel %vm4061_vm9, %v769_v62, -1e+30  ;;  %v3590_v9 = vunpack.i.h.bf16 %v3588_v63  ;;  %v3589_v11 = vunpack.i.l.bf16 %v3588_v63  ;;  %v3593_v12 = vpop.permute.xlu0 %3592  ;;  %v796_v14 = vsel %vm4065_vm10, %v741_v4, -1e+30 }
 0x2ba   : > { %v3595_v15 = vunpack.i.h.bf16 %v3593_v12  ;;  %v3594_v18 = vunpack.i.l.bf16 %v3593_v12  ;;  %v4081_v19 = vmax.f32 %v3956_v6, %v795_v8  ;;  %v4084_v21 = vmax.f32 %v3964_v10, %v796_v14 }
 0x2bb   : > { %v770_v24 = vsel %vm740_vm8, -1e+30, %v3590_v9  ;;  %v742_v25 = vsel %vm740_vm8, %v3585_v55, %v3589_v11 }
 0x2bc   : > { %v799_v30 = vsel %vm4061_vm9, %v770_v24, -1e+30  ;;  %v3598_v31 = vpop.permute.xlu1 %3597  ;;  %v3621_v32 = vpack.i.bf16 %v4084_v21, %v4081_v19  ;;  %v797_v6 = vsel %vm4072_vm11, %v742_v25, -1e+30  ;;  %v744_v10 = vsel %vm740_vm8, %v3590_v9, %v3594_v18 }
 0x2bd   : > { %v3600_v34 = vunpack.i.h.bf16 %v3598_v31  ;;  %v3599_v36 = vunpack.i.l.bf16 %v3598_v31  ;;  %v3603_v37 = vpop.permute.xlu0 %3602  ;;  %v4100_v40 = vmax.f32 %v3971_v13, %v797_v6  ;;  %v4103_v41 = vmax.f32 %v3975_v16, %v799_v30 }
 0x2be   : > { %v3605_v42 = vunpack.i.h.bf16 %v3603_v37  ;;  %v3604_v45 = vunpack.i.l.bf16 %v3603_v37  ;;  %3622 = vrot.lane.b32.xlu0 %v3621_v32, %s3802_s16  ;;  %v745_v47 = vsel %vm740_vm8, %v3594_v18, %v3595_v15  ;;  %v800_v49 = vsel %vm4065_vm10, %v744_v10, -1e+30 }
 0x2bf   : > { %v3626_v50 = vpack.i.bf16 %v4103_v41, %v4100_v40  ;;  %v801_v13 = vsel %vm4072_vm11, %v745_v47, -1e+30  ;;  %v4114_v51 = vmax.f32 %v3990_v22, %v800_v49  ;;  %v743_v16 = vsel %vm740_vm8, %v3589_v11, %v3599_v36 }
 0x2c0   : > { %v771_v52 = vsel %vm740_vm8, -1e+30, %v3604_v45  ;;  %v3608_v53 = vpop.permute.xlu1 %3607  ;;  %v4119_v55 = vmax.f32 %v3979_v17, %v801_v13  ;;  %v746_v56 = vsel %vm740_vm8, %v3595_v15, %v3600_v34  ;;  %v798_v61 = vsel %vm4088_vm12, %v743_v16, -1e+30 }
 0x2c1   : > { %v803_v62 = vsel %vm4061_vm9, %v771_v52, -1e+30  ;;  %v3610_v63 = vunpack.i.h.bf16 %v3608_v53  ;;  %v3609_v4 = vunpack.i.l.bf16 %v3608_v53  ;;  %v3613_v22 = vpop.permute.xlu0 %3612  ;;  %3627 = vrot.lane.b32.xlu1 %v3626_v50, %s3802_s16  ;;  %v802_v8 = vsel %vm4088_vm12, %v746_v56, -1e+30 }
 0x2c2   : > { %v3615_v9 = vunpack.i.h.bf16 %v3613_v22  ;;  %v3614_v11 = vunpack.i.l.bf16 %v3613_v22  ;;  %v3631_v17 = vpack.i.bf16 %v4119_v55, %v4114_v51  ;;  %v4132_v12 = vmax.f32 %v4001_v28, %v798_v61 }
 0x2c3   : > { %v772_v14 = vsel %vm740_vm8, -1e+30, %v3610_v63  ;;  %v4136_v15 = vmax.f32 %v3994_v23, %v802_v8  ;;  %v747_v18 = vsel %vm740_vm8, %v3604_v45, %v3605_v42  ;;  %v4140_v24 = vmax.f32 %v4005_v29, %v803_v62 }
 0x2c4   : > { %v807_v25 = vsel %vm4061_vm9, %v772_v14, -1e+30  ;;  %3632 = vrot.lane.b32.xlu0 %v3631_v17, %s3802_s16  ;;  %v3618_v30 = vpop.permute.xlu1 %3617  ;;  %v804_v28 = vsel %vm4065_vm10, %v747_v18, -1e+30  ;;  %v748_v31 = vsel %vm740_vm8, %v3605_v42, %v3609_v4  ;;  %v750_v32 = vsel %vm740_vm8, %v3610_v63, %v3614_v11 }
 0x2c5   : > { %v3620_v23 = vunpack.i.h.bf16 %v3618_v30  ;;  %v3619_v6 = vunpack.i.l.bf16 %v3618_v30  ;;  %v3636_v10 = vpack.i.bf16 %v4136_v15, %v4132_v12  ;;  %v4152_v29 = vmax.f32 %v4012_v33, %v804_v28 }
 0x2c6   : > { %v805_v54 = vsel %vm4072_vm11, %v748_v31, -1e+30  ;;  %v4157_v34 = vmax.f32 %v4023_v38, %v807_v25  ;;  %v751_v36 = vsel %vm740_vm8, %v3614_v11, %v3615_v9  ;;  %v808_v37 = vsel %vm4065_vm10, %v750_v32, -1e+30 }
 0x2c7   : > { %3637 = vrot.lane.b32.xlu1 %v3636_v10, %s3802_s16  ;;  %v3641_v42 = vpack.i.bf16 %v4152_v29, %v4140_v24  ;;  %v4166_v45 = vmax.f32 %v4018_v35, %v805_v54  ;;  %v809_v33 = vsel %vm4072_vm11, %v751_v36, -1e+30  ;;  %v4171_v47 = vmax.f32 %v4034_v43, %v808_v37 }
 0x2c8   : > { %v4174_v38 = vmax.f32 %v4027_v39, %v809_v33  ;;  %v749_v58 = vsel %vm740_vm8, %v3609_v4, %v3619_v6  ;;  %v752_v49 = vsel %vm740_vm8, %v3615_v9, %v3620_v23  ;;  %v913_v52 = vrot.slane %v909_v27, %v3934_v57 }
 0x2c9   : > { %3642 = vrot.lane.b32.xlu0 %v3641_v42, %s3802_s16  ;;  %v3646_v50 = vpack.i.bf16 %v4157_v34, %v4166_v45  ;;  %v806_v35 = vsel %vm4088_vm12, %v749_v58, -1e+30  ;;  %v810_v5 = vsel %vm4088_vm12, %v752_v49, -1e+30  ;;  %v921_v63 = vrot.slane %v909_v27, %v3939_v60 }
 0x2ca   : > { %v3651_v43 = vpack.i.bf16 %v4174_v38, %v4171_v47  ;;  %v4188_v39 = vmax.f32 %v4045_v46, %v806_v35  ;;  %v4191_v13 = vmax.f32 %v4038_v44, %v810_v5  ;;  %v917_v46 = vrot.slane %v909_v27, %v3937_v59 }
 0x2cb   : > { %3647 = vrot.lane.b32.xlu1 %v3646_v50, %s3802_s16  ;;  %vm4202_vm15 = vcmp.eq.s32.totalorder %v913_v52, 1  ;;  %vm4223_vm2 = vcmp.eq.s32.totalorder %v921_v63, 1  ;;  %v925_v28 = vrot.slane %v909_v27, %v3948_v1  ;;  %vm1043_vm8 = vcmp.ge.f32.partialorder %v4054_v48, 6.0 }
 0x2cc   : > { %v3656_v16 = vpack.i.bf16 %v4191_v13, %v4188_v39  ;;  %vm4206_vm1 = vcmp.eq.s32.totalorder %v917_v46, 1  ;;  %vm1010_vm9 = vcmask 31744  }
 0x2cd   : > { %3652 = vrot.lane.b32.xlu0 %v3651_v43, %s3802_s16  ;;  %vm4245_vm7 = vcmp.eq.s32.totalorder %v925_v28, 1 }
 0x2cf   : > { %3657 = vrot.lane.b32.xlu1 %v3656_v16, %s3802_s16 }
 0x330   : > { %v3623_v53 = vpop.permute.xlu0 %3622 }
 0x331   : > { %v3625_v56 = vunpack.i.h.bf16 %v3623_v53  ;;  %v3624_v61 = vunpack.i.l.bf16 %v3623_v53 }
 0x333   : > { %v904_v4 = vsel %vm875_vm14, -1e+30, %v3624_v61  ;;  %v3628_v22 = vpop.permute.xlu1 %3627  ;;  %v876_v8 = vsel %vm875_vm14, %v3624_v61, %v3625_v56 }
 0x334   : > { %v930_v9 = vsel %vm4202_vm15, %v904_v4, -1e+30  ;;  %v3630_v11 = vunpack.i.h.bf16 %v3628_v22  ;;  %v3629_v17 = vunpack.i.l.bf16 %v3628_v22  ;;  %v931_v14 = vsel %vm4206_vm1, %v876_v8, -1e+30 }
 0x335   : > { %v4218_v18 = vmax.f32 %v4081_v19, %v930_v9  ;;  %v4221_v25 = vmax.f32 %v4084_v21, %v931_v14 }
 0x336   : > { %v905_v31 = vsel %vm875_vm14, -1e+30, %v3630_v11  ;;  %v3633_v32 = vpop.permute.xlu0 %3632  ;;  %v877_v23 = vsel %vm875_vm14, %v3625_v56, %v3629_v17 }
 0x337   : > { %v934_v6 = vsel %vm4202_vm15, %v905_v31, -1e+30  ;;  %v3635_v10 = vunpack.i.h.bf16 %v3633_v32  ;;  %v3634_v19 = vunpack.i.l.bf16 %v3633_v32  ;;  %v3661_v21 = vpack.i.bf16 %v4221_v25, %v4218_v18 }
 0x338   : > { %v932_v54 = vsel %vm4223_vm2, %v877_v23, -1e+30  ;;  %v4237_v36 = vmax.f32 %v4103_v41, %v934_v6 }
 0x339   : > { %v3638_v37 = vpop.permute.xlu1 %3637  ;;  %3662 = vrot.lane.b32.xlu0 %v3661_v21, %s3803_s17  ;;  %v4241_v42 = vmax.f32 %v4100_v40, %v932_v54  ;;  %v879_v33 = vsel %vm875_vm14, %v3630_v11, %v3634_v19  ;;  %v880_v58 = vsel %vm875_vm14, %v3634_v19, %v3635_v10 }
 0x33a   : > { %v3640_v50 = vunpack.i.h.bf16 %v3638_v37  ;;  %v3639_v35 = vunpack.i.l.bf16 %v3638_v37  ;;  %v935_v41 = vsel %vm4206_vm1, %v879_v33, -1e+30  ;;  %v936_v5 = vsel %vm4223_vm2, %v880_v58, -1e+30 }
 0x33b   : > { %v3643_v43 = vpop.permute.xlu0 %3642  ;;  %v3666_v40 = vpack.i.bf16 %v4237_v36, %v4241_v42  ;;  %v4256_v16 = vmax.f32 %v4114_v51, %v935_v41  ;;  %v4259_v27 = vmax.f32 %v4119_v55, %v936_v5 }
 0x33c   : > { %v3645_v52 = vunpack.i.h.bf16 %v3643_v43  ;;  %v3644_v46 = vunpack.i.l.bf16 %v3643_v43  ;;  %v878_v53 = vsel %vm875_vm14, %v3629_v17, %v3639_v35  ;;  %v881_v56 = vsel %vm875_vm14, %v3635_v10, %v3640_v50 }
 0x33d   : > { %v3648_v61 = vpop.permute.xlu1 %3647  ;;  %3667 = vrot.lane.b32.xlu1 %v3666_v40, %s3803_s17  ;;  %v3671_v63 = vpack.i.bf16 %v4259_v27, %v4256_v16  ;;  %v933_v4 = vsel %vm4245_vm7, %v878_v53, -1e+30  ;;  %v937_v51 = vsel %vm4245_vm7, %v881_v56, -1e+30 }
 0x33e   : > { %v906_v55 = vsel %vm875_vm14, -1e+30, %v3644_v46  ;;  %v3650_v22 = vunpack.i.h.bf16 %v3648_v61  ;;  %v3649_v8 = vunpack.i.l.bf16 %v3648_v61  ;;  %v4272_v9 = vmax.f32 %v4132_v12, %v933_v4 }
 0x33f   : > { %v938_v11 = vsel %vm4202_vm15, %v906_v55, -1e+30  ;;  %v3653_v17 = vpop.permute.xlu0 %3652  ;;  %3672 = vrot.lane.b32.xlu0 %v3671_v63, %s3803_s17  ;;  %v4278_v14 = vmax.f32 %v4136_v15, %v937_v51  ;;  %v882_v28 = vsel %vm875_vm14, %v3644_v46, %v3645_v52 }
 0x340   : > { %v907_v31 = vsel %vm875_vm14, -1e+30, %v3650_v22  ;;  %v3655_v32 = vunpack.i.h.bf16 %v3653_v17  ;;  %v3654_v23 = vunpack.i.l.bf16 %v3653_v17  ;;  %v939_v6 = vsel %vm4206_vm1, %v882_v28, -1e+30 }
 0x341   : > { %v942_v12 = vsel %vm4202_vm15, %v907_v31, -1e+30  ;;  %v3658_v10 = vpop.permute.xlu1 %3657  ;;  %v3676_v19 = vpack.i.bf16 %v4278_v14, %v4272_v9  ;;  %v4289_v21 = vmax.f32 %v4140_v24, %v938_v11  ;;  %v4292_v15 = vmax.f32 %v4152_v29, %v939_v6 }
 0x342   : > { %v3660_v54 = vunpack.i.h.bf16 %v3658_v10  ;;  %v3659_v37 = vunpack.i.l.bf16 %v3658_v10  ;;  %v883_v33 = vsel %vm875_vm14, %v3645_v52, %v3649_v8  ;;  %v4296_v58 = vmax.f32 %v4157_v34, %v942_v12 }
 0x343   : > { %3677 = vrot.lane.b32.xlu1 %v3676_v19, %s3803_s17  ;;  %v3681_v44 = vpack.i.bf16 %v4292_v15, %v4289_v21  ;;  %v940_v50 = vsel %vm4223_vm2, %v883_v33, -1e+30  ;;  %v885_v24 = vsel %vm875_vm14, %v3650_v22, %v3654_v23  ;;  %v886_v29 = vsel %vm875_vm14, %v3654_v23, %v3655_v32 }
 0x344   : > { %v4306_v35 = vmax.f32 %v4166_v45, %v940_v50  ;;  %v943_v41 = vsel %vm4206_vm1, %v885_v24, -1e+30  ;;  %v944_v34 = vsel %vm4223_vm2, %v886_v29, -1e+30  ;;  %v884_v5 = vsel %vm875_vm14, %v3649_v8, %v3659_v37 }
 0x345   : > { %3682 = vrot.lane.b32.xlu0 %v3681_v44, %s3803_s17  ;;  %v4315_v43 = vmax.f32 %v4171_v47, %v943_v41  ;;  %v4318_v40 = vmax.f32 %v4174_v38, %v944_v34  ;;  %v887_v52 = vsel %vm875_vm14, %v3655_v32, %v3660_v54  ;;  %v941_v45 = vsel %vm4245_vm7, %v884_v5, -1e+30 }
 0x346   : > { %v3686_v62 = vpack.i.bf16 %v4296_v58, %v4306_v35  ;;  %v945_v30 = vsel %vm4245_vm7, %v887_v52, -1e+30  ;;  %v4328_v46 = vmax.f32 %v4188_v39, %v941_v45  ;;  %v1044_v39 = vsel %vm1043_vm8, 1, %v3798_v3 }
 0x347   : > { %v3691_v47 = vpack.i.bf16 %v4318_v40, %v4315_v43  ;;  %v4333_v38 = vmax.f32 %v4191_v13, %v945_v30  ;;  %v1048_v49 = vrot.slane %v1044_v39, %v3934_v57  ;;  %v1052_v56 = vrot.slane %v1044_v39, %v3937_v59 }
 0x348   : > { %3687 = vrot.lane.b32.xlu1 %v3686_v62, %s3803_s17  ;;  %v1056_v55 = vrot.slane %v1044_v39, %v3939_v60  ;;  %v1060_v19 = vrot.slane %v1044_v39, %v3948_v1  ;;  %vm1178_vm14 = vcmp.ge.f32.partialorder %v4054_v48, 10.0  ;;  %vm1145_vm15 = vcmask 64512  }
 0x349   : > { %3692 = vrot.lane.b32.xlu0 %v3691_v47, %s3803_s17  ;;  %v3696_v53 = vpack.i.bf16 %v4333_v38, %v4328_v46  ;;  %vm4344_vm10 = vcmp.eq.s32.totalorder %v1048_v49, 1  ;;  %vm4348_vm11 = vcmp.eq.s32.totalorder %v1052_v56, 1  ;;  %v1179_v62 = vsel %vm1178_vm14, 1, %v3798_v3 }
 0x34a   : > { %vm4365_vm12 = vcmp.eq.s32.totalorder %v1056_v55, 1  ;;  %vm4391_vm13 = vcmp.eq.s32.totalorder %v1060_v19, 1  ;;  %vm1509_vm14 = vcmask 719872  }
 0x34c   : > { %3697 = vrot.lane.b32.xlu1 %v3696_v53, %s3803_s17 }
 0x3ab   : > { %v3663_v13 = vpop.permute.xlu0 %3662 }
 0x3ac   : > { %v3665_v63 = vunpack.i.h.bf16 %v3663_v13  ;;  %v3664_v4 = vunpack.i.l.bf16 %v3663_v13 }
 0x3ae   : > { %v1039_v22 = vsel %vm1010_vm9, -1e+30, %v3664_v4  ;;  %v1011_v8 = vsel %vm1010_vm9, %v3664_v4, %v3665_v63 }
 0x3af   : > { %v1065_v11 = vsel %vm4344_vm10, %v1039_v22, -1e+30  ;;  %v3668_v17 = vpop.permute.xlu1 %3667  ;;  %v1066_v28 = vsel %vm4348_vm11, %v1011_v8, -1e+30 }
 0x3b0   : > { %v3670_v31 = vunpack.i.h.bf16 %v3668_v17  ;;  %v3669_v32 = vunpack.i.l.bf16 %v3668_v17  ;;  %v4360_v23 = vmax.f32 %v4218_v18, %v1065_v11  ;;  %v4363_v6 = vmax.f32 %v4221_v25, %v1066_v28 }
 0x3b1   : > { %v3673_v12 = vpop.permute.xlu0 %3672 }
 0x3b2   : > { %v1040_v54 = vsel %vm1010_vm9, -1e+30, %v3670_v31  ;;  %v3675_v37 = vunpack.i.h.bf16 %v3673_v12  ;;  %v3674_v33 = vunpack.i.l.bf16 %v3673_v12  ;;  %v3701_v44 = vpack.i.bf16 %v4363_v6, %v4360_v23 }
 0x3b3   : > { %v1069_v18 = vsel %vm4344_vm10, %v1040_v54, -1e+30  ;;  %v1012_v25 = vsel %vm1010_vm9, %v3665_v63, %v3669_v32 }
 0x3b4   : > { %3702 = vrot.lane.b32.xlu0 %v3701_v44, %s3804_s18  ;;  %v1067_v50 = vsel %vm4365_vm12, %v1012_v25, -1e+30  ;;  %v4380_v24 = vmax.f32 %v4237_v36, %v1069_v18  ;;  %v1014_v29 = vsel %vm1010_vm9, %v3670_v31, %v3674_v33  ;;  %v1015_v41 = vsel %vm1010_vm9, %v3674_v33, %v3675_v37 }
 0x3b5   : > { %v3678_v34 = vpop.permute.xlu1 %3677  ;;  %v4385_v5 = vmax.f32 %v4241_v42, %v1067_v50  ;;  %v1070_v52 = vsel %vm4348_vm11, %v1014_v29, -1e+30  ;;  %v1071_v45 = vsel %vm4365_vm12, %v1015_v41, -1e+30 }
 0x3b6   : > { %v3680_v36 = vunpack.i.h.bf16 %v3678_v34  ;;  %v3679_v30 = vunpack.i.l.bf16 %v3678_v34  ;;  %v4396_v47 = vmax.f32 %v4256_v16, %v1070_v52  ;;  %v4399_v53 = vmax.f32 %v4259_v27, %v1071_v45 }
 0x3b7   : > { %v3683_v42 = vpop.permute.xlu0 %3682  ;;  %v3706_v39 = vpack.i.bf16 %v4380_v24, %v4385_v5 }
 0x3b8   : > { %v3685_v49 = vunpack.i.h.bf16 %v3683_v42  ;;  %v3684_v56 = vunpack.i.l.bf16 %v3683_v42  ;;  %v3711_v13 = vpack.i.bf16 %v4399_v53, %v4396_v47  ;;  %v1013_v63 = vsel %vm1010_vm9, %v3669_v32, %v3679_v30 }
 0x3b9   : > { %3707 = vrot.lane.b32.xlu1 %v3706_v39, %s3804_s18  ;;  %v1016_v4 = vsel %vm1010_vm9, %v3675_v37, %v3680_v36  ;;  %v1068_v16 = vsel %vm4391_vm13, %v1013_v63, -1e+30  ;;  %v1183_v63 = vrot.slane %v1179_v62, %v3934_v57 }
 0x3ba   : > { %v1041_v27 = vsel %vm1010_vm9, -1e+30, %v3684_v56  ;;  %v3688_v55 = vpop.permute.xlu1 %3687  ;;  %3712 = vrot.lane.b32.xlu0 %v3711_v13, %s3804_s18  ;;  %v1072_v22 = vsel %vm4391_vm13, %v1016_v4, -1e+30  ;;  %v4415_v8 = vmax.f32 %v4272_v9, %v1068_v16  ;;  %v1017_v11 = vsel %vm1010_vm9, %v3684_v56, %v3685_v49 }
 0x3bb   : > { %v1073_v17 = vsel %vm4344_vm10, %v1041_v27, -1e+30  ;;  %v3690_v28 = vunpack.i.h.bf16 %v3688_v55  ;;  %v3689_v31 = vunpack.i.l.bf16 %v3688_v55  ;;  %v3693_v32 = vpop.permute.xlu0 %3692  ;;  %v4421_v12 = vmax.f32 %v4278_v14, %v1072_v22 }
 0x3bc   : > { %v3695_v19 = vunpack.i.h.bf16 %v3693_v32  ;;  %v3694_v54 = vunpack.i.l.bf16 %v3693_v32  ;;  %v1074_v37 = vsel %vm4348_vm11, %v1017_v11, -1e+30  ;;  %v4426_v33 = vmax.f32 %v4289_v21, %v1073_v17 }
 0x3bd   : > { %v1042_v9 = vsel %vm1010_vm9, -1e+30, %v3690_v28  ;;  %v3716_v44 = vpack.i.bf16 %v4421_v12, %v4415_v8  ;;  %v4432_v18 = vmax.f32 %v4292_v15, %v1074_v37  ;;  %v1018_v25 = vsel %vm1010_vm9, %v3685_v49, %v3689_v31 }
 0x3be   : > { %v1077_v14 = vsel %vm4344_vm10, %v1042_v9, -1e+30  ;;  %v3698_v50 = vpop.permute.xlu1 %3697  ;;  %v1075_v29 = vsel %vm4365_vm12, %v1018_v25, -1e+30  ;;  %v1020_v21 = vsel %vm1010_vm9, %v3690_v28, %v3694_v54  ;;  %v1021_v41 = vsel %vm1010_vm9, %v3694_v54, %v3695_v19  ;;  %vm3404_vm10 = vmpackc.low %vm3944_vm3, %vm3944_vm3 }
 0x3bf   : > { %v3700_v34 = vunpack.i.h.bf16 %v3698_v50  ;;  %v3699_v52 = vunpack.i.l.bf16 %v3698_v50  ;;  %3717 = vrot.lane.b32.xlu1 %v3716_v44, %s3804_s18  ;;  %v3721_v15 = vpack.i.bf16 %v4432_v18, %v4426_v33  ;;  %v4445_v45 = vmax.f32 %v4306_v35, %v1075_v29 }
 0x3c0   : > { %v4448_v61 = vmax.f32 %v4296_v58, %v1077_v14  ;;  %v1078_v36 = vsel %vm4348_vm11, %v1020_v21, -1e+30  ;;  %v1079_v30 = vsel %vm4365_vm12, %v1021_v41, -1e+30  ;;  %vm4486_vm1 = vcmp.eq.s32.totalorder %v1183_v63, 1  ;;  %vm3413_vm11 = vmpackc.low %vm3982_vm6, %vm3982_vm6 }
 0x3c1   : > { %3722 = vrot.lane.b32.xlu0 %v3721_v15, %s3804_s18  ;;  %v4456_v42 = vmax.f32 %v4315_v43, %v1078_v36  ;;  %v4459_v39 = vmax.f32 %v4318_v40, %v1079_v30  ;;  %v1019_v35 = vsel %vm1010_vm9, %v3689_v31, %v3699_v52  ;;  %v1022_v49 = vsel %vm1010_vm9, %v3695_v19, %v3700_v34  ;;  %vm3401_vm9 = vmpackc.low %vm3950_vm4, %vm3950_vm4 }
 0x3c2   : > { %v3726_v58 = vpack.i.bf16 %v4448_v61, %v4445_v45  ;;  %v1076_v51 = vsel %vm4391_vm13, %v1019_v35, -1e+30  ;;  %v1080_v10 = vsel %vm4391_vm13, %v1022_v49, -1e+30  ;;  %v1191_v55 = vrot.slane %v1179_v62, %v3939_v60  ;;  %vm3416_vm12 = vmpackc.low %vm3958_vm5, %vm3958_vm5 }
 0x3c3   : > { %v3731_v43 = vpack.i.bf16 %v4459_v39, %v4456_v42  ;;  %v4472_v56 = vmax.f32 %v4328_v46, %v1076_v51  ;;  %v4475_v40 = vmax.f32 %v4333_v38, %v1080_v10  ;;  %v1187_v38 = vrot.slane %v1179_v62, %v3937_v59 }
 0x3c4   : > { %3727 = vrot.lane.b32.xlu1 %v3726_v58, %s3804_s18  ;;  %vm4499_vm7 = vcmp.eq.s32.totalorder %v1191_v55, 1  ;;  %v1195_v44 = vrot.slane %v1179_v62, %v3948_v1  ;;  %vm1465_vm13 = vcmask 867328  }
 0x3c5   : > { %3732 = vrot.lane.b32.xlu0 %v3731_v43, %s3804_s18  ;;  %v3736_v13 = vpack.i.bf16 %v4475_v40, %v4472_v56  ;;  %vm4492_vm2 = vcmp.eq.s32.totalorder %v1187_v38, 1 }
 0x3c6   : > { %vm4526_vm8 = vcmp.eq.s32.totalorder %v1195_v44, 1 }
 0x3c8   : > { %3737 = vrot.lane.b32.xlu1 %v3736_v13, %s3804_s18 }
 0x426   : > { %v3703_v46 = vpop.permute.xlu0 %3702 }
 0x427   : > { %v3705_v4 = vunpack.i.h.bf16 %v3703_v46  ;;  %v3704_v16 = vunpack.i.l.bf16 %v3703_v46 }
 0x429   : > { %v1174_v22 = vsel %vm1145_vm15, -1e+30, %v3704_v16  ;;  %v1146_v11 = vsel %vm1145_vm15, %v3704_v16, %v3705_v4 }
 0x42a   : > { %v1200_v17 = vsel %vm4486_vm1, %v1174_v22, -1e+30  ;;  %v1201_v25 = vsel %vm4492_vm2, %v1146_v11, -1e+30 }
 0x42b   : > { %v3708_v28 = vpop.permute.xlu1 %3707  ;;  %v1216_v14 = vmax.f32 %v4360_v23, %v1200_v17  ;;  %v4546_v63 = vmax.f32 %v4363_v6, %v1201_v25 }
 0x42c   : > { %v3710_v32 = vunpack.i.h.bf16 %v3708_v28  ;;  %v3709_v19 = vunpack.i.l.bf16 %v3708_v28  ;;  %v3713_v54 = vpop.permute.xlu0 %3712 }
 0x42d   : > { %v3715_v37 = vunpack.i.h.bf16 %v3713_v54  ;;  %v3714_v9 = vunpack.i.l.bf16 %v3713_v54 }
 0x42e   : > { %v1175_v50 = vsel %vm1145_vm15, -1e+30, %v3710_v32  ;;  %v1147_v29 = vsel %vm1145_vm15, %v3705_v4, %v3709_v19 }
 0x42f   : > { %v1204_v21 = vsel %vm4486_vm1, %v1175_v50, -1e+30  ;;  %v1202_v41 = vsel %vm4499_vm7, %v1147_v29, -1e+30  ;;  %v1149_v34 = vsel %vm1145_vm15, %v3710_v32, %v3714_v9  ;;  %v1150_v52 = vsel %vm1145_vm15, %v3714_v9, %v3715_v37 }
 0x430   : > { %v1220_v15 = vmax.f32 %v4380_v24, %v1204_v21  ;;  %v4517_v36 = vmax.f32 %v4385_v5, %v1202_v41  ;;  %v1205_v23 = vsel %vm4492_vm2, %v1149_v34, -1e+30  ;;  %v1206_v30 = vsel %vm4499_vm7, %v1150_v52, -1e+30 }
 0x431   : > { %v4524_v35 = vmax.f32 %v4399_v53, %v1206_v30  ;;  %v3718_v58 = vpop.permute.xlu1 %3717  ;;  %v4531_v51 = vmax.f32 %v4396_v47, %v1205_v23  ;;  %v1232_v24 = vsel %vm3944_vm3, %v1216_v14, 0.0 }
 0x432   : > { %v1236_v5 = vsel %vm3944_vm3, %v1220_v15, 0.0  ;;  %v1234_v10 = vsel %vm3958_vm5, %v4517_v36, 0.0  ;;  %v3720_v53 = vunpack.i.h.bf16 %v3718_v58  ;;  %v3719_v62 = vunpack.i.l.bf16 %v3718_v58 }
 0x433   : > { %v4540_v43 = vpack.c.bf16 %v1236_v5, %v1232_v24  ;;  %v1238_v13 = vsel %vm3958_vm5, %v4524_v35, 0.0  ;;  %v3723_v47 = vpop.permute.xlu0 %3722  ;;  %v3402_v6 = vpack.c.bf16 %v4531_v51, %v4546_v63  ;;  %v3405_v22 = vpack.c.bf16 %v1220_v15, %v1216_v14 }
 0x434   : > { %v4548_v46 = vpack.c.bf16 %v1238_v13, %v1234_v10  ;;  %v1151_v38 = vsel %vm1145_vm15, %v3715_v37, %v3720_v53  ;;  %v3724_v4 = vunpack.i.l.bf16 %v3723_v47  ;;  %v1148_v16 = vsel %vm1145_vm15, %v3709_v19, %v3719_v62 }
 0x435   : > { %v1207_v55 = vsel %vm4526_vm8, %v1151_v38, -1e+30  ;;  %1272 = vrot.lane.b32.xlu0 %v4540_v43, %s3805_s19  ;;  %v1203_v11 = vsel %vm4526_vm8, %v1148_v16, -1e+30  ;;  %v3725_v17 = vunpack.i.h.bf16 %v3723_v47  ;;  %3403 = vmatprep.subr.msk.bf16.mxu1 %vm3401_vm9, %v3402_v6  ;;  %v3417_v53 = vpack.c.bf16 %v4524_v35, %v4517_v36 }
 0x436   : > { %v3728_v28 = vpop.permute.xlu1 %3727  ;;  %1276 = vrot.lane.b32.xlu1 %v4548_v46, %s3805_s19  ;;  %v1223_v37 = vmax.f32 %v4421_v12, %v1207_v55  ;;  %v1176_v9 = vsel %vm1145_vm15, -1e+30, %v3724_v4  ;;  %3406 = vmatpush1.bf16.msk.msra.mxu1 %vm3404_vm10, %v3405_v22  ;;  %v1219_v14 = vmax.f32 %v4415_v8, %v1203_v11 }
 0x437   : > { %v3730_v32 = vunpack.i.h.bf16 %v3728_v28  ;;  %v3729_v19 = vunpack.i.l.bf16 %v3728_v28  ;;  %v3733_v54 = vpop.permute.xlu0 %3732  ;;  %v1152_v12 = vsel %vm1145_vm15, %v3724_v4, %v3725_v17  ;;  %v1208_v34 = vsel %vm4486_vm1, %v1176_v9, -1e+30 }
 0x438   : > { %v3735_v44 = vunpack.i.h.bf16 %v3733_v54  ;;  %v3734_v25 = vunpack.i.l.bf16 %v3733_v54  ;;  %v1239_v15 = vsel %vm3982_vm6, %v1223_v37, 0.0  ;;  %v1235_v24 = vsel %vm3982_vm6, %v1219_v14, 0.0 }
 0x439   : > { %v1177_v50 = vsel %vm1145_vm15, -1e+30, %v3730_v32  ;;  %v1153_v29 = vsel %vm1145_vm15, %v3725_v17, %v3729_v19  ;;  %1317 = vrot.lane.b32.xlu0 %v4540_v43, %s3806_s20  ;;  %v1209_v5 = vsel %vm4492_vm2, %v1152_v12, -1e+30  ;;  %v4611_v38 = vpack.c.bf16 %v1239_v15, %v1235_v24  ;;  %v4828_v24 = vld [vmem:[%s5427_s4 + $0x10] sm:$0xff] }
 0x43a   : > { %v1155_v21 = vsel %vm1145_vm15, %v3730_v32, %v3734_v25  ;;  %v3738_v41 = vpop.permute.xlu1 %3737  ;;  %v1212_v52 = vsel %vm4486_vm1, %v1177_v50, -1e+30  ;;  %v1156_v8 = vsel %vm1145_vm15, %v3734_v25, %v3735_v44  ;;  %v1210_v23 = vsel %vm4499_vm7, %v1153_v29, -1e+30 }
 0x43b   : > { %v3740_v30 = vunpack.i.h.bf16 %v3738_v41  ;;  %v3739_v58 = vunpack.i.l.bf16 %v3738_v41  ;;  %v1213_v27 = vsel %vm4492_vm2, %v1155_v21, -1e+30  ;;  %v1214_v10 = vsel %vm4499_vm7, %v1156_v8, -1e+30  ;;  %1278 = vrot.lane.b32.xlu1 %v4611_v38, %s3805_s19  ;;  %v4808_v21 = vld [vmem:[%s5427_s4] sm:$0xff] }
 0x43c   : > { %v1228_v13 = vmax.f32 %v4448_v61, %v1212_v52  ;;  %v1226_v48 = vmax.f32 %v4445_v45, %v1210_v23  ;;  %v3414_v35 = vpack.c.bf16 %v1223_v37, %v1219_v14  ;;  %v1230_v61 = vmax.f32 %v4459_v39, %v1214_v10  ;;  %v4814_v52 = vld [vmem:[%s5427_s4 + $0x8] sm:$0xff]  ;;  %v4822_v23 = vld [vmem:[%s5427_s4 + $0x18] sm:$0xff] }
 0x43d   : > { %1361 = vrot.lane.b32.xlu0 %v4540_v43, %s3807_s23  ;;  %v1154_v62 = vsel %vm1145_vm15, %v3729_v19, %v3739_v58  ;;  %v1157_v47 = vsel %vm1145_vm15, %v3735_v44, %v3740_v30  ;;  %v1225_v4 = vmax.f32 %v4432_v18, %v1209_v5  ;;  %v1229_v45 = vmax.f32 %v4456_v42, %v1213_v27 }
 0x43e   : > { %v1211_v31 = vsel %vm4526_vm8, %v1154_v62, -1e+30  ;;  %v1215_v36 = vsel %vm4526_vm8, %v1157_v47, -1e+30  ;;  %v1224_v55 = vmax.f32 %v4426_v33, %v1208_v34  ;;  %3415 = vmatprep.subr.msk.bf16.mxu0 %vm3413_vm11, %v3414_v35  ;;  %v3423_v39 = vpack.c.bf16 %v1230_v61, %v1226_v48 }
 0x43f   : > { %v1227_v16 = vmax.f32 %v4472_v56, %v1211_v31  ;;  %v1231_v49 = vmax.f32 %v4475_v40, %v1215_v36  ;;  %3418 = vmatpush1.bf16.msk.msra.mxu0 %vm3416_vm12, %v3417_v53  ;;  %v3408_v18 = vpack.c.bf16 %v1229_v45, %v1225_v4  ;;  %1321 = vrot.lane.b32.xlu1 %v4548_v46, %s3806_s20  ;;  %v1237_v56 = vsel %vm3950_vm4, %v4531_v51, 0.0 }
 0x440   : > { %v3411_v33 = vpack.c.bf16 %v1228_v13, %v1224_v55  ;;  %v1233_v40 = vsel %vm3950_vm4, %v4546_v63, 0.0  ;;  %v1244_v63 = vsel %vm3944_vm3, %v1228_v13, 0.0  ;;  %v1240_v6 = vsel %vm3944_vm3, %v1224_v55, 0.0 }
 0x441   : > { %1405 = vrot.lane.b32.xlu0 %v4540_v43, %s3808_s24  ;;  %v3420_v42 = vpack.c.bf16 %v1231_v49, %v1227_v16  ;;  %3409 = vmatprep.subr.msk.bf16.mxu1 %vm3401_vm9, %v3408_v18  ;;  %v4674_v51 = vpack.c.bf16 %v1237_v56, %v1233_v40  ;;  %v4700_v22 = vpack.c.bf16 %v1244_v63, %v1240_v6  ;;  %v1242_v11 = vsel %vm3958_vm5, %v1226_v48, 0.0 }
 0x442   : > { %3412 = vmatpush1.bf16.msk.msra.mxu1 %vm3404_vm10, %v3411_v33  ;;  %v1246_v17 = vsel %vm3958_vm5, %v1230_v61, 0.0  ;;  %v1243_v0 = vsel %vm3982_vm6, %v1227_v16, 0.0  ;;  %v1247_v32 = vsel %vm3982_vm6, %v1231_v49, 0.0  ;;  %v1245_v7 = vsel %vm3950_vm4, %v1229_v45, 0.0 }
 0x443   : > { %3421 = vmatprep.subr.msk.bf16.mxu0 %vm3413_vm11, %v3420_v42  ;;  %1323 = vrot.lane.b32.xlu1 %v4611_v38, %s3806_s20  ;;  %v4712_v28 = vpack.c.bf16 %v1246_v17, %v1242_v11  ;;  %v1255_v19 = vpack.c.bf16 %v1247_v32, %v1243_v0  ;;  %v1241_v54 = vsel %vm3950_vm4, %v1225_v4, 0.0  ;;  %vm1288_vm3 = vcmask 1039360  }
 0x444   : > { %3424 = vmatpush1.bf16.msk.msra.mxu0 %vm3416_vm12, %v3423_v39  ;;  %v1253_v20 = vpack.c.bf16 %v1245_v7, %v1241_v54  ;;  %v3813_v12 = vmov 1   ;;  %vm1333_vm4 = vcmask 1031168   ;;  %vm1377_vm5 = vcmask 883712  }
 0x445   : > { %1449 = vrot.lane.b32.xlu0 %v4540_v43, %s3809_s25  ;;  %3742 = vset.pattern.permute.xlu1 %v3813_v12  ;;  %vm1421_vm6 = vcmask 875520   ;;  %vm1553_vm15 = vcmask 711680   ;;  %vm1597_vm1 = vcmask 703488   ;;  %vm2981_vm2 = vcmask 1041409  }
 0x446   : > { %3741 = vset.pattern.permute.xlu0 %v3813_v12  ;;  %vm2983_vm7 = vcmask 1042434   ;;  %vm2985_vm8 = vcmask 1043459   ;;  %vm3816_vm9 = vmmov 0   ;;  %vm3104_vm10 = vcmask 257024  }
 0x447   : > { %1365 = vrot.lane.b32.xlu1 %v4548_v46, %s3807_s23 }
 0x449   : > { %1274 = vrot.lane.b32.xlu0 %v4674_v51, %s3805_s19 }
 0x44b   : > { %1367 = vrot.lane.b32.xlu1 %v4611_v38, %s3807_s23 }
 0x44d   : > { %1319 = vrot.lane.b32.xlu0 %v4674_v51, %s3806_s20 }
 0x44f   : > { %1409 = vrot.lane.b32.xlu1 %v4548_v46, %s3808_s24 }
 0x451   : > { %1363 = vrot.lane.b32.xlu0 %v4674_v51, %s3807_s23 }
 0x453   : > { %1411 = vrot.lane.b32.xlu1 %v4611_v38, %s3808_s24 }
 0x455   : > { %1407 = vrot.lane.b32.xlu0 %v4674_v51, %s3808_s24 }
 0x457   : > { %1453 = vrot.lane.b32.xlu1 %v4548_v46, %s3809_s25 }
 0x459   : > { %1451 = vrot.lane.b32.xlu0 %v4674_v51, %s3809_s25 }
 0x45b   : > { %1455 = vrot.lane.b32.xlu1 %v4611_v38, %s3809_s25 }
 0x45d   : > { %1280 = vrot.lane.b32.xlu0 %v4700_v22, %s3805_s19 }
 0x45f   : > { %1284 = vrot.lane.b32.xlu1 %v4712_v28, %s3805_s19 }
 0x461   : > { %1325 = vrot.lane.b32.xlu0 %v4700_v22, %s3806_s20 }
 0x463   : > { %1286 = vrot.lane.b32.xlu1 %v1255_v19, %s3805_s19 }
 0x465   : > { %1369 = vrot.lane.b32.xlu0 %v4700_v22, %s3807_s23 }
 0x467   : > { %1497 = vrot.lane.b32.xlu1 %v4548_v46, %s3810_s26 }
 0x469   : > { %1413 = vrot.lane.b32.xlu0 %v4700_v22, %s3808_s24 }
 0x46b   : > { %1329 = vrot.lane.b32.xlu1 %v4712_v28, %s3806_s20 }
 0x46d   : > { %1282 = vrot.lane.b32.xlu0 %v1253_v20, %s3805_s19 }
 0x46f   : > { %1331 = vrot.lane.b32.xlu1 %v1255_v19, %s3806_s20 }
 0x471   : > { %1457 = vrot.lane.b32.xlu0 %v4700_v22, %s3809_s25 }
 0x473   : > { %1499 = vrot.lane.b32.xlu1 %v4611_v38, %s3810_s26 }
 0x475   : > { %1327 = vrot.lane.b32.xlu0 %v1253_v20, %s3806_s20 }
 0x477   : > { %1373 = vrot.lane.b32.xlu1 %v4712_v28, %s3807_s23 }
 0x479   : > { %1495 = vrot.lane.b32.xlu0 %v4674_v51, %s3810_s26 }
 0x47b   : > { %1375 = vrot.lane.b32.xlu1 %v1255_v19, %s3807_s23 }
 0x47d   : > { %1371 = vrot.lane.b32.xlu0 %v1253_v20, %s3807_s23 }
 0x47f   : > { %1417 = vrot.lane.b32.xlu1 %v4712_v28, %s3808_s24 }
 0x481   : > { %1493 = vrot.lane.b32.xlu0 %v4540_v43, %s3810_s26 }
 0x483   : > { %1419 = vrot.lane.b32.xlu1 %v1255_v19, %s3808_s24 }
 0x485   : > { %1415 = vrot.lane.b32.xlu0 %v1253_v20, %s3808_s24 }
 0x487   : > { %1541 = vrot.lane.b32.xlu1 %v4548_v46, %s3811_s27 }
 0x489   : > { %1501 = vrot.lane.b32.xlu0 %v4700_v22, %s3810_s26 }
 0x48b   : > { %1461 = vrot.lane.b32.xlu1 %v4712_v28, %s3809_s25 }
 0x48d   : > { %1459 = vrot.lane.b32.xlu0 %v1253_v20, %s3809_s25 }
 0x48f   : > { %1463 = vrot.lane.b32.xlu1 %v1255_v19, %s3809_s25 }
 0x491   : > { %1539 = vrot.lane.b32.xlu0 %v4674_v51, %s3811_s27 }
 0x493   : > { %1543 = vrot.lane.b32.xlu1 %v4611_v38, %s3811_s27 }
 0x495   : > { %1503 = vrot.lane.b32.xlu0 %v1253_v20, %s3810_s26 }
 0x497   : > { %1505 = vrot.lane.b32.xlu1 %v4712_v28, %s3810_s26 }
 0x499   : > { %1537 = vrot.lane.b32.xlu0 %v4540_v43, %s3811_s27 }
 0x49b   : > { %1507 = vrot.lane.b32.xlu1 %v1255_v19, %s3810_s26 }
 0x49d   : > { %1547 = vrot.lane.b32.xlu0 %v1253_v20, %s3811_s27 }
 0x49f   : > { %1549 = vrot.lane.b32.xlu1 %v4712_v28, %s3811_s27 }
 0x4a1   : > { %1545 = vrot.lane.b32.xlu0 %v4700_v22, %s3811_s27 }
 0x4a3   : > { %1551 = vrot.lane.b32.xlu1 %v1255_v19, %s3811_s27 }
 0x4a5   : > { %1583 = vrot.lane.b32.xlu0 %v4674_v51, %s3812_s30 }
 0x4a7   : > { %v1273_v37 = vpop.permute.xlu0 %1272  ;;  %1585 = vrot.lane.b32.xlu1 %v4548_v46, %s3812_s30 }
 0x4a8   : > { %v1277_v44 = vpop.permute.xlu1 %1276 }
 0x4a9   : > { %1581 = vrot.lane.b32.xlu0 %v4540_v43, %s3812_s30 }
 0x4ab   : > { %v4785_v9 = vpop.permute.xlu0 %1317  ;;  %1587 = vrot.lane.b32.xlu1 %v4611_v38, %s3812_s30 }
 0x4ad   : > { %1591 = vrot.lane.b32.xlu0 %v1253_v20, %s3812_s30  ;;  %v1279_v14 = vpop.permute.xlu1 %1278 }
 0x4ae   : > { %3425 = vmatprep.subr.msk.bf16.mxu0 %vm1288_vm3, %v1279_v14  ;;  %v1291_v43 = vsel %vm1288_vm3, %v1277_v44, %v1279_v14 }
 0x4af   : > { %v4790_v25 = vpop.permute.xlu0 %1361  ;;  %1593 = vrot.lane.b32.xlu1 %v4712_v28, %s3812_s30  ;;  %1860 = vmatpush1.bf16.msra.mxu0 %v1291_v43 }
 0x4b1   : > { %1589 = vrot.lane.b32.xlu0 %v4700_v22, %s3812_s30  ;;  %v1322_v46 = vpop.permute.xlu1 %1321 }
 0x4b3   : > { %v4798_v50 = vpop.permute.xlu0 %1405  ;;  %1595 = vrot.lane.b32.xlu1 %v1255_v19, %s3812_s30 }
 0x4b5   : > { %1698 = vperm.xlu0 %3741, %v4808_v21   ;;  %v1324_v41 = vpop.permute.xlu1 %1323 }
 0x4b6   : > { %v1336_v55 = vsel %vm1333_vm4, %v1322_v46, %v1324_v41 }
 0x4b7   : > { %v4803_v29 = vpop.permute.xlu0 %1449  ;;  %1702 = vperm.xlu1 %3742, %v4814_v52  }
 0x4b9   : > { %1710 = vperm.xlu0 %3741, %v4822_v23   ;;  %v1366_v30 = vpop.permute.xlu1 %1365 }
 0x4bb   : > { %v1275_v34 = vpop.permute.xlu0 %1274  ;;  %1706 = vperm.xlu1 %3742, %v4828_v24  }
 0x4bc   : > { %v1290_v8 = vsel %vm1288_vm3, %v1275_v34, %v1277_v44  ;;  %v1289_v15 = vsel %vm1288_vm3, %v1273_v37, %v1275_v34 }
 0x4bd   : > { %1753 = vmatprep.subr.bf16.mxu1 %v1290_v8  ;;  %v1368_v5 = vpop.permute.xlu1 %1367 }
 0x4be   : > { %1754 = vmatpush1.bf16.msra.mxu1 %v1289_v15  ;;  %v1380_v28 = vsel %vm1377_vm5, %v1366_v30, %v1368_v5 }
 0x4bf   : > { %v1320_v58 = vpop.permute.xlu0 %1319 }
 0x4c0   : > { %v1335_v39 = vsel %vm1333_vm4, %v1320_v58, %v1322_v46  ;;  %v1334_v51 = vsel %vm1333_vm4, %v4785_v9, %v1320_v58 }
 0x4c1   : > { %v4831_v10 = vpop.permute.xlu1 %1409 }
 0x4c3   : > { %v1364_v27 = vpop.permute.xlu0 %1363 }
 0x4c4   : > { %v1379_v0 = vsel %vm1377_vm5, %v1364_v27, %v1366_v30  ;;  %v1378_v7 = vsel %vm1377_vm5, %v4790_v25, %v1364_v27 }
 0x4c5   : > { %v4835_v13 = vpop.permute.xlu1 %1411 }
 0x4c6   : > { %v1424_v46 = vsel %vm1421_vm6, %v4831_v10, %v4835_v13 }
 0x4c7   : > { %v4833_v53 = vpop.permute.xlu0 %1407 }
 0x4c8   : > { %v1423_v44 = vsel %vm1421_vm6, %v4833_v53, %v4831_v10  ;;  %v1422_v43 = vsel %vm1421_vm6, %v4798_v50, %v4833_v53 }
 0x4c9   : > { %v4839_v47 = vpop.permute.xlu1 %1453 }
 0x4cb   : > { %v4837_v62 = vpop.permute.xlu0 %1451 }
 0x4cc   : > { %v1467_v50 = vsel %vm1465_vm13, %v4837_v62, %v4839_v47 }
 0x4cd   : > { %v4841_v48 = vpop.permute.xlu1 %1455 }
 0x4ce   : > { %v1468_v27 = vsel %vm1465_vm13, %v4839_v47, %v4841_v48 }
 0x4cf   : > { %v1281_v38 = vpop.permute.xlu0 %1280 }
 0x4d1   : > { %v1285_v36 = vpop.permute.xlu1 %1284 }
 0x4d3   : > { %v1326_v31 = vpop.permute.xlu0 %1325 }
 0x4d5   : > { %v1287_v61 = vpop.permute.xlu1 %1286 }
 0x4d6   : > { %3426 = vmatprep.subr.msk.bf16.mxu0 %vm1288_vm3, %v1287_v61  ;;  %v1294_v4 = vsel %vm1288_vm3, %v1285_v36, %v1287_v61 }
 0x4d7   : > { %v1370_v35 = vpop.permute.xlu0 %1369  ;;  %1862 = vmatpush1.bf16.msra.mxu0 %v1294_v4 }
 0x4d8   : > { %3427 = vmatprep.subr.msk.bf16.mxu0 %vm1333_vm4, %v1324_v41 }
 0x4d9   : > { %v4846_v16 = vpop.permute.xlu1 %1497 }
 0x4db   : > { %v1414_v45 = vpop.permute.xlu0 %1413  ;;  %1864 = vmatpush1.bf16.msra.mxu0 %v1336_v55 }
 0x4dd   : > { %v1330_v42 = vpop.permute.xlu1 %1329 }
 0x4df   : > { %v1283_v49 = vpop.permute.xlu0 %1282 }
 0x4e0   : > { %v1293_v18 = vsel %vm1288_vm3, %v1283_v49, %v1285_v36  ;;  %v1292_v33 = vsel %vm1288_vm3, %v1281_v38, %v1283_v49 }
 0x4e1   : > { %1755 = vmatprep.subr.bf16.mxu1 %v1293_v18  ;;  %v1332_v40 = vpop.permute.xlu1 %1331 }
 0x4e2   : > { %1756 = vmatpush1.bf16.msra.mxu1 %v1292_v33  ;;  %3428 = vmatprep.subr.msk.bf16.mxu0 %vm1333_vm4, %v1332_v40  ;;  %v1339_v63 = vsel %vm1333_vm4, %v1330_v42, %v1332_v40 }
 0x4e3   : > { %1757 = vmatprep.subr.bf16.mxu1 %v1335_v39  ;;  %v4852_v56 = vpop.permute.xlu0 %1457  ;;  %1866 = vmatpush1.bf16.msra.mxu0 %v1339_v63 }
 0x4e4   : > { %3429 = vmatprep.subr.msk.bf16.mxu0 %vm1377_vm5, %v1368_v5  ;;  %v1466_v5 = vsel %vm1465_vm13, %v4803_v29, %v4837_v62 }
 0x4e5   : > { %v4861_v17 = vpop.permute.xlu1 %1499 }
 0x4e6   : > { %1758 = vmatpush1.bf16.msra.mxu1 %v1334_v51  ;;  %v1512_v61 = vsel %vm1509_vm14, %v4846_v16, %v4861_v17 }
 0x4e7   : > { %v1328_v6 = vpop.permute.xlu0 %1327  ;;  %1868 = vmatpush1.bf16.msra.mxu0 %v1380_v28 }
 0x4e8   : > { %v1338_v22 = vsel %vm1333_vm4, %v1328_v6, %v1330_v42  ;;  %v1337_v11 = vsel %vm1333_vm4, %v1326_v31, %v1328_v6 }
 0x4e9   : > { %1759 = vmatprep.subr.bf16.mxu1 %v1338_v22  ;;  %v1374_v19 = vpop.permute.xlu1 %1373  ;;  %v3752_v22 = vld [vmem:[%s5426_s3 + $0x4] ss:$36 sps:$4 sm:$0xff]  }
 0x4ea   : > { %1760 = vmatpush1.bf16.msra.mxu1 %v1337_v11 }
 0x4eb   : > { %1761 = vmatprep.subr.bf16.mxu1 %v1379_v0  ;;  %v1496_v32 = vpop.permute.xlu0 %1495 }
 0x4ec   : > { %v1511_v29 = vsel %vm1509_vm14, %v1496_v32, %v4846_v16 }
 0x4ed   : > { %v1376_v37 = vpop.permute.xlu1 %1375 }
 0x4ee   : > { %1762 = vmatpush1.bf16.msra.mxu1 %v1378_v7  ;;  %3430 = vmatprep.subr.msk.bf16.mxu0 %vm1377_vm5, %v1376_v37  ;;  %v1383_v9 = vsel %vm1377_vm5, %v1374_v19, %v1376_v37 }
 0x4ef   : > { %v1372_v54 = vpop.permute.xlu0 %1371  ;;  %1870 = vmatpush1.bf16.msra.mxu0 %v1383_v9 }
 0x4f0   : > { %v1382_v20 = vsel %vm1377_vm5, %v1372_v54, %v1374_v19  ;;  %v1381_v2 = vsel %vm1377_vm5, %v1370_v35, %v1372_v54  ;;  %3431 = vmatprep.subr.msk.bf16.mxu0 %vm1421_vm6, %v4835_v13 }
 0x4f1   : > { %1763 = vmatprep.subr.bf16.mxu1 %v1382_v20  ;;  %v1418_v14 = vpop.permute.xlu1 %1417 }
 0x4f2   : > { %1764 = vmatpush1.bf16.msra.mxu1 %v1381_v2  ;;  %v3757_v2 = vld [vmem:[%s5426_s3 + $0x4c] ss:$36 sps:$4 sm:$0xff]  }
 0x4f3   : > { %1765 = vmatprep.subr.bf16.mxu1 %v1423_v44  ;;  %v1494_v25 = vpop.permute.xlu0 %1493  ;;  %1872 = vmatpush1.bf16.msra.mxu0 %v1424_v46  ;;  %v3758_v46 = vld [vmem:[%s5426_s3 + $0xc] ss:$36 sps:$4 sm:$0xff]  }
 0x4f5   : > { %v1420_v8 = vpop.permute.xlu1 %1419 }
 0x4f6   : > { %1766 = vmatpush1.bf16.msra.mxu1 %v1422_v43  ;;  %3432 = vmatprep.subr.msk.bf16.mxu0 %vm1421_vm6, %v1420_v8  ;;  %v1427_v15 = vsel %vm1421_vm6, %v1418_v14, %v1420_v8 }
 0x4f7   : > { %v1416_v12 = vpop.permute.xlu0 %1415  ;;  %1874 = vmatpush1.bf16.msra.mxu0 %v1427_v15  ;;  %v293_v15 = vld [vmem:[%s5428_s5] ss:$8 sm:$0xf] }
 0x4f8   : > { %v1426_v41 = vsel %vm1421_vm6, %v1416_v12, %v1418_v14  ;;  %v1425_v34 = vsel %vm1421_vm6, %v1414_v45, %v1416_v12  ;;  %3433 = vmatprep.subr.msk.bf16.mxu0 %vm1465_vm13, %v4841_v48  ;;  %v1510_v48 = vsel %vm1509_vm14, %v1494_v25, %v1496_v32 }
 0x4f9   : > { %1767 = vmatprep.subr.bf16.mxu1 %v1426_v41  ;;  %v1542_v58 = vpop.permute.xlu1 %1541 }
 0x4fa   : > { %1768 = vmatpush1.bf16.msra.mxu1 %v1425_v34  ;;  %v3759_v34 = vld [vmem:[%s5426_s3 + $0x54] ss:$36 sps:$4 sm:$0xff]  }
 0x4fb   : > { %1769 = vmatprep.subr.bf16.mxu1 %v1467_v50  ;;  %v1502_v30 = vpop.permute.xlu0 %1501  ;;  %1876 = vmatpush1.bf16.msra.mxu0 %v1468_v27 }
 0x4fd   : > { %v1462_v53 = vpop.permute.xlu1 %1461 }
 0x4fe   : > { %1770 = vmatpush1.bf16.msra.mxu1 %v1466_v5 }
 0x4ff   : > { %v1460_v10 = vpop.permute.xlu0 %1459 }
 0x500   : > { %v1469_v13 = vsel %vm1465_vm13, %v4852_v56, %v1460_v10  ;;  %v1470_v38 = vsel %vm1465_vm13, %v1460_v10, %v1462_v53 }
 0x501   : > { %1771 = vmatprep.subr.bf16.mxu1 %v1470_v38  ;;  %v1464_v62 = vpop.permute.xlu1 %1463 }
 0x502   : > { %1772 = vmatpush1.bf16.msra.mxu1 %v1469_v13  ;;  %3434 = vmatprep.subr.msk.bf16.mxu0 %vm1465_vm13, %v1464_v62  ;;  %v1471_v47 = vsel %vm1465_vm13, %v1462_v53, %v1464_v62  ;;  %v1981_v13 = vrot.slane %v293_v15, %v3934_v57 }
 0x503   : > { %v1540_v31 = vpop.permute.xlu0 %1539  ;;  %1773 = vmatprep.subr.bf16.mxu1 %v1511_v29  ;;  %1878 = vmatpush1.bf16.msra.mxu0 %v1471_v47  ;;  %v1985_v47 = vrot.slane %v293_v15, %v3937_v59 }
 0x504   : > { %3435 = vmatprep.subr.msk.bf16.mxu0 %vm1509_vm14, %v4861_v17  ;;  %v1555_v33 = vsel %vm1553_vm15, %v1540_v31, %v1542_v58  ;;  %v3755_v17 = vld [vmem:[%s5426_s3 + $0x50] ss:$36 sps:$4 sm:$0xff]  }
 0x505   : > { %v1544_v35 = vpop.permute.xlu1 %1543 }
 0x506   : > { %1774 = vmatpush1.bf16.msra.mxu1 %v1510_v48  ;;  %v1556_v6 = vsel %vm1553_vm15, %v1542_v58, %v1544_v35 }
 0x507   : > { %v1504_v36 = vpop.permute.xlu0 %1503  ;;  %1880 = vmatpush1.bf16.msra.mxu0 %v1512_v61  ;;  %v4959_v61 = vrot.slane %v293_v15, %v3939_v60 }
 0x508   : > { %v1513_v49 = vsel %vm1509_vm14, %v1502_v30, %v1504_v36 }
 0x509   : > { %v1506_v45 = vpop.permute.xlu1 %1505 }
 0x50a   : > { %v1514_v55 = vsel %vm1509_vm14, %v1504_v36, %v1506_v45 }
 0x50b   : > { %v1538_v4 = vpop.permute.xlu0 %1537  ;;  %1775 = vmatprep.subr.bf16.mxu1 %v1514_v55 }
 0x50c   : > { %1776 = vmatpush1.bf16.msra.mxu1 %v1513_v49  ;;  %v1554_v16 = vsel %vm1553_vm15, %v1538_v4, %v1540_v31 }
 0x50d   : > { %v1508_v42 = vpop.permute.xlu1 %1507  ;;  %1777 = vmatprep.subr.bf16.mxu1 %v1555_v33 }
 0x50e   : > { %v1515_v39 = vsel %vm1509_vm14, %v1506_v45, %v1508_v42  ;;  %3436 = vmatprep.subr.msk.bf16.mxu0 %vm1509_vm14, %v1508_v42 }
 0x50f   : > { %v1548_v18 = vpop.permute.xlu0 %1547  ;;  %1882 = vmatpush1.bf16.msra.mxu0 %v1515_v39 }
 0x510   : > { %1778 = vmatpush1.bf16.msra.mxu1 %v1554_v16  ;;  %3437 = vmatprep.subr.msk.bf16.mxu0 %vm1553_vm15, %v1544_v35 }
 0x511   : > { %v1550_v40 = vpop.permute.xlu1 %1549 }
 0x512   : > { %v1558_v63 = vsel %vm1553_vm15, %v1548_v18, %v1550_v40 }
 0x513   : > { %v1546_v56 = vpop.permute.xlu0 %1545  ;;  %1779 = vmatprep.subr.bf16.mxu1 %v1558_v63  ;;  %1884 = vmatpush1.bf16.msra.mxu0 %v1556_v6 }
 0x514   : > { %v1557_v51 = vsel %vm1553_vm15, %v1546_v56, %v1548_v18  ;;  %v4962_v18 = vrot.slane %v293_v15, %v3948_v1 }
 0x515   : > { %1780 = vmatpush1.bf16.msra.mxu1 %v1557_v51  ;;  %v1552_v28 = vpop.permute.xlu1 %1551 }
 0x516   : > { %v1559_v0 = vsel %vm1553_vm15, %v1550_v40, %v1552_v28  ;;  %3438 = vmatprep.subr.msk.bf16.mxu0 %vm1553_vm15, %v1552_v28 }
 0x517   : > { %v1584_v11 = vpop.permute.xlu0 %1583  ;;  %1886 = vmatpush1.bf16.msra.mxu0 %v1559_v0 }
 0x518   : > { %1782 = vmatmul.mubr.bf16.vlgmr.msra.gmra.mrb[8].mxu1 %v3752_v22 }
 0x519   : > { %1791 = vmatprep.mubr.bf16.mxu1 %v3755_v17  ;;  %v1586_v19 = vpop.permute.xlu1 %1585 }
 0x51a   : > { %1888 = vmatmul.mubr.bf16.vlgmr.msra.gmra.mrb[12].mxu0 %v3752_v22  ;;  %v1599_v54 = vsel %vm1597_vm1, %v1584_v11, %v1586_v19 }
 0x51b   : > { %v1582_v32 = vpop.permute.xlu0 %1581  ;;  %1802 = vmatprep.subr.bf16.mxu1 %v1599_v54  ;;  %1897 = vmatprep.mubr.bf16.mxu0 %v3755_v17 }
 0x51c   : > { %v1598_v7 = vsel %vm1597_vm1, %v1582_v32, %v1584_v11 }
 0x51d   : > { %1803 = vmatpush1.bf16.msra.mxu1 %v1598_v7  ;;  %v1588_v37 = vpop.permute.xlu1 %1587 }
 0x51e   : > { %v1600_v9 = vsel %vm1597_vm1, %v1586_v19, %v1588_v37  ;;  %3439 = vmatprep.subr.msk.bf16.mxu0 %vm1597_vm1, %v1588_v37 }
 0x51f   : > { %v1592_v20 = vpop.permute.xlu0 %1591  ;;  %1909 = vmatpush1.bf16.msra.mxu0 %v1600_v9 }
 0x520   : > { %1792 = vmatmul.mubr.bf16.gmra.mrb[12].mxu1 %v3757_v2 }
 0x521   : > { %1834 = vmatprep.mubr.bf16.mxu1 %v3798_v3  ;;  %v1594_v25 = vpop.permute.xlu1 %1593 }
 0x522   : > { %1898 = vmatmul.mubr.bf16.gmra.mrb[16].mxu0 %v3757_v2  ;;  %v1602_v43 = vsel %vm1597_vm1, %v1592_v20, %v1594_v25 }
 0x523   : > { %v1590_v44 = vpop.permute.xlu0 %1589  ;;  %1804 = vmatprep.subr.bf16.mxu1 %v1602_v43  ;;  %1940 = vmatprep.mubr.bf16.mxu0 %v3798_v3 }
 0x524   : > { %v1601_v14 = vsel %vm1597_vm1, %v1590_v44, %v1592_v20 }
 0x525   : > { %1805 = vmatpush1.bf16.msra.mxu1 %v1601_v14  ;;  %v1596_v12 = vpop.permute.xlu1 %1595 }
 0x526   : > { %v1603_v41 = vsel %vm1597_vm1, %v1594_v25, %v1596_v12  ;;  %3440 = vmatprep.subr.msk.bf16.mxu0 %vm1597_vm1, %v1596_v12 }
 0x527   : > { %1911 = vmatpush1.bf16.msra.mxu0 %v1603_v41 }
 0x528   : > { %3370 = vmatmul.mubr.msk.bf16.vlgmr.msra.gmra.mrb[8].mxu1 %vm380_vm0, %v3758_v46 }
 0x529   : > { %1844 = vmatprep.mubr.bf16.mxu1 %v3798_v3 }
 0x52a   : > { %3372 = vmatmul.mubr.msk.bf16.vlgmr.msra.gmra.mrb[12].mxu0 %vm380_vm0, %v3758_v46 }
 0x52b   : > { %1950 = vmatprep.mubr.bf16.mxu0 %v3798_v3 }
 0x530   : > { %3371 = vmatmul.mubr.msk.bf16.gmra.mrb[12].mxu1 %vm380_vm0, %v3759_v34 }
 0x532   : > { %3373 = vmatmul.mubr.msk.bf16.gmra.mrb[16].mxu0 %vm380_vm0, %v3759_v34 }
 0x534   : > { %v1699_v8 = vpop.permute.xlu0 %1698 }
 0x536   : > { %v1703_v5 = vpop.permute.xlu1 %1702 }
 0x538   : > { %v1711_v2 = vpop.permute.xlu0 %1710 }
 0x53a   : > { %v1707_v22 = vpop.permute.xlu1 %1706 }
 0x5fb   : > { %v1836_v50 = vpop.f32.mrb[8].mxu1 }
 0x5fc   : > { %v3488_v30 = vadd.f32 %v1836_v50, %v1699_v8  ;;  %v1838_v58 = vpop.f32.mrb[9].mxu1 }
 0x5fd   : > { %v3489_v27 = vadd.f32 %v1838_v58, %v1699_v8  ;;  %v1840_v10 = vpop.f32.mrb[10].mxu1  ;;  %v1942_v38 = vpop.f32.mrb[12].mxu0 }
 0x5fe   : > { %v1961_v53 = vmax.f32 %v3488_v30, 0.0  ;;  %v3490_v31 = vadd.f32 %v1840_v10, %v1703_v5  ;;  %v1842_v29 = vpop.f32.mrb[11].mxu1  ;;  %v3496_v48 = vadd.f32 %v1942_v38, %v1699_v8  ;;  %v1944_v36 = vpop.f32.mrb[13].mxu0 }
 0x5ff   : > { %v1962_v62 = vmax.f32 %v3489_v27, 0.0  ;;  %v3491_v35 = vadd.f32 %v1842_v29, %v1703_v5  ;;  %v3497_v45 = vadd.f32 %v1944_v36, %v1699_v8  ;;  %v1946_v55 = vpop.f32.mrb[14].mxu0 }
 0x600   : > { %v1965_v4 = vmax.f32 %v3490_v31, 0.0  ;;  %v1963_v49 = vmax.f32 %v3496_v48, 0.0  ;;  %v3498_v33 = vadd.f32 %v1946_v55, %v1703_v5  ;;  %v1948_v39 = vpop.f32.mrb[15].mxu0  ;;  %v1998_v16 = vmul.f32 %v1981_v13, %v1961_v53 }
 0x601   : > { %v1966_v42 = vmax.f32 %v3491_v35, 0.0  ;;  %v1964_v40 = vmax.f32 %v3497_v45, 0.0  ;;  %v3499_v51 = vadd.f32 %v1948_v39, %v1703_v5  ;;  %v1999_v63 = vmul.f32 %v1985_v47, %v1962_v62 }
 0x602   : > { %v2002_v56 = vmul.f32 %v1981_v13, %v1965_v4  ;;  %v1967_v6 = vmax.f32 %v3498_v33, 0.0  ;;  %v2000_v7 = vmul.f32 %v4959_v61, %v1963_v49 }
 0x603   : > { %v2003_v11 = vmul.f32 %v1985_v47, %v1966_v42  ;;  %v1846_v17 = vpop.f32.mrb[12].mxu1  ;;  %v1968_v0 = vmax.f32 %v3499_v51, 0.0  ;;  %v2001_v44 = vmul.f32 %v4962_v18, %v1964_v40 }
 0x604   : > { %v4964_v28 = vpack.c.bf16 %v2002_v56, %v1998_v16  ;;  %v3492_v32 = vadd.f32 %v1846_v17, %v1707_v22  ;;  %v1848_v19 = vpop.f32.mrb[13].mxu1  ;;  %v2004_v54 = vmul.f32 %v4959_v61, %v1967_v6 }
 0x605   : > { %v4968_v20 = vpack.c.bf16 %v2003_v11, %v1999_v63  ;;  %v3493_v37 = vadd.f32 %v1848_v19, %v1707_v22  ;;  %v1850_v9 = vpop.f32.mrb[14].mxu1  ;;  %v2005_v25 = vmul.f32 %v4962_v18, %v1968_v0  ;;  %v1952_v43 = vpop.f32.mrb[16].mxu0 }
 0x606   : > { %v1969_v14 = vmax.f32 %v3492_v32, 0.0  ;;  %v3494_v46 = vadd.f32 %v1850_v9, %v1711_v2  ;;  %v1852_v12 = vpop.f32.mrb[15].mxu1  ;;  %2038 = vrot.lane.b32.xlu1 %v4964_v28, %s3805_s19  ;;  %v4974_v41 = vpack.c.bf16 %v2004_v54, %v2000_v7  ;;  %v3500_v8 = vadd.f32 %v1952_v43, %v1707_v22  ;;  %v1954_v15 = vpop.f32.mrb[17].mxu0 }
 0x607   : > { %v1970_v34 = vmax.f32 %v3493_v37, 0.0  ;;  %v3495_v50 = vadd.f32 %v1852_v12, %v1711_v2  ;;  %2498 = vmatprep.subr.bf16.mxu1 %v4968_v20  ;;  %v4977_v30 = vpack.c.bf16 %v2005_v25, %v2001_v44  ;;  %v3501_v5 = vadd.f32 %v1954_v15, %v1707_v22  ;;  %v1956_v27 = vpop.f32.mrb[18].mxu0 }
 0x608   : > { %v1973_v58 = vmax.f32 %v3494_v46, 0.0  ;;  %2499 = vmatpush1.bf16.msra.mxu1 %v4964_v28  ;;  %v1971_v10 = vmax.f32 %v3500_v8, 0.0  ;;  %v3502_v38 = vadd.f32 %v1956_v27, %v1711_v2  ;;  %v1958_v31 = vpop.f32.mrb[19].mxu0  ;;  %2042 = vrot.lane.b32.xlu0 %v4974_v41, %s3805_s19  ;;  %v2006_v29 = vmul.f32 %v1981_v13, %v1969_v14 }
 0x609   : > { %v1974_v53 = vmax.f32 %v3495_v50, 0.0  ;;  %v1972_v48 = vmax.f32 %v3501_v5, 0.0  ;;  %v3503_v36 = vadd.f32 %v1958_v31, %v1711_v2  ;;  %2604 = vmatprep.subr.bf16.mxu0 %v4977_v30  ;;  %v2007_v35 = vmul.f32 %v1985_v47, %v1970_v34 }
 0x60a   : > { %v2010_v62 = vmul.f32 %v1981_v13, %v1973_v58  ;;  %2080 = vrot.lane.b32.xlu1 %v4964_v28, %s3806_s20  ;;  %v1975_v45 = vmax.f32 %v3502_v38, 0.0  ;;  %2605 = vmatpush1.bf16.msra.mxu0 %v4974_v41  ;;  %v2008_v33 = vmul.f32 %v4959_v61, %v1971_v10  ;;  %v3814_v15 = vmov 2  }
 0x60b   : > { %v2011_v4 = vmul.f32 %v1985_v47, %v1974_v53  ;;  %v1976_v49 = vmax.f32 %v3503_v36, 0.0  ;;  %v2009_v39 = vmul.f32 %v4962_v18, %v1972_v48  ;;  %3743 = vset.pattern.permute.xlu1 %v3814_v15  ;;  %3744 = vset.pattern.permute.xlu0 %v3814_v15  ;;  %v5205_v15 = vld [vmem:[%s5426_s3 + $0x5c] ss:$36 sps:$4 sm:$0xff]  }
 0x60c   : > { %v4986_v55 = vpack.c.bf16 %v2010_v62, %v2006_v29  ;;  %v2012_v13 = vmul.f32 %v4959_v61, %v1975_v45  ;;  %2084 = vrot.lane.b32.xlu0 %v4974_v41, %s3806_s20  ;;  %v3762_v61 = vld [vmem:[%s5426_s3 + $0x14] ss:$36 sps:$4 sm:$0xff]  }
 0x60d   : > { %v2019_v42 = vpack.c.bf16 %v2011_v4, %v2007_v35  ;;  %v2013_v16 = vmul.f32 %v4962_v18, %v1976_v49  ;;  %2530 = vmatprep.mubr.bf16.mxu1 %v3762_v61  ;;  %2636 = vmatprep.mubr.bf16.mxu0 %v3762_v61 }
 0x60e   : > { %2122 = vrot.lane.b32.xlu1 %v4964_v28, %s3807_s23  ;;  %v2020_v47 = vpack.c.bf16 %v2012_v13, %v2008_v33 }
 0x60f   : > { %2500 = vmatprep.subr.bf16.mxu1 %v2019_v42  ;;  %v4996_v56 = vpack.c.bf16 %v2013_v16, %v2009_v39 }
 0x610   : > { %2501 = vmatpush1.bf16.msra.mxu1 %v4986_v55  ;;  %2126 = vrot.lane.b32.xlu0 %v4974_v41, %s3807_s23 }
 0x611   : > { %2606 = vmatprep.subr.bf16.mxu0 %v4996_v56 }
 0x612   : > { %2164 = vrot.lane.b32.xlu1 %v4964_v28, %s3808_s24  ;;  %2607 = vmatpush1.bf16.msra.mxu0 %v2020_v47 }
 0x614   : > { %2168 = vrot.lane.b32.xlu0 %v4974_v41, %s3808_s24 }
 0x616   : > { %2040 = vrot.lane.b32.xlu1 %v4968_v20, %s3805_s19 }
 0x618   : > { %2046 = vrot.lane.b32.xlu0 %v4986_v55, %s3805_s19 }
 0x61a   : > { %2082 = vrot.lane.b32.xlu1 %v4968_v20, %s3806_s20 }
 0x61c   : > { %2088 = vrot.lane.b32.xlu0 %v4986_v55, %s3806_s20 }
 0x61e   : > { %2124 = vrot.lane.b32.xlu1 %v4968_v20, %s3807_s23 }
 0x620   : > { %2130 = vrot.lane.b32.xlu0 %v4986_v55, %s3807_s23 }
 0x622   : > { %2166 = vrot.lane.b32.xlu1 %v4968_v20, %s3808_s24 }
 0x624   : > { %2172 = vrot.lane.b32.xlu0 %v4986_v55, %s3808_s24 }
 0x626   : > { %2050 = vrot.lane.b32.xlu1 %v2020_v47, %s3805_s19 }
 0x628   : > { %2048 = vrot.lane.b32.xlu0 %v2019_v42, %s3805_s19 }
 0x62a   : > { %2208 = vrot.lane.b32.xlu1 %v4968_v20, %s3809_s25 }
 0x62c   : > { %2210 = vrot.lane.b32.xlu0 %v4974_v41, %s3809_s25 }
 0x62e   : > { %2092 = vrot.lane.b32.xlu1 %v2020_v47, %s3806_s20 }
 0x630   : > { %2090 = vrot.lane.b32.xlu0 %v2019_v42, %s3806_s20 }
 0x632   : > { %2134 = vrot.lane.b32.xlu1 %v2020_v47, %s3807_s23 }
 0x634   : > { %2214 = vrot.lane.b32.xlu0 %v4986_v55, %s3809_s25 }
 0x636   : > { %2176 = vrot.lane.b32.xlu1 %v2020_v47, %s3808_s24 }
 0x638   : > { %2132 = vrot.lane.b32.xlu0 %v2019_v42, %s3807_s23 }
 0x63a   : > { %2206 = vrot.lane.b32.xlu1 %v4964_v28, %s3809_s25 }
 0x63c   : > { %2252 = vrot.lane.b32.xlu0 %v4974_v41, %s3810_s26 }
 0x63e   : > { %2218 = vrot.lane.b32.xlu1 %v2020_v47, %s3809_s25 }
 0x640   : > { %2174 = vrot.lane.b32.xlu0 %v2019_v42, %s3808_s24 }
 0x642   : > { %2250 = vrot.lane.b32.xlu1 %v4968_v20, %s3810_s26 }
 0x644   : > { %2256 = vrot.lane.b32.xlu0 %v4986_v55, %s3810_s26 }
 0x646   : > { %2248 = vrot.lane.b32.xlu1 %v4964_v28, %s3810_s26 }
 0x648   : > { %2216 = vrot.lane.b32.xlu0 %v2019_v42, %s3809_s25 }
 0x64a   : > { %2260 = vrot.lane.b32.xlu1 %v2020_v47, %s3810_s26 }
 0x64c   : > { %2294 = vrot.lane.b32.xlu0 %v4974_v41, %s3811_s27 }
 0x64e   : > { %2292 = vrot.lane.b32.xlu1 %v4968_v20, %s3811_s27 }
 0x650   : > { %2258 = vrot.lane.b32.xlu0 %v2019_v42, %s3810_s26 }
 0x652   : > { %2290 = vrot.lane.b32.xlu1 %v4964_v28, %s3811_s27 }
 0x654   : > { %2298 = vrot.lane.b32.xlu0 %v4986_v55, %s3811_s27 }
 0x656   : > { %2302 = vrot.lane.b32.xlu1 %v2020_v47, %s3811_s27 }
 0x658   : > { %2300 = vrot.lane.b32.xlu0 %v2019_v42, %s3811_s27 }
 0x65a   : > { %2044 = vrot.lane.b32.xlu1 %v4977_v30, %s3805_s19 }
 0x65c   : > { %2052 = vrot.lane.b32.xlu0 %v4996_v56, %s3805_s19 }
 0x65e   : > { %2334 = vrot.lane.b32.xlu1 %v4968_v20, %s3812_s30 }
 0x660   : > { %2336 = vrot.lane.b32.xlu0 %v4974_v41, %s3812_s30 }
 0x662   : > { %2086 = vrot.lane.b32.xlu1 %v4977_v30, %s3806_s20 }
 0x664   : > { %2332 = vrot.lane.b32.xlu0 %v4964_v28, %s3812_s30 }
 0x666   : > { %2342 = vrot.lane.b32.xlu1 %v2019_v42, %s3812_s30 }
 0x668   : > { %2344 = vrot.lane.b32.xlu0 %v2020_v47, %s3812_s30 }
 0x66a   : > { %2094 = vrot.lane.b32.xlu1 %v4996_v56, %s3806_s20 }
 0x66c   : > { %2340 = vrot.lane.b32.xlu0 %v4986_v55, %s3812_s30 }
 0x66e   : > { %2128 = vrot.lane.b32.xlu1 %v4977_v30, %s3807_s23 }
 0x670   : > { %2136 = vrot.lane.b32.xlu0 %v4996_v56, %s3807_s23  ;;  %s5135_s23 = scalar_lea.vmem %s5425_s2, %s3877_s7 }
 0x671   : > { %v2913_v27 = vld [vmem:[%s5135_s23] sm:$0xff]  ;;  %v2915_v45 = vld [vmem:[%s5135_s23 + $0x10] sm:$0xff] }
 0x672   : > { %2170 = vrot.lane.b32.xlu1 %v4977_v30, %s3808_s24 }
 0x674   : > { %2178 = vrot.lane.b32.xlu0 %v4996_v56, %s3808_s24 }
 0x676   : > { %2212 = vrot.lane.b32.xlu1 %v4977_v30, %s3809_s25 }
 0x678   : > { %v2039_v18 = vpop.permute.xlu1 %2038  ;;  %2220 = vrot.lane.b32.xlu0 %v4996_v56, %s3809_s25 }
 0x67a   : > { %2254 = vrot.lane.b32.xlu1 %v4977_v30, %s3810_s26  ;;  %v5095_v40 = vpop.permute.xlu0 %2042 }
 0x67c   : > { %v2081_v51 = vpop.permute.xlu1 %2080  ;;  %2262 = vrot.lane.b32.xlu0 %v4996_v56, %s3810_s26 }
 0x67e   : > { %2296 = vrot.lane.b32.xlu1 %v4977_v30, %s3811_s27  ;;  %v5101_v63 = vpop.permute.xlu0 %2084 }
 0x680   : > { %v2123_v6 = vpop.permute.xlu1 %2122  ;;  %2304 = vrot.lane.b32.xlu0 %v4996_v56, %s3811_s27 }
 0x682   : > { %2338 = vrot.lane.b32.xlu1 %v4977_v30, %s3812_s30  ;;  %v5107_v22 = vpop.permute.xlu0 %2126 }
 0x684   : > { %v5109_v11 = vpop.permute.xlu1 %2164  ;;  %2346 = vrot.lane.b32.xlu0 %v4996_v56, %s3812_s30 }
 0x686   : > { %v5113_v17 = vpop.permute.xlu0 %2168  ;;  %2447 = vperm.xlu1 %3743, %v4808_v21  }
 0x688   : > { %v2041_v28 = vpop.permute.xlu1 %2040  ;;  %2451 = vperm.xlu0 %3744, %v4814_v52   ;;  %v2916_v52 = vld [vmem:[%s5135_s23 + $0x18] sm:$0xff] }
 0x689   : > { %v2054_v0 = vsel %vm1288_vm3, %v2039_v18, %v2041_v28  ;;  %v2055_v32 = vsel %vm1288_vm3, %v2041_v28, %v5095_v40 }
 0x68a   : > { %2502 = vmatprep.subr.bf16.mxu1 %v2055_v32  ;;  %v2047_v19 = vpop.permute.xlu0 %2046  ;;  %2455 = vperm.xlu1 %3743, %v4828_v24   ;;  %v2914_v24 = vld [vmem:[%s5135_s23 + $0x8] sm:$0xff]  ;;  %s281_s23 = scalar_lea.vmem %s5424_s1, %s3877_s7 }
 0x68b   : > { %2503 = vmatpush1.bf16.msra.mxu1 %v2054_v0 }
 0x68c   : > { %v2083_v7 = vpop.permute.xlu1 %2082  ;;  %3745 = vset.pattern.permute.xlu0 %v3798_v3 }
 0x68d   : > { %v2097_v12 = vsel %vm1333_vm4, %v2083_v7, %v5101_v63  ;;  %v2096_v8 = vsel %vm1333_vm4, %v2081_v51, %v2083_v7  ;;  %2919 = vperm.xlu0 %3745, %v2913_v27  }
 0x68e   : > { %v2089_v54 = vpop.permute.xlu0 %2088  ;;  %2459 = vperm.xlu1 %3743, %v4822_v23  }
 0x690   : > { %v2125_v20 = vpop.permute.xlu1 %2124 }
 0x691   : > { %v2139_v21 = vsel %vm1377_vm5, %v2125_v20, %v5107_v22  ;;  %v2138_v38 = vsel %vm1377_vm5, %v2123_v6, %v2125_v20  ;;  %2934 = vperm.xlu0 %3745, %v2916_v52  }
 0x692   : > { %v2131_v2 = vpop.permute.xlu0 %2130  ;;  %3746 = vset.pattern.permute.xlu1 %v3798_v3 }
 0x693   : > { %2924 = vperm.xlu1 %3746, %v2914_v24  }
 0x694   : > { %v2167_v37 = vpop.permute.xlu1 %2166 }
 0x695   : > { %v2181_v36 = vsel %vm1421_vm6, %v2167_v37, %v5113_v17  ;;  %v2180_v23 = vsel %vm1421_vm6, %v5109_v11, %v2167_v37 }
 0x696   : > { %v2173_v9 = vpop.permute.xlu0 %2172 }
 0x697   : > { %2929 = vperm.xlu1 %3746, %v2915_v45   ;;  %v3766_v45 = vld [vmem:[%s5426_s3 + $0x18] ss:$36 sps:$4 sm:$0xff]  }
 0x698   : > { %v5118_v44 = vpop.permute.xlu1 %2050 }
 0x69a   : > { %v2049_v25 = vpop.permute.xlu0 %2048 }
 0x69b   : > { %v2057_v14 = vsel %vm1288_vm3, %v2047_v19, %v2049_v25  ;;  %v2058_v43 = vsel %vm1288_vm3, %v2049_v25, %v5118_v44 }
 0x69c   : > { %v2209_v46 = vpop.permute.xlu1 %2208  ;;  %2504 = vmatprep.subr.bf16.mxu1 %v2058_v43 }
 0x69d   : > { %2505 = vmatpush1.bf16.msra.mxu1 %v2057_v14 }
 0x69e   : > { %2506 = vmatprep.subr.bf16.mxu1 %v2097_v12  ;;  %v5125_v41 = vpop.permute.xlu0 %2210 }
 0x69f   : > { %v2223_v13 = vsel %vm1465_vm13, %v2209_v46, %v5125_v41 }
 0x6a0   : > { %v5127_v34 = vpop.permute.xlu1 %2092 }
 0x6a1   : > { %2507 = vmatpush1.bf16.msra.mxu1 %v2096_v8  ;;  %v5200_v8 = vld [vmem:[%s5426_s3 + $0x10] ss:$36 sps:$4 sm:$0xff]  }
 0x6a2   : > { %v2091_v50 = vpop.permute.xlu0 %2090 }
 0x6a3   : > { %v2099_v30 = vsel %vm1333_vm4, %v2089_v54, %v2091_v50  ;;  %v2100_v58 = vsel %vm1333_vm4, %v2091_v50, %v5127_v34 }
 0x6a4   : > { %v5140_v5 = vpop.permute.xlu1 %2134  ;;  %2508 = vmatprep.subr.bf16.mxu1 %v2100_v58 }
 0x6a5   : > { %2509 = vmatpush1.bf16.msra.mxu1 %v2099_v30 }
 0x6a6   : > { %2510 = vmatprep.subr.bf16.mxu1 %v2139_v21  ;;  %v2215_v10 = vpop.permute.xlu0 %2214 }
 0x6a8   : > { %v5147_v53 = vpop.permute.xlu1 %2176 }
 0x6a9   : > { %2511 = vmatpush1.bf16.msra.mxu1 %v2138_v38 }
 0x6aa   : > { %v2133_v31 = vpop.permute.xlu0 %2132 }
 0x6ab   : > { %v2141_v29 = vsel %vm1377_vm5, %v2131_v2, %v2133_v31  ;;  %v2142_v62 = vsel %vm1377_vm5, %v2133_v31, %v5140_v5 }
 0x6ac   : > { %v2207_v48 = vpop.permute.xlu1 %2206  ;;  %2512 = vmatprep.subr.bf16.mxu1 %v2142_v62 }
 0x6ad   : > { %2513 = vmatpush1.bf16.msra.mxu1 %v2141_v29  ;;  %v2222_v47 = vsel %vm1465_vm13, %v2207_v48, %v2209_v46 }
 0x6ae   : > { %2514 = vmatprep.subr.bf16.mxu1 %v2181_v36  ;;  %v5159_v35 = vpop.permute.xlu0 %2252 }
 0x6b0   : > { %v5162_v4 = vpop.permute.xlu1 %2218 }
 0x6b1   : > { %2515 = vmatpush1.bf16.msra.mxu1 %v2180_v23 }
 0x6b2   : > { %v2175_v55 = vpop.permute.xlu0 %2174 }
 0x6b3   : > { %v2183_v49 = vsel %vm1421_vm6, %v2173_v9, %v2175_v55  ;;  %v2184_v33 = vsel %vm1421_vm6, %v2175_v55, %v5147_v53 }
 0x6b4   : > { %v2251_v42 = vpop.permute.xlu1 %2250  ;;  %2516 = vmatprep.subr.bf16.mxu1 %v2184_v33 }
 0x6b5   : > { %2517 = vmatpush1.bf16.msra.mxu1 %v2183_v49  ;;  %v2265_v6 = vsel %vm1509_vm14, %v2251_v42, %v5159_v35 }
 0x6b6   : > { %2518 = vmatprep.subr.bf16.mxu1 %v2223_v13  ;;  %v2257_v39 = vpop.permute.xlu0 %2256 }
 0x6b8   : > { %v2249_v16 = vpop.permute.xlu1 %2248 }
 0x6b9   : > { %2519 = vmatpush1.bf16.msra.mxu1 %v2222_v47  ;;  %v2264_v0 = vsel %vm1509_vm14, %v2249_v16, %v2251_v42 }
 0x6ba   : > { %v2217_v56 = vpop.permute.xlu0 %2216 }
 0x6bb   : > { %v2225_v61 = vsel %vm1465_vm13, %v2215_v10, %v2217_v56  ;;  %v2226_v18 = vsel %vm1465_vm13, %v2217_v56, %v5162_v4 }
 0x6bc   : > { %v5176_v51 = vpop.permute.xlu1 %2260  ;;  %2520 = vmatprep.subr.bf16.mxu1 %v2226_v18 }
 0x6bd   : > { %2521 = vmatpush1.bf16.msra.mxu1 %v2225_v61 }
 0x6be   : > { %2522 = vmatprep.subr.bf16.mxu1 %v2265_v6  ;;  %v5180_v11 = vpop.permute.xlu0 %2294 }
 0x6c0   : > { %v2293_v28 = vpop.permute.xlu1 %2292 }
 0x6c1   : > { %2523 = vmatpush1.bf16.msra.mxu1 %v2264_v0  ;;  %v2307_v20 = vsel %vm1553_vm15, %v2293_v28, %v5180_v11 }
 0x6c2   : > { %v2259_v32 = vpop.permute.xlu0 %2258 }
 0x6c3   : > { %v2267_v19 = vsel %vm1509_vm14, %v2257_v39, %v2259_v32  ;;  %v2268_v7 = vsel %vm1509_vm14, %v2259_v32, %v5176_v51  ;;  %v3815_v32 = vmov 3  }
 0x6c4   : > { %v2291_v54 = vpop.permute.xlu1 %2290  ;;  %2524 = vmatprep.subr.bf16.mxu1 %v2268_v7  ;;  %3747 = vset.pattern.permute.xlu1 %v3815_v32  ;;  %v3787_v7 = vld [vmem:[%s5427_s4 + $0x8] sm:$0xff] }
 0x6c5   : > { %2525 = vmatpush1.bf16.msra.mxu1 %v2267_v19  ;;  %v2306_v9 = vsel %vm1553_vm15, %v2291_v54, %v2293_v28  ;;  %3748 = vset.pattern.permute.xlu0 %v3815_v32  ;;  %v3786_v19 = vld [vmem:[%s5427_s4] sm:$0xff]  ;;  %v3788_v54 = vld [vmem:[%s5427_s4 + $0x10] sm:$0xff] }
 0x6c6   : > { %2526 = vmatprep.subr.bf16.mxu1 %v2307_v20  ;;  %v2299_v2 = vpop.permute.xlu0 %2298  ;;  %2772 = vperm.xlu1 %3747, %v3786_v19   ;;  %v3789_v20 = vld [vmem:[%s5427_s4 + $0x18] sm:$0xff] }
 0x6c7   : > { %2776 = vperm.xlu0 %3748, %v3787_v7  }
 0x6c8   : > { %v5188_v37 = vpop.permute.xlu1 %2302 }
 0x6c9   : > { %2527 = vmatpush1.bf16.msra.mxu1 %v2306_v9 }
 0x6ca   : > { %v2301_v25 = vpop.permute.xlu0 %2300  ;;  %2780 = vperm.xlu1 %3747, %v3788_v54  }
 0x6cb   : > { %v2309_v14 = vsel %vm1553_vm15, %v2299_v2, %v2301_v25  ;;  %v2310_v43 = vsel %vm1553_vm15, %v2301_v25, %v5188_v37  ;;  %3749 = vset.pattern.permute.xlu0 %v3798_v3 }
 0x6cc   : > { %v2045_v46 = vpop.permute.xlu1 %2044  ;;  %2528 = vmatprep.subr.bf16.mxu1 %v2310_v43  ;;  %v2910_v43 = vld [vmem:[%s281_s23 + $0x8] sm:$0xff] }
 0x6cd   : > { %v2056_v12 = vsel %vm1288_vm3, %v5095_v40, %v2045_v46  ;;  %3441 = vmatprep.subr.msk.bf16.mxu0 %vm1288_vm3, %v2045_v46  ;;  %2529 = vmatpush1.bf16.msra.mxu1 %v2309_v14  ;;  %v2909_v46 = vld [vmem:[%s281_s23] sm:$0xff] }
 0x6ce   : > { %2609 = vmatpush1.bf16.msra.mxu0 %v2056_v12  ;;  %v2053_v50 = vpop.permute.xlu0 %2052  ;;  %2784 = vperm.xlu1 %3747, %v3789_v20  }
 0x6cf   : > { %3442 = vmatprep.subr.msk.bf16.mxu0 %vm1288_vm3, %v2053_v50  ;;  %v2059_v40 = vsel %vm1288_vm3, %v5118_v44, %v2053_v50  ;;  %v5222_v44 = vld [vmem:[%s5426_s3 + $0x58] ss:$36 sps:$4 sm:$0xff]   ;;  %v2911_v50 = vld [vmem:[%s281_s23 + $0x10] sm:$0xff] }
 0x6d0   : > { %v2335_v30 = vpop.permute.xlu1 %2334  ;;  %2531 = vmatmul.mubr.bf16.vlgmr.msra.gmra.mrb[16].mxu1 %v5200_v8 }
 0x6d1   : > { %2540 = vmatprep.mubr.bf16.mxu1 %v5205_v15 }
 0x6d2   : > { %2611 = vmatpush1.bf16.msra.mxu0 %v2059_v40  ;;  %v5212_v58 = vpop.permute.xlu0 %2336 }
 0x6d3   : > { %v2349_v21 = vsel %vm1597_vm1, %v2335_v30, %v5212_v58 }
 0x6d4   : > { %v2087_v27 = vpop.permute.xlu1 %2086  ;;  %2551 = vmatprep.subr.bf16.mxu1 %v2349_v21 }
 0x6d5   : > { %v2098_v10 = vsel %vm1333_vm4, %v5101_v63, %v2087_v27  ;;  %3443 = vmatprep.subr.msk.bf16.mxu0 %vm1333_vm4, %v2087_v27 }
 0x6d6   : > { %2613 = vmatpush1.bf16.msra.mxu0 %v2098_v10  ;;  %v2333_v38 = vpop.permute.xlu0 %2332 }
 0x6d7   : > { %v2348_v52 = vsel %vm1597_vm1, %v2333_v38, %v2335_v30 }
 0x6d8   : > { %v2343_v31 = vpop.permute.xlu1 %2342  ;;  %2552 = vmatpush1.bf16.msra.mxu1 %v2348_v52 }
 0x6d9   : > { %2541 = vmatmul.mubr.bf16.gmra.mrb[20].mxu1 %v5222_v44 }
 0x6da   : > { %v5226_v29 = vpop.permute.xlu0 %2344  ;;  %2583 = vmatprep.mubr.bf16.mxu1 %v3798_v3 }
 0x6db   : > { %v2352_v63 = vsel %vm1597_vm1, %v2343_v31, %v5226_v29 }
 0x6dc   : > { %v2095_v62 = vpop.permute.xlu1 %2094  ;;  %2553 = vmatprep.subr.bf16.mxu1 %v2352_v63 }
 0x6dd   : > { %v2101_v48 = vsel %vm1333_vm4, %v5127_v34, %v2095_v62  ;;  %3444 = vmatprep.subr.msk.bf16.mxu0 %vm1333_vm4, %v2095_v62 }
 0x6de   : > { %2615 = vmatpush1.bf16.msra.mxu0 %v2101_v48  ;;  %v2341_v24 = vpop.permute.xlu0 %2340 }
 0x6df   : > { %v2351_v36 = vsel %vm1597_vm1, %v2341_v24, %v2343_v31 }
 0x6e0   : > { %v2129_v23 = vpop.permute.xlu1 %2128  ;;  %2554 = vmatpush1.bf16.msra.mxu1 %v2351_v36 }
 0x6e1   : > { %v2140_v55 = vsel %vm1377_vm5, %v5107_v22, %v2129_v23  ;;  %3445 = vmatprep.subr.msk.bf16.mxu0 %vm1377_vm5, %v2129_v23  ;;  %v3767_v22 = vld [vmem:[%s5426_s3 + $0x60] ss:$36 sps:$4 sm:$0xff]  }
 0x6e2   : > { %2617 = vmatpush1.bf16.msra.mxu0 %v2140_v55  ;;  %v2137_v49 = vpop.permute.xlu0 %2136 }
 0x6e3   : > { %3380 = vmatmul.mubr.msk.bf16.vlgmr.msra.gmra.mrb[16].mxu1 %vm380_vm0, %v3766_v45  ;;  %3446 = vmatprep.subr.msk.bf16.mxu0 %vm1377_vm5, %v2137_v49  ;;  %v2143_v34 = vsel %vm1377_vm5, %v5140_v5, %v2137_v49 }
 0x6e4   : > { %2593 = vmatprep.mubr.bf16.mxu1 %v3798_v3  ;;  %v2171_v33 = vpop.permute.xlu1 %2170 }
 0x6e5   : > { %v2182_v42 = vsel %vm1421_vm6, %v5113_v17, %v2171_v33 }
 0x6e6   : > { %2619 = vmatpush1.bf16.msra.mxu0 %v2143_v34  ;;  %v2179_v13 = vpop.permute.xlu0 %2178 }
 0x6e7   : > { %3447 = vmatprep.subr.msk.bf16.mxu0 %vm1421_vm6, %v2171_v33  ;;  %v2185_v5 = vsel %vm1421_vm6, %v5147_v53, %v2179_v13 }
 0x6e8   : > { %v2213_v39 = vpop.permute.xlu1 %2212 }
 0x6e9   : > { %v2224_v16 = vsel %vm1465_vm13, %v5125_v41, %v2213_v39 }
 0x6ea   : > { %2621 = vmatpush1.bf16.msra.mxu0 %v2182_v42  ;;  %v2221_v47 = vpop.permute.xlu0 %2220 }
 0x6eb   : > { %3448 = vmatprep.subr.msk.bf16.mxu0 %vm1421_vm6, %v2179_v13  ;;  %3381 = vmatmul.mubr.msk.bf16.gmra.mrb[20].mxu1 %vm380_vm0, %v3767_v22  ;;  %v2227_v17 = vsel %vm1465_vm13, %v5162_v4, %v2221_v47 }
 0x6ec   : > { %2835 = vmatprep.mubr.bf16.mxu1 %v3798_v3  ;;  %v2255_v56 = vpop.permute.xlu1 %2254 }
 0x6ed   : > { %v2266_v53 = vsel %vm1509_vm14, %v5159_v35, %v2255_v56 }
 0x6ee   : > { %2623 = vmatpush1.bf16.msra.mxu0 %v2185_v5  ;;  %v2263_v61 = vpop.permute.xlu0 %2262 }
 0x6ef   : > { %3449 = vmatprep.subr.msk.bf16.mxu0 %vm1465_vm13, %v2213_v39  ;;  %v2269_v41 = vsel %vm1509_vm14, %v5176_v51, %v2263_v61 }
 0x6f0   : > { %v2297_v18 = vpop.permute.xlu1 %2296 }
 0x6f1   : > { %v2308_v4 = vsel %vm1553_vm15, %v5180_v11, %v2297_v18 }
 0x6f2   : > { %2625 = vmatpush1.bf16.msra.mxu0 %v2224_v16  ;;  %v2305_v6 = vpop.permute.xlu0 %2304 }
 0x6f3   : > { %3450 = vmatprep.subr.msk.bf16.mxu0 %vm1465_vm13, %v2221_v47  ;;  %v2311_v35 = vsel %vm1553_vm15, %v5188_v37, %v2305_v6 }
 0x6f4   : > { %v2339_v28 = vpop.permute.xlu1 %2338 }
 0x6f5   : > { %v2350_v51 = vsel %vm1597_vm1, %v5212_v58, %v2339_v28  ;;  %v2912_v58 = vld [vmem:[%s281_s23 + $0x18] sm:$0xff] }
 0x6f6   : > { %2627 = vmatpush1.bf16.msra.mxu0 %v2227_v17  ;;  %v2347_v0 = vpop.permute.xlu0 %2346 }
 0x6f7   : > { %3451 = vmatprep.subr.msk.bf16.mxu0 %vm1509_vm14, %v2255_v56  ;;  %v2353_v11 = vsel %vm1597_vm1, %v5226_v29, %v2347_v0  ;;  %v5320_v29 = vld [vmem:[%s5428_s5 + $0x1] ss:$8 sm:$0xf] }
 0x6f8   : > { %v2730_v33 = vrot.slane %v5320_v29, %v3934_v57  ;;  %v2734_v39 = vrot.slane %v5320_v29, %v3937_v59 }
 0x6fa   : > { %2629 = vmatpush1.bf16.msra.mxu0 %v2266_v53 }
 0x6fb   : > { %3452 = vmatprep.subr.msk.bf16.mxu0 %vm1509_vm14, %v2263_v61 }
 0x6fe   : > { %2631 = vmatpush1.bf16.msra.mxu0 %v2269_v41 }
 0x6ff   : > { %3453 = vmatprep.subr.msk.bf16.mxu0 %vm1553_vm15, %v2297_v18 }
 0x702   : > { %2633 = vmatpush1.bf16.msra.mxu0 %v2308_v4 }
 0x703   : > { %3454 = vmatprep.subr.msk.bf16.mxu0 %vm1553_vm15, %v2305_v6 }
 0x705   : > { %v5302_v2 = vpop.permute.xlu1 %2447 }
 0x706   : > { %2635 = vmatpush1.bf16.msra.mxu0 %v2311_v35 }
 0x707   : > { %3455 = vmatprep.subr.msk.bf16.mxu0 %vm1597_vm1, %v2339_v28  ;;  %v5308_v25 = vpop.permute.xlu0 %2451 }
 0x709   : > { %2637 = vmatmul.mubr.bf16.vlgmr.msra.gmra.mrb[20].mxu0 %v5200_v8  ;;  %v5304_v37 = vpop.permute.xlu1 %2455 }
 0x70a   : > { %2658 = vmatpush1.bf16.msra.mxu0 %v2350_v51  ;;  %2646 = vmatprep.mubr.bf16.mxu0 %v5205_v15 }
 0x70b   : > { %3456 = vmatprep.subr.msk.bf16.mxu0 %vm1597_vm1, %v2347_v0 }
 0x70c   : > { %v2920_v12 = vpop.permute.xlu0 %2919 }
 0x70d   : > { %v5306_v9 = vpop.permute.xlu1 %2459  ;;  %v2937_v15 = vmul.f32 %v2920_v12, %v2909_v46 }
 0x70e   : > { %2660 = vmatpush1.bf16.msra.mxu0 %v2353_v11 }
 0x70f   : > { %v2941_v10 = vsel %vm380_vm0, %v2937_v15, 0.0 }
 0x710   : > { %v2935_v21 = vpop.permute.xlu0 %2934  ;;  %v2942_v52 = vrot.slane %v2941_v10, 4 }
 0x711   : > { %2647 = vmatmul.mubr.bf16.gmra.mrb[24].mxu0 %v5222_v44  ;;  %v2940_v44 = vmul.f32 %v2935_v21, %v2912_v58 }
 0x712   : > { %2689 = vmatprep.mubr.bf16.mxu0 %v3798_v3  ;;  %v2925_v14 = vpop.permute.xlu1 %2924 }
 0x713   : > { %v2938_v8 = vmul.f32 %v2925_v14, %v2910_v43  ;;  %v2962_v48 = vsel %vm380_vm0, %v2940_v44, 0.0 }
 0x714   : > { %v2963_v13 = vrot.slane %v2962_v48, 4 }
 0x715   : > { %v2948_v27 = vsel %vm380_vm0, %v2938_v8, 0.0 }
 0x716   : > { %v2930_v30 = vpop.permute.xlu1 %2929  ;;  %v2949_v38 = vrot.slane %v2948_v27, 4  ;;  %v2964_v4 = vadd.f32 %v2963_v13, %v2962_v48 }
 0x717   : > { %v2939_v40 = vmul.f32 %v2930_v30, %v2911_v50 }
 0x718   : > { %v2950_v23 = vadd.f32 %v2949_v38, %v2948_v27  ;;  %v2965_v8 = vrot.slane %v2964_v4, 2 }
 0x719   : > { %3382 = vmatmul.mubr.msk.bf16.vlgmr.msra.gmra.mrb[20].mxu0 %vm380_vm0, %v3766_v45  ;;  %v2955_v31 = vsel %vm380_vm0, %v2939_v40, 0.0  ;;  %v2943_v45 = vadd.f32 %v2942_v52, %v2941_v10 }
 0x71a   : > { %2699 = vmatprep.mubr.bf16.mxu0 %v3798_v3  ;;  %v2956_v62 = vrot.slane %v2955_v31, 4  ;;  %v2951_v56 = vrot.slane %v2950_v23, 2  ;;  %v2966_v38 = vadd.f32 %v2965_v8, %v2964_v4 }
 0x71b   : > { %v2944_v53 = vrot.slane %v2943_v45, 2 }
 0x71c   : > { %v2957_v47 = vadd.f32 %v2956_v62, %v2955_v31  ;;  %v2952_v0 = vadd.f32 %v2951_v56, %v2950_v23  ;;  %v2967_v23 = vrot.slane %v2966_v38, 1 }
 0x71d   : > { %v2945_v32 = vadd.f32 %v2944_v53, %v2943_v45 }
 0x71e   : > { %v2958_v51 = vrot.slane %v2957_v47, 2  ;;  %v2953_v40 = vrot.slane %v2952_v0, 1 }
 0x71f   : > { %v2946_v58 = vrot.slane %v2945_v32, 1 }
 0x720   : > { %v2959_v50 = vadd.f32 %v2958_v51, %v2957_v47  ;;  %v2954_v62 = vadd.f32 %v2953_v40, %v2952_v0 }
 0x721   : > { %3383 = vmatmul.mubr.msk.bf16.gmra.mrb[24].mxu0 %vm380_vm0, %v3767_v22  ;;  %v2947_v48 = vadd.f32 %v2946_v58, %v2945_v32 }
 0x722   : > { %2888 = vmatprep.mubr.bf16.mxu0 %v3798_v3  ;;  %v2960_v31 = vrot.slane %v2959_v50, 1 }
 0x724   : > { %v2961_v45 = vadd.f32 %v2960_v31, %v2959_v50 }
 0x7b6   : > { %v2585_v63 = vpop.f32.mrb[16].mxu1 }
 0x7b7   : > { %v3504_v24 = vadd.f32 %v2585_v63, %v5302_v2  ;;  %v2587_v36 = vpop.f32.mrb[17].mxu1 }
 0x7b8   : > { %v3505_v55 = vadd.f32 %v2587_v36, %v5302_v2  ;;  %v2589_v49 = vpop.f32.mrb[18].mxu1 }
 0x7b9   : > { %v2710_v34 = vmax.f32 %v3504_v24, 0.0  ;;  %v3506_v22 = vadd.f32 %v2589_v49, %v5308_v25  ;;  %v2591_v42 = vpop.f32.mrb[19].mxu1  ;;  %v2970_v49 = vpack.c.bf16 %v2954_v62, %v2954_v62 }
 0x7ba   : > { %v2711_v5 = vmax.f32 %v3505_v55, 0.0  ;;  %v3507_v16 = vadd.f32 %v2591_v42, %v5308_v25  ;;  %v5338_v55 = vld [vmem:[%s5426_s3 + $0x1c] ss:$36 sps:$4 sm:$0xff]   ;;  %v2971_v42 = vpack.c.bf16 %v2961_v45, %v2961_v45 }
 0x7bb   : > { %v2714_v17 = vmax.f32 %v3506_v22, 0.0  ;;  %v2747_v41 = vmul.f32 %v2730_v33, %v2710_v34  ;;  %v2969_v34 = vpack.c.bf16 %v2947_v48, %v2947_v48  ;;  %v2968_v22 = vadd.f32 %v2967_v23, %v2966_v38  ;;  %v5377_v23 = vpop.permute.xlu0 %2776 }
 0x7bc   : > { %v2715_v61 = vmax.f32 %v3507_v16, 0.0  ;;  %v2748_v6 = vmul.f32 %v2734_v39, %v2711_v5  ;;  %v2978_v13 = vunpack.c.l.b16 %v2970_v49  ;;  %v2979_v47 = vunpack.c.l.b16 %v2971_v42 }
 0x7bd   : > { %v2751_v18 = vmul.f32 %v2730_v33, %v2714_v17  ;;  %v2977_v5 = vunpack.c.l.b16 %v2969_v34  ;;  %v2972_v16 = vpack.c.bf16 %v2968_v22, %v2968_v22  ;;  %v3770_v17 = vld [vmem:[%s5426_s3 + $0x64] ss:$36 sps:$4 sm:$0xff]  }
 0x7be   : > { %v2752_v35 = vmul.f32 %v2734_v39, %v2715_v61  ;;  %v2595_v28 = vpop.f32.mrb[20].mxu1 }
 0x7bf   : > { %v3508_v11 = vadd.f32 %v2595_v28, %v5304_v37  ;;  %v2597_v19 = vpop.f32.mrb[21].mxu1  ;;  %v2763_v7 = vpack.c.bf16 %v2751_v18, %v2747_v41  ;;  %v2982_v56 = vsel %vm2981_vm2, %v2978_v13, %v2977_v5  ;;  %v2980_v53 = vunpack.c.l.b16 %v2972_v16 }
 0x7c0   : > { %v3509_v54 = vadd.f32 %v2597_v19, %v5304_v37  ;;  %v2599_v20 = vpop.f32.mrb[22].mxu1  ;;  %v2764_v14 = vpack.c.bf16 %v2752_v35, %v2748_v6  ;;  %v2984_v61 = vsel %vm2983_vm7, %v2979_v47, %v2982_v56 }
 0x7c1   : > { %v2718_v43 = vmax.f32 %v3508_v11, 0.0  ;;  %v3510_v46 = vadd.f32 %v2599_v20, %v5306_v9  ;;  %v2601_v12 = vpop.f32.mrb[23].mxu1  ;;  %v2986_v41 = vsel %vm2985_vm8, %v2980_v53, %v2984_v61  ;;  %v2738_v11 = vrot.slane %v5320_v29, %v3939_v60 }
 0x7c2   : > { %v2719_v15 = vmax.f32 %v3509_v54, 0.0  ;;  %v3511_v30 = vadd.f32 %v2601_v12, %v5306_v9  ;;  %2803 = vmatprep.subr.bf16.mxu1 %v2764_v14  ;;  %v2987_v18 = vpack.c.b16 %v2986_v41, %v2986_v41 }
 0x7c3   : > { %v2722_v21 = vmax.f32 %v3510_v46, 0.0  ;;  %2804 = vmatpush1.bf16.msra.mxu1 %v2763_v7  ;;  %v2755_v10 = vmul.f32 %v2730_v33, %v2718_v43  ;;  %v2742_v7 = vrot.slane %v5320_v29, %v3948_v1 }
 0x7c4   : > { %v2723_v27 = vmax.f32 %v3511_v30, 0.0  ;;  %v2756_v52 = vmul.f32 %v2734_v39, %v2719_v15 }
 0x7c5   : > { %v2759_v44 = vmul.f32 %v2730_v33, %v2722_v21  ;;  %v3769_v33 = vld [vmem:[%s5426_s3 + $0x20] ss:$36 sps:$4 sm:$0xff]  }
 0x7c6   : > { %v2760_v63 = vmul.f32 %v2734_v39, %v2723_v27  ;;  %v3771_v39 = vld [vmem:[%s5426_s3 + $0x68] ss:$36 sps:$4 sm:$0xff]  }
 0x7c7   : > { %v2767_v24 = vpack.c.bf16 %v2759_v44, %v2755_v10 }
 0x7c8   : > { %v2768_v36 = vpack.c.bf16 %v2760_v63, %v2756_v52 }
 0x7ca   : > { %2805 = vmatprep.subr.bf16.mxu1 %v2768_v36 }
 0x7cb   : > { %2806 = vmatpush1.bf16.msra.mxu1 %v2767_v24 }
 0x7cc   : > { %3472 = vmatprep.subr.bf16.mxu1 %v3799_v26 }
 0x7ce   : > { %3386 = vmatmul.mubr.msk.bf16.vlgmr.msra.gmra.mrb[24].mxu1 %vm380_vm0, %v5338_v55 }
 0x7cf   : > { %3473 = vmatpush3.bf16.msra.mxu1 %v3769_v33  ;;  %2845 = vmatprep.mubr.bf16.mxu1 %v3798_v3 }
 0x7d0   : > { %3474 = vmatprep.subr.bf16.mxu1 %v3799_v26 }
 0x7d3   : > { %3475 = vmatpush3.bf16.msra.mxu1 %v3771_v39 }
 0x7d6   : > { %3387 = vmatmul.mubr.msk.bf16.gmra.mrb[28].mxu1 %vm380_vm0, %v3770_v17 }
 0x7d7   : > { %3476 = vmatprep.mubr.msk.bf16.mxu1 %vm3816_vm9, %v3799_v26 }
 0x7de   : > { %3477 = vmatmul.mubr.msk.bf16.vlgmr.msra.gmra.mrb[32].mxu1 %vm380_vm0, %v2987_v18 }
 0x7df   : > { %3171 = vmatprep.mubr.bf16.mxu1 %v3798_v3 }
 0x7ec   : > { %v2691_v4 = vpop.f32.mrb[20].mxu0 }
 0x7ed   : > { %v3512_v6 = vadd.f32 %v2691_v4, %v5302_v2  ;;  %v2693_v35 = vpop.f32.mrb[21].mxu0 }
 0x7ee   : > { %v3513_v28 = vadd.f32 %v2693_v35, %v5302_v2  ;;  %v2695_v51 = vpop.f32.mrb[22].mxu0 }
 0x7ef   : > { %v2712_v0 = vmax.f32 %v3512_v6, 0.0  ;;  %v3514_v32 = vadd.f32 %v2695_v51, %v5308_v25  ;;  %v2697_v26 = vpop.f32.mrb[23].mxu0 }
 0x7f0   : > { %v2713_v19 = vmax.f32 %v3513_v28, 0.0  ;;  %v3515_v54 = vadd.f32 %v2697_v26, %v5308_v25 }
 0x7f1   : > { %v2716_v20 = vmax.f32 %v3514_v32, 0.0  ;;  %v2749_v43 = vmul.f32 %v2738_v11, %v2712_v0 }
 0x7f2   : > { %v2717_v14 = vmax.f32 %v3515_v54, 0.0  ;;  %v2750_v12 = vmul.f32 %v2742_v7, %v2713_v19 }
 0x7f3   : > { %v2753_v46 = vmul.f32 %v2738_v11, %v2716_v20 }
 0x7f4   : > { %v2754_v2 = vmul.f32 %v2742_v7, %v2717_v14  ;;  %v2701_v8 = vpop.f32.mrb[24].mxu0 }
 0x7f5   : > { %v2765_v15 = vpack.c.bf16 %v2753_v46, %v2749_v43  ;;  %v3516_v50 = vadd.f32 %v2701_v8, %v5304_v37  ;;  %v2703_v30 = vpop.f32.mrb[25].mxu0 }
 0x7f6   : > { %v3517_v40 = vadd.f32 %v2703_v30, %v5304_v37  ;;  %v2705_v58 = vpop.f32.mrb[26].mxu0  ;;  %v2766_v21 = vpack.c.bf16 %v2754_v2, %v2750_v12  ;;  %v5375_v37 = vpop.permute.xlu1 %2772 }
 0x7f7   : > { %v2720_v27 = vmax.f32 %v3516_v50, 0.0  ;;  %v3518_v29 = vadd.f32 %v2705_v58, %v5306_v9  ;;  %v2707_v10 = vpop.f32.mrb[27].mxu0 }
 0x7f8   : > { %v2721_v25 = vmax.f32 %v3517_v40, 0.0  ;;  %v3519_v44 = vadd.f32 %v2707_v10, %v5306_v9  ;;  %2856 = vmatprep.subr.bf16.mxu0 %v2766_v21 }
 0x7f9   : > { %v2724_v38 = vmax.f32 %v3518_v29, 0.0  ;;  %2857 = vmatpush1.bf16.msra.mxu0 %v2765_v15  ;;  %v2757_v31 = vmul.f32 %v2738_v11, %v2720_v27 }
 0x7fa   : > { %v2725_v52 = vmax.f32 %v3519_v44, 0.0  ;;  %v2758_v62 = vmul.f32 %v2742_v7, %v2721_v25  ;;  %v5381_v22 = vpop.permute.xlu1 %2780 }
 0x7fb   : > { %v2761_v63 = vmul.f32 %v2738_v11, %v2724_v38 }
 0x7fc   : > { %v2762_v48 = vmul.f32 %v2742_v7, %v2725_v52  ;;  %v303_v7 = vld [vmem:[%s5428_s5 + $0x5] ss:$0 sm:$0xff] }
 0x7fd   : > { %v2769_v24 = vpack.c.bf16 %v2761_v63, %v2757_v31 }
 0x7fe   : > { %v2770_v36 = vpack.c.bf16 %v2762_v48, %v2758_v62  ;;  %v5385_v53 = vpop.permute.xlu1 %2784 }
 0x800   : > { %2858 = vmatprep.subr.bf16.mxu0 %v2770_v36 }
 0x801   : > { %2859 = vmatpush1.bf16.msra.mxu0 %v2769_v24 }
 0x804   : > { %3388 = vmatmul.mubr.msk.bf16.vlgmr.msra.gmra.mrb[28].mxu0 %vm380_vm0, %v5338_v55 }
 0x805   : > { %2898 = vmatprep.mubr.bf16.mxu0 %v3798_v3 }
 0x80c   : > { %3389 = vmatmul.mubr.msk.bf16.gmra.mrb[32].mxu0 %vm380_vm0, %v3770_v17 }
 0x80d   : > { %3212 = vmatprep.mubr.bf16.mxu0 %v3798_v3 }
 0x8a1   : > { %v2837_v9 = vpop.f32.mrb[24].mxu1 }
 0x8a2   : > { %v2838_v45 = vadd.f32 %v2837_v9, %v5375_v37  ;;  %v2839_v49 = vpop.f32.mrb[25].mxu1 }
 0x8a3   : > { %v2840_v34 = vadd.f32 %v2839_v49, %v5375_v37  ;;  %v2841_v33 = vpop.f32.mrb[26].mxu1 }
 0x8a4   : > { %v2843_v55 = vpop.f32.mrb[27].mxu1  ;;  %v2842_v42 = vadd.f32 %v2841_v33, %v5377_v23  ;;  %v3043_v5 = vmul.f32 %v2838_v45, %v2838_v45 }
 0x8a5   : > { %v2844_v13 = vadd.f32 %v2843_v55, %v5377_v23  ;;  %v3044_v39 = vmul.f32 %v2840_v34, %v2840_v34 }
 0x8a6   : > { %v3047_v3 = vmul.f32 %v2842_v42, %v2842_v42 }
 0x8a7   : > { %v3048_v16 = vmul.f32 %v2844_v13, %v2844_v13 }
 0x8a8   : > { %v3059_v47 = vadd.f32 %v3047_v3, %v3043_v5 }
 0x8a9   : > { %v2847_v17 = vpop.f32.mrb[28].mxu1  ;;  %v3068_v56 = vadd.f32 %v3048_v16, %v3044_v39 }
 0x8aa   : > { %v2848_v61 = vadd.f32 %v2847_v17, %v5381_v22  ;;  %v2849_v41 = vpop.f32.mrb[29].mxu1 }
 0x8ab   : > { %v2850_v18 = vadd.f32 %v2849_v41, %v5381_v22  ;;  %v2851_v4 = vpop.f32.mrb[30].mxu1 }
 0x8ac   : > { %v3051_v6 = vmul.f32 %v2848_v61, %v2848_v61  ;;  %v2852_v35 = vadd.f32 %v2851_v4, %v5385_v53  ;;  %v2853_v28 = vpop.f32.mrb[31].mxu1 }
 0x8ad   : > { %v3052_v51 = vmul.f32 %v2850_v18, %v2850_v18  ;;  %v2854_v0 = vadd.f32 %v2853_v28, %v5385_v53 }
 0x8ae   : > { %v3060_v11 = vadd.f32 %v3059_v47, %v3051_v6  ;;  %v3055_v32 = vmul.f32 %v2852_v35, %v2852_v35 }
 0x8af   : > { %v3069_v26 = vadd.f32 %v3068_v56, %v3052_v51  ;;  %v3056_v19 = vmul.f32 %v2854_v0, %v2854_v0 }
 0x8b0   : > { %v3061_v54 = vadd.f32 %v3060_v11, %v3055_v32 }
 0x8b1   : > { %v3070_v20 = vadd.f32 %v3069_v26, %v3056_v19  ;;  %v3037_v14 = vpop.f32.mrb[32].mxu1 }
 0x8b2   : > { %v3062_v43 = vrot.slane %v3061_v54, 4  ;;  %v5394_v46 = vadd.f32 %v3037_v14, %v303_v7  ;;  %v3478_v12 = vpop.f32.mrb[33].mxu1 }
 0x8b3   : > { %v3071_v2 = vrot.slane %v3070_v20, 4  ;;  %v3040_v8 = vpop.f32.mrb[34].mxu1 }
 0x8b4   : > { %v3063_v15 = vadd.f32 %v3062_v43, %v3061_v54  ;;  %v3103_v50 = vmul.f32 %v5394_v46, %v5394_v46  ;;  %v3479_v30 = vpop.f32.mrb[35].mxu1 }
 0x8b5   : > { %v3072_v40 = vadd.f32 %v3071_v2, %v3070_v20 }
 0x8b6   : > { %v3064_v58 = vrot.slane %v3063_v15, 2  ;;  %v3105_v21 = vsel %vm3104_vm10, %v3103_v50, 0.0 }
 0x8b7   : > { %v3073_v27 = vrot.slane %v3072_v40, 2  ;;  %3106 = vadd.xlane.f32.xlu0 %v3105_v21 }
 0x8b8   : > { %v3065_v29 = vadd.f32 %v3064_v58, %v3063_v15 }
 0x8b9   : > { %v3074_v10 = vadd.f32 %v3073_v27, %v3072_v40 }
 0x8ba   : > { %v3066_v25 = vrot.slane %v3065_v29, 1 }
 0x8bb   : > { %v3075_v44 = vrot.slane %v3074_v10, 1 }
 0x8bc   : > { %v3067_v38 = vadd.f32 %v3066_v25, %v3065_v29 }
 0x8bd   : > { %v3076_v52 = vadd.f32 %v3075_v44, %v3074_v10 }
 0x8be   : > { %v3095_v31 = vmax.f32 %v3067_v38, 1e-24 }
 0x8bf   : > { %v3096_v63 = vmax.f32 %v3076_v52, 1e-24 }
 0x8c0   : > { %3772 = vrsqrt.f32 %v3095_v31 }
 0x8c1   : > { %3774 = vrsqrt.f32 %v3096_v63 }
 0x8ca   : > { %v3773_v62 = vpop.eup %3772 }
 0x8cb   : > { %v3775_v48 = vpop.eup %3774  ;;  %v3120_v24 = vmul.f32 %v3773_v62, %v2848_v61  ;;  %v3124_v36 = vmul.f32 %v3773_v62, %v2852_v35  ;;  %v3112_v9 = vmul.f32 %v3773_v62, %v2838_v45  ;;  %v3116_v49 = vmul.f32 %v3773_v62, %v2842_v42 }
 0x8cc   : > { %v3125_v33 = vmul.f32 %v3775_v48, %v2854_v0  ;;  %v3113_v55 = vmul.f32 %v3775_v48, %v2840_v34  ;;  %v3117_v5 = vmul.f32 %v3775_v48, %v2844_v13  ;;  %v3121_v3 = vmul.f32 %v3775_v48, %v2850_v18 }
 0x8cd   : > { %v3132_v39 = vpack.c.bf16 %v3124_v36, %v3120_v24  ;;  %v3128_v16 = vpack.c.bf16 %v3116_v49, %v3112_v9 }
 0x8ce   : > { %v3129_v47 = vpack.c.bf16 %v3117_v5, %v3113_v55  ;;  %v3133_v17 = vpack.c.bf16 %v3125_v33, %v3121_v3 }
 0x8d0   : > { %3139 = vmatprep.subr.bf16.mxu1 %v3129_v47 }
 0x8d1   : > { %3140 = vmatpush1.bf16.msra.mxu1 %v3128_v16 }
 0x8d2   : > { %3141 = vmatprep.subr.bf16.mxu1 %v3133_v17 }
 0x8d5   : > { %3142 = vmatpush1.bf16.msra.mxu1 %v3132_v39 }
 0x8d7   : > { %v2890_v56 = vpop.f32.mrb[28].mxu0 }
 0x8d8   : > { %v2891_v41 = vadd.f32 %v2890_v56, %v5375_v37  ;;  %v2892_v4 = vpop.f32.mrb[29].mxu0 }
 0x8d9   : > { %v2893_v61 = vadd.f32 %v2892_v4, %v5375_v37  ;;  %v2894_v45 = vpop.f32.mrb[30].mxu0 }
 0x8da   : > { %v3045_v42 = vmul.f32 %v2891_v41, %v2891_v41  ;;  %v2895_v34 = vadd.f32 %v2894_v45, %v5377_v23  ;;  %v2896_v13 = vpop.f32.mrb[31].mxu0 }
 0x8db   : > { %v3046_v18 = vmul.f32 %v2893_v61, %v2893_v61  ;;  %v2897_v6 = vadd.f32 %v2896_v13, %v5377_v23 }
 0x8dc   : > { %v3049_v35 = vmul.f32 %v2895_v34, %v2895_v34 }
 0x8dd   : > { %v3050_v28 = vmul.f32 %v2897_v6, %v2897_v6 }
 0x8de   : > { %v3077_v51 = vadd.f32 %v3049_v35, %v3045_v42 }
 0x8df   : > { %v3086_v0 = vadd.f32 %v3050_v28, %v3046_v18  ;;  %v2900_v11 = vpop.f32.mrb[32].mxu0 }
 0x8e0   : > { %v2901_v32 = vadd.f32 %v2900_v11, %v5381_v22  ;;  %v2902_v26 = vpop.f32.mrb[33].mxu0 }
 0x8e1   : > { %v2903_v19 = vadd.f32 %v2902_v26, %v5381_v22  ;;  %v2904_v7 = vpop.f32.mrb[34].mxu0 }
 0x8e2   : > { %v3053_v37 = vmul.f32 %v2901_v32, %v2901_v32  ;;  %v2905_v54 = vadd.f32 %v2904_v7, %v5385_v53  ;;  %v2906_v20 = vpop.f32.mrb[35].mxu0 }
 0x8e3   : > { %v3054_v14 = vmul.f32 %v2903_v19, %v2903_v19  ;;  %v2907_v43 = vadd.f32 %v2906_v20, %v5385_v53 }
 0x8e4   : > { %v3078_v12 = vadd.f32 %v3077_v51, %v3053_v37  ;;  %v3057_v23 = vmul.f32 %v2905_v54, %v2905_v54 }
 0x8e5   : > { %v3087_v2 = vadd.f32 %v3086_v0, %v3054_v14  ;;  %v3058_v8 = vmul.f32 %v2907_v43, %v2907_v43 }
 0x8e6   : > { %v3079_v15 = vadd.f32 %v3078_v12, %v3057_v23 }
 0x8e7   : > { %v3088_v50 = vadd.f32 %v3087_v2, %v3058_v8 }
 0x8e8   : > { %v3080_v30 = vrot.slane %v3079_v15, 4 }
 0x8e9   : > { %v3089_v40 = vrot.slane %v3088_v50, 4 }
 0x8ea   : > { %v3081_v58 = vadd.f32 %v3080_v30, %v3079_v15 }
 0x8eb   : > { %v3090_v21 = vadd.f32 %v3089_v40, %v3088_v50 }
 0x8ec   : > { %v3082_v27 = vrot.slane %v3081_v58, 2 }
 0x8ed   : > { %v3091_v22 = vrot.slane %v3090_v21, 2 }
 0x8ee   : > { %v3083_v29 = vadd.f32 %v3082_v27, %v3081_v58 }
 0x8ef   : > { %v3092_v10 = vadd.f32 %v3091_v22, %v3090_v21 }
 0x8f0   : > { %v3084_v25 = vrot.slane %v3083_v29, 1 }
 0x8f1   : > { %v3093_v44 = vrot.slane %v3092_v10, 1 }
 0x8f2   : > { %v3085_v38 = vadd.f32 %v3084_v25, %v3083_v29 }
 0x8f3   : > { %v3094_v52 = vadd.f32 %v3093_v44, %v3092_v10 }
 0x8f4   : > { %v3097_v31 = vmax.f32 %v3085_v38, 1e-24 }
 0x8f5   : > { %v3098_v53 = vmax.f32 %v3094_v52, 1e-24 }
 0x8f6   : > { %3776 = vrsqrt.f32 %v3097_v31 }
 0x8f7   : > { %3778 = vrsqrt.f32 %v3098_v53 }
 0x900   : > { %v3777_v63 = vpop.eup %3776 }
 0x901   : > { %v3779_v62 = vpop.eup %3778  ;;  %v3122_v48 = vmul.f32 %v3777_v63, %v2901_v32  ;;  %v3126_v24 = vmul.f32 %v3777_v63, %v2905_v54  ;;  %v3114_v36 = vmul.f32 %v3777_v63, %v2891_v41  ;;  %v3118_v9 = vmul.f32 %v3777_v63, %v2895_v34 }
 0x902   : > { %v3127_v49 = vmul.f32 %v3779_v62, %v2907_v43  ;;  %v3115_v33 = vmul.f32 %v3779_v62, %v2893_v61  ;;  %v3119_v55 = vmul.f32 %v3779_v62, %v2897_v6  ;;  %v3123_v5 = vmul.f32 %v3779_v62, %v2903_v19  ;;  %v3349_v61 = vld [vmem:[%s5428_s5 + $0x2] ss:$8 sm:$0xf] }
 0x903   : > { %v3134_v3 = vpack.c.bf16 %v3126_v24, %v3122_v48  ;;  %v3130_v39 = vpack.c.bf16 %v3118_v9, %v3114_v36  ;;  %v3225_v42 = vrot.slane %v3349_v61, %v3934_v57  ;;  %v3233_v34 = vrot.slane %v3349_v61, %v3939_v60 }
 0x904   : > { %v3131_v16 = vpack.c.bf16 %v3119_v55, %v3115_v33  ;;  %v3135_v47 = vpack.c.bf16 %v3127_v49, %v3123_v5  ;;  %v3229_v13 = vrot.slane %v3349_v61, %v3937_v59  ;;  %v3237_v18 = vrot.slane %v3349_v61, %v3948_v1 }
 0x906   : > { %3180 = vmatprep.subr.bf16.mxu0 %v3131_v16 }
 0x907   : > { %3181 = vmatpush1.bf16.msra.mxu0 %v3130_v39 }
 0x908   : > { %3182 = vmatprep.subr.bf16.mxu0 %v3135_v47 }
 0x90b   : > { %3183 = vmatpush1.bf16.msra.mxu0 %v3134_v3 }
 0x944   : > { %v3107_v17 = vpop.xlane.xlu0 %3106 }
 0x945   : > { %v3108_v56 = vmax.f32 %v3107_v17, 1e-24 }
 0x947   : > { %3780 = vrsqrt.f32 %v3108_v56 }
 0x951   : > { %v3781_v4 = vpop.eup %3780 }
 0x952   : > { %v3110_v41 = vmul.f32 %v3781_v4, %v5394_v46 }
 0x954   : > { %v3111_v45 = vpack.c.bf16 %v3110_v41, %v3110_v41 }
 0x956   : > { %3393 = vmatmul.mubr.msk.bf16.vlgmr.msra.gmra.mrb[36].mxu1 %vm380_vm0, %v3111_v45  ;;  %3394 = vmatmul.mubr.msk.bf16.vlgmr.msra.gmra.mrb[36].mxu0 %vm380_vm0, %v3111_v45 }
 0xa29   : > { %v3173_v6 = vpop.f32.mrb[36].mxu1  ;;  %v3214_v35 = vpop.f32.mrb[36].mxu0 }
 0xa2a   : > { %v3242_v46 = vmul.f32 %v3225_v42, %v3173_v6  ;;  %v3244_v28 = vmul.f32 %v3233_v34, %v3214_v35  ;;  %v3175_v51 = vpop.f32.mrb[37].mxu1  ;;  %v3216_v0 = vpop.f32.mrb[37].mxu0 }
 0xa2b   : > { %v3243_v11 = vmul.f32 %v3229_v13, %v3175_v51  ;;  %v3245_v32 = vmul.f32 %v3237_v18, %v3216_v0  ;;  %v3177_v26 = vpop.f32.mrb[38].mxu1  ;;  %v3218_v19 = vpop.f32.mrb[38].mxu0 }
 0xa2c   : > { %v3178_v57 = vpop.f32.mrb[39].mxu1  ;;  %v3219_v60 = vpop.f32.mrb[39].mxu0 }
 0xa2d   : > { %v3250_v59 = vcombine.low %v3242_v46, %v3243_v11  ;;  %v3251_v7 = vcombine.low %v3244_v28, %v3245_v32 }
 0xa2f   : > { %3254 = vst [vmem:[%s291_s15] sm:$0xff] %v3250_v59  ;;  %3255 = vst [vmem:[%s291_s15 + $0x8] sm:$0xff] %v3251_v7 }
 0xa30 PF: > { %s16_s21 = sadd.s32 1, %s3796_s21  }
 0xa31   : > { %p13_p4 = scmp.ge.s32.totalorder %s16_s21, 4  }
 0xa33   :  { %15 = sbr.rel (!%p13_p4) target bundleno = 1 (0x1), region = 84 }

</bundles_post_ra>
